<compile_context>
chip_gen: v5e
topology: v5e:2x2
jax: 0.10.0
libtpu: 0.0.40
codegen_flags: <defaults>
</compile_context>

<pallas_src>
import functools

import jax
import jax.numpy as jnp
from jax import lax
from jax.experimental import pallas as pl
from jax.experimental.pallas import tpu as pltpu

BN_EPS = 1e-5


def _shift_lanes(v, s):
    """shifted[:, n] = v[:, n + s] if 0 <= n + s < N else 0   (s is a static int)."""
    C, N = v.shape
    if s == 0:
        return v
    if s > 0:
        return jnp.concatenate([v[:, s:], jnp.zeros((C, s), v.dtype)], axis=1)
    return jnp.concatenate([jnp.zeros((C, -s), v.dtype), v[:, :N + s]], axis=1)


def _ghost_kernel(x_ref, w1_ref, wdw_ref, gamma_ref, beta_ref, o_ref,
                  *, B, Cin, half, H, W):
    """Fused conv -> depthwise conv -> concat -> BatchNorm (batch stats) -> ReLU.

    x_ref    : (B, Cin, N)     VMEM, channels on sublanes, N = H*W on lanes
    w1_ref   : (Cin, 9*half)   VMEM, column (kh*3+kw)*half + co = w_conv[co,ci,kh,kw]
    wdw_ref  : (half, 9)       VMEM, column kh*3+kw            = w_dw[c,0,kh,kw]
    gamma_ref: (2*half, 1)     VMEM
    beta_ref : (2*half, 1)     VMEM
    o_ref    : (B, 2*half, N)  VMEM out
    """
    Cout = 2 * half
    N = H * W

    # Column masks for 'same' padding along W.  Row (H) boundaries need no mask:
    # the zero-fill of _shift_lanes already zeroes anything that falls off the
    # image top/bottom when shifting by +-W (+-1).
    col = lax.broadcasted_iota(jnp.int32, (1, N), 1) % W
    has_left = col >= 1            # neighbour at w-1 exists
    has_right = col <= W - 2       # neighbour at w+1 exists

    def taps(v):
        # All 9 shifted+masked copies, computed once and reused.
        out = {}
        for dh in (-1, 0, 1):
            for dw in (-1, 0, 1):
                t = _shift_lanes(v, dh * W + dw)
                if dw == -1:
                    t = jnp.where(has_left, t, 0.0)
                elif dw == 1:
                    t = jnp.where(has_right, t, 0.0)
                out[(dh, dw)] = t
        return out

    w1 = w1_ref[...]               # (Cin, 9*half)
    wdw = wdw_ref[...]             # (half, 9)

    s_acc = jnp.zeros((Cout, 1), jnp.float32)
    ss_acc = jnp.zeros((Cout, 1), jnp.float32)

    for b in range(B):
        x_t = taps(x_ref[b])                                   # 9 x (Cin, N)

        # ---- conv1: Cin -> half, 3x3 'same' (contract Cin across sublanes) ----
        rows = []
        for co in range(half):
            acc = jnp.zeros((1, N), jnp.float32)
            for kh in range(3):
                for kw in range(3):
                    j = (kh * 3 + kw) * half + co
                    acc = acc + jnp.sum(w1[:, j:j + 1] * x_t[(kh - 1, kw - 1)],
                                        axis=0, keepdims=True)
            rows.append(acc)
        y1 = jnp.concatenate(rows, axis=0)                      # (half, N)

        # ---- depthwise conv: half -> half, 3x3 'same' (per-channel MACs) ------
        y1_t = taps(y1)
        y2 = jnp.zeros((half, N), jnp.float32)
        for kh in range(3):
            for kw in range(3):
                j = kh * 3 + kw
                y2 = y2 + wdw[:, j:j + 1] * y1_t[(kh - 1, kw - 1)]

        y = jnp.concatenate([y1, y2], axis=0)                   # (Cout, N)
        o_ref[b] = y                                            # stash pre-BN y
        s_acc = s_acc + jnp.sum(y, axis=1, keepdims=True)
        ss_acc = ss_acc + jnp.sum(y * y, axis=1, keepdims=True)

    # ---- training-mode BatchNorm (batch stats, biased variance) + ReLU --------
    inv_cnt = 1.0 / float(B * N)
    mean = s_acc * inv_cnt
    var = ss_acc * inv_cnt - mean * mean
    inv = lax.rsqrt(var + BN_EPS)
    scale = gamma_ref[...] * inv                                # (Cout, 1)
    shift = beta_ref[...] - mean * scale                        # (Cout, 1)
    for b in range(B):
        o_ref[b] = jnp.maximum(o_ref[b] * scale + shift, 0.0)


@jax.jit
def ghost_module(x_nchw, w_conv, w_dw, gamma, beta):
    """x_nchw: (B, Cin, H, W); w_conv: (half, Cin, 3, 3); w_dw: (half, 1, 3, 3)."""
    B, Cin, H, W = x_nchw.shape
    half = w_conv.shape[0]
    Cout = 2 * half
    N = H * W

    # Free layout glue: NCHW -> (B, C, H*W) is a reshape (no transpose, no pad).
    x2 = x_nchw.reshape(B, Cin, N).astype(jnp.float32)
    # conv1 weights: one lane-column = the (Cin,) filter for one (co, kh, kw).
    w1 = jnp.transpose(w_conv.astype(jnp.float32), (1, 2, 3, 0)).reshape(Cin, 9 * half)
    # depthwise weights: row = channel, column = kh*3 + kw.
    wdw = w_dw.astype(jnp.float32).reshape(half, 9)
    gamma2 = gamma.astype(jnp.float32).reshape(Cout, 1)
    beta2 = beta.astype(jnp.float32).reshape(Cout, 1)

    vmem = functools.partial(pl.BlockSpec, memory_space=pltpu.MemorySpace.VMEM)
    out = pl.pallas_call(
        functools.partial(_ghost_kernel, B=B, Cin=Cin, half=half, H=H, W=W),
        in_specs=[vmem(), vmem(), vmem(), vmem(), vmem()],
        out_specs=vmem(),
        out_shape=jax.ShapeDtypeStruct((B, Cout, N), jnp.float32),
    )(x2, w1, wdw, gamma2, beta2)

    return out.reshape(B, Cout, H, W)                           # NCHW, like PyTorch


def ghost_module_ref(x_nchw, w_conv, w_dw, gamma, beta):
    """Pure-JAX reference (lax.conv at HIGHEST precision) for correctness."""
    half = w_conv.shape[0]
    y1 = lax.conv_general_dilated(
        x_nchw, w_conv, window_strides=(1, 1), padding="SAME",
        dimension_numbers=("NCHW", "OIHW", "NCHW"),
        precision=lax.Precision.HIGHEST)
    y2 = lax.conv_general_dilated(
        y1, w_dw, window_strides=(1, 1), padding="SAME",
        dimension_numbers=("NCHW", "OIHW", "NCHW"),
        feature_group_count=half, precision=lax.Precision.HIGHEST)
    y = jnp.concatenate([y1, y2], axis=1)
    mean = jnp.mean(y, axis=(0, 2, 3), keepdims=True)
    var = jnp.mean((y - mean) ** 2, axis=(0, 2, 3), keepdims=True)
    yhat = (y - mean) * lax.rsqrt(var + BN_EPS)
    out = yhat * gamma[None, :, None, None] + beta[None, :, None, None]
    return jnp.maximum(out, 0.0)


if __name__ == "__main__":
    # Small shapes consistent with GhostModule(in_channels=4, out_channels=8).
    B, Cin, H, W = 2, 4, 16, 16
    Cout = 8
    half = Cout // 2

    key = jax.random.PRNGKey(0)
    k_x, k_w1, k_w2, k_g, k_b = jax.random.split(key, 5)

    x = jax.random.normal(k_x, (B, Cin, H, W), dtype=jnp.float32)
    w_conv = 0.1 * jax.random.normal(k_w1, (half, Cin, 3, 3), dtype=jnp.float32)
    w_dw = 0.1 * jax.random.normal(k_w2, (half, 1, 3, 3), dtype=jnp.float32)
    gamma = 1.0 + 0.1 * jax.random.normal(k_g, (Cout,), dtype=jnp.float32)
    beta = 0.1 * jax.random.normal(k_b, (Cout,), dtype=jnp.float32)

    out = jax.block_until_ready(ghost_module(x, w_conv, w_dw, gamma, beta))
    ref = jax.block_until_ready(ghost_module_ref(x, w_conv, w_dw, gamma, beta))

    assert out.shape == (B, Cout, H, W), out.shape
    err = float(jnp.max(jnp.abs(out - ref)))
    assert err <= 1e-3, f"max abs err {err}"
    print("KERNEL_OK")
</pallas_src>

<mosaic_0001>
module attributes {stable_mosaic.version = 11 : i64} {
  func.func @_ghost_kernel(%arg0: memref<2x4x256xf32, #tpu.memory_space<vmem>>, %arg1: memref<4x36xf32, #tpu.memory_space<vmem>>, %arg2: memref<4x9xf32, #tpu.memory_space<vmem>>, %arg3: memref<8x1xf32, #tpu.memory_space<vmem>>, %arg4: memref<8x1xf32, #tpu.memory_space<vmem>>, %arg5: memref<2x8x256xf32, #tpu.memory_space<vmem>>) attributes {dimension_semantics = [], scalar_prefetch = 0 : i64, scratch_operands = 0 : i64, tpu.core_type = #tpu.core_type<tc>} {
    %0 = tpu.iota {dimensions = array<i32: 1>} : vector<1x256xi32>
    %c16_i32 = arith.constant 16 : i32
    %c0_i32 = arith.constant 0 : i32
    %1 = arith.cmpi eq, %c16_i32, %c0_i32 : i32
    %c1_i32 = arith.constant 1 : i32
    %2 = arith.select %1, %c1_i32, %c16_i32 : i32
    %3 = vector.broadcast %2 : i32 to vector<1x256xi32>
    %4 = arith.remsi %0, %3 : vector<1x256xi32>
    %c0_i32_0 = arith.constant 0 : i32
    %5 = vector.broadcast %c0_i32_0 : i32 to vector<1x256xi32>
    %6 = arith.cmpi ne, %4, %5 : vector<1x256xi32>
    %c0_i32_1 = arith.constant 0 : i32
    %7 = vector.broadcast %c0_i32_1 : i32 to vector<1x256xi32>
    %8 = arith.cmpi slt, %4, %7 : vector<1x256xi32>
    %c0_i32_2 = arith.constant 0 : i32
    %9 = arith.cmpi slt, %2, %c0_i32_2 : i32
    %10 = vector.broadcast %9 : i1 to vector<1x256xi1>
    %11 = vector.broadcast %10 : vector<1x256xi1> to vector<1x256xi1>
    %12 = arith.xori %8, %11 : vector<1x256xi1>
    %13 = arith.andi %12, %6 : vector<1x256xi1>
    %14 = vector.broadcast %2 : i32 to vector<1x256xi32>
    %15 = arith.addi %4, %14 : vector<1x256xi32>
    %16 = arith.select %13, %15, %4 : vector<1x256xi1>, vector<1x256xi32>
    %c1_i32_3 = arith.constant 1 : i32
    %17 = vector.broadcast %c1_i32_3 : i32 to vector<1x256xi32>
    %18 = arith.cmpi sge, %16, %17 : vector<1x256xi32>
    %c14_i32 = arith.constant 14 : i32
    %19 = vector.broadcast %c14_i32 : i32 to vector<1x256xi32>
    %20 = arith.cmpi sle, %16, %19 : vector<1x256xi32>
    %c0 = arith.constant 0 : index
    %c0_4 = arith.constant 0 : index
    %21 = vector.load %arg1[%c0, %c0_4] : memref<4x36xf32, #tpu.memory_space<vmem>>, vector<4x36xf32>
    %c0_5 = arith.constant 0 : index
    %c0_6 = arith.constant 0 : index
    %22 = vector.load %arg2[%c0_5, %c0_6] : memref<4x9xf32, #tpu.memory_space<vmem>>, vector<4x9xf32>
    %cst = arith.constant 0.000000e+00 : f32
    %23 = vector.broadcast %cst : f32 to vector<8x1xf32>
    %cst_7 = arith.constant 0.000000e+00 : f32
    %24 = vector.broadcast %cst_7 : f32 to vector<8x1xf32>
    %c0_8 = arith.constant 0 : index
    %c0_9 = arith.constant 0 : index
    %c0_10 = arith.constant 0 : index
    %25 = vector.load %arg0[%c0_8, %c0_9, %c0_10] : memref<2x4x256xf32, #tpu.memory_space<vmem>>, vector<1x4x256xf32>
    %26 = vector.shape_cast %25 : vector<1x4x256xf32> to vector<4x256xf32>
    %cst_11 = arith.constant 0.000000e+00 : f32
    %27 = vector.broadcast %cst_11 : f32 to vector<4x17xf32>
    %28 = vector.extract_strided_slice %26 {offsets = [0, 0], sizes = [4, 239], strides = [1, 1]} : vector<4x256xf32> to vector<4x239xf32>
    %29 = tpu.concatenate %27, %28 in 1 : vector<4x17xf32>, vector<4x239xf32> -> vector<4x256xf32>
    %cst_12 = arith.constant 0.000000e+00 : f32
    %30 = vector.shape_cast %18 : vector<1x256xi1> to vector<1x256xi1>
    %31 = vector.broadcast %30 : vector<1x256xi1> to vector<4x256xi1>
    %32 = vector.broadcast %cst_12 : f32 to vector<4x256xf32>
    %33 = arith.select %31, %29, %32 : vector<4x256xi1>, vector<4x256xf32>
    %cst_13 = arith.constant 0.000000e+00 : f32
    %34 = vector.broadcast %cst_13 : f32 to vector<4x16xf32>
    %35 = vector.extract_strided_slice %26 {offsets = [0, 0], sizes = [4, 240], strides = [1, 1]} : vector<4x256xf32> to vector<4x240xf32>
    %36 = tpu.concatenate %34, %35 in 1 : vector<4x16xf32>, vector<4x240xf32> -> vector<4x256xf32>
    %cst_14 = arith.constant 0.000000e+00 : f32
    %37 = vector.broadcast %cst_14 : f32 to vector<4x15xf32>
    %38 = vector.extract_strided_slice %26 {offsets = [0, 0], sizes = [4, 241], strides = [1, 1]} : vector<4x256xf32> to vector<4x241xf32>
    %39 = tpu.concatenate %37, %38 in 1 : vector<4x15xf32>, vector<4x241xf32> -> vector<4x256xf32>
    %cst_15 = arith.constant 0.000000e+00 : f32
    %40 = vector.shape_cast %20 : vector<1x256xi1> to vector<1x256xi1>
    %41 = vector.broadcast %40 : vector<1x256xi1> to vector<4x256xi1>
    %42 = vector.broadcast %cst_15 : f32 to vector<4x256xf32>
    %43 = arith.select %41, %39, %42 : vector<4x256xi1>, vector<4x256xf32>
    %cst_16 = arith.constant 0.000000e+00 : f32
    %44 = vector.broadcast %cst_16 : f32 to vector<4x1xf32>
    %45 = vector.extract_strided_slice %26 {offsets = [0, 0], sizes = [4, 255], strides = [1, 1]} : vector<4x256xf32> to vector<4x255xf32>
    %46 = tpu.concatenate %44, %45 in 1 : vector<4x1xf32>, vector<4x255xf32> -> vector<4x256xf32>
    %cst_17 = arith.constant 0.000000e+00 : f32
    %47 = vector.shape_cast %18 : vector<1x256xi1> to vector<1x256xi1>
    %48 = vector.broadcast %47 : vector<1x256xi1> to vector<4x256xi1>
    %49 = vector.broadcast %cst_17 : f32 to vector<4x256xf32>
    %50 = arith.select %48, %46, %49 : vector<4x256xi1>, vector<4x256xf32>
    %51 = vector.extract_strided_slice %26 {offsets = [0, 1], sizes = [4, 255], strides = [1, 1]} : vector<4x256xf32> to vector<4x255xf32>
    %cst_18 = arith.constant 0.000000e+00 : f32
    %52 = vector.broadcast %cst_18 : f32 to vector<4x1xf32>
    %53 = tpu.concatenate %51, %52 in 1 : vector<4x255xf32>, vector<4x1xf32> -> vector<4x256xf32>
    %cst_19 = arith.constant 0.000000e+00 : f32
    %54 = vector.shape_cast %20 : vector<1x256xi1> to vector<1x256xi1>
    %55 = vector.broadcast %54 : vector<1x256xi1> to vector<4x256xi1>
    %56 = vector.broadcast %cst_19 : f32 to vector<4x256xf32>
    %57 = arith.select %55, %53, %56 : vector<4x256xi1>, vector<4x256xf32>
    %58 = vector.extract_strided_slice %26 {offsets = [0, 15], sizes = [4, 241], strides = [1, 1]} : vector<4x256xf32> to vector<4x241xf32>
    %cst_20 = arith.constant 0.000000e+00 : f32
    %59 = vector.broadcast %cst_20 : f32 to vector<4x15xf32>
    %60 = tpu.concatenate %58, %59 in 1 : vector<4x241xf32>, vector<4x15xf32> -> vector<4x256xf32>
    %cst_21 = arith.constant 0.000000e+00 : f32
    %61 = vector.shape_cast %18 : vector<1x256xi1> to vector<1x256xi1>
    %62 = vector.broadcast %61 : vector<1x256xi1> to vector<4x256xi1>
    %63 = vector.broadcast %cst_21 : f32 to vector<4x256xf32>
    %64 = arith.select %62, %60, %63 : vector<4x256xi1>, vector<4x256xf32>
    %65 = vector.extract_strided_slice %26 {offsets = [0, 16], sizes = [4, 240], strides = [1, 1]} : vector<4x256xf32> to vector<4x240xf32>
    %cst_22 = arith.constant 0.000000e+00 : f32
    %66 = vector.broadcast %cst_22 : f32 to vector<4x16xf32>
    %67 = tpu.concatenate %65, %66 in 1 : vector<4x240xf32>, vector<4x16xf32> -> vector<4x256xf32>
    %68 = vector.extract_strided_slice %26 {offsets = [0, 17], sizes = [4, 239], strides = [1, 1]} : vector<4x256xf32> to vector<4x239xf32>
    %cst_23 = arith.constant 0.000000e+00 : f32
    %69 = vector.broadcast %cst_23 : f32 to vector<4x17xf32>
    %70 = tpu.concatenate %68, %69 in 1 : vector<4x239xf32>, vector<4x17xf32> -> vector<4x256xf32>
    %cst_24 = arith.constant 0.000000e+00 : f32
    %71 = vector.shape_cast %20 : vector<1x256xi1> to vector<1x256xi1>
    %72 = vector.broadcast %71 : vector<1x256xi1> to vector<4x256xi1>
    %73 = vector.broadcast %cst_24 : f32 to vector<4x256xf32>
    %74 = arith.select %72, %70, %73 : vector<4x256xi1>, vector<4x256xf32>
    %cst_25 = arith.constant 0.000000e+00 : f32
    %75 = vector.broadcast %cst_25 : f32 to vector<1x256xf32>
    %76 = vector.extract_strided_slice %21 {offsets = [0, 0], sizes = [4, 1], strides = [1, 1]} : vector<4x36xf32> to vector<4x1xf32>
    %77 = vector.broadcast %76 : vector<4x1xf32> to vector<4x256xf32>
    %78 = arith.mulf %77, %33 : vector<4x256xf32>
    %cst_26 = arith.constant dense<0.000000e+00> : vector<256xf32>
    %79 = vector.multi_reduction <add>, %78, %cst_26 [0] : vector<4x256xf32> to vector<256xf32>
    %80 = vector.shape_cast %79 : vector<256xf32> to vector<1x256xf32>
    %81 = arith.addf %75, %80 : vector<1x256xf32>
    %82 = vector.extract_strided_slice %21 {offsets = [0, 4], sizes = [4, 1], strides = [1, 1]} : vector<4x36xf32> to vector<4x1xf32>
    %83 = vector.broadcast %82 : vector<4x1xf32> to vector<4x256xf32>
    %84 = arith.mulf %83, %36 : vector<4x256xf32>
    %cst_27 = arith.constant dense<0.000000e+00> : vector<256xf32>
    %85 = vector.multi_reduction <add>, %84, %cst_27 [0] : vector<4x256xf32> to vector<256xf32>
    %86 = vector.shape_cast %85 : vector<256xf32> to vector<1x256xf32>
    %87 = arith.addf %81, %86 : vector<1x256xf32>
    %88 = vector.extract_strided_slice %21 {offsets = [0, 8], sizes = [4, 1], strides = [1, 1]} : vector<4x36xf32> to vector<4x1xf32>
    %89 = vector.broadcast %88 : vector<4x1xf32> to vector<4x256xf32>
    %90 = arith.mulf %89, %43 : vector<4x256xf32>
    %cst_28 = arith.constant dense<0.000000e+00> : vector<256xf32>
    %91 = vector.multi_reduction <add>, %90, %cst_28 [0] : vector<4x256xf32> to vector<256xf32>
    %92 = vector.shape_cast %91 : vector<256xf32> to vector<1x256xf32>
    %93 = arith.addf %87, %92 : vector<1x256xf32>
    %94 = vector.extract_strided_slice %21 {offsets = [0, 12], sizes = [4, 1], strides = [1, 1]} : vector<4x36xf32> to vector<4x1xf32>
    %95 = vector.broadcast %94 : vector<4x1xf32> to vector<4x256xf32>
    %96 = arith.mulf %95, %50 : vector<4x256xf32>
    %cst_29 = arith.constant dense<0.000000e+00> : vector<256xf32>
    %97 = vector.multi_reduction <add>, %96, %cst_29 [0] : vector<4x256xf32> to vector<256xf32>
    %98 = vector.shape_cast %97 : vector<256xf32> to vector<1x256xf32>
    %99 = arith.addf %93, %98 : vector<1x256xf32>
    %100 = vector.extract_strided_slice %21 {offsets = [0, 16], sizes = [4, 1], strides = [1, 1]} : vector<4x36xf32> to vector<4x1xf32>
    %101 = vector.broadcast %100 : vector<4x1xf32> to vector<4x256xf32>
    %102 = arith.mulf %101, %26 : vector<4x256xf32>
    %cst_30 = arith.constant dense<0.000000e+00> : vector<256xf32>
    %103 = vector.multi_reduction <add>, %102, %cst_30 [0] : vector<4x256xf32> to vector<256xf32>
    %104 = vector.shape_cast %103 : vector<256xf32> to vector<1x256xf32>
    %105 = arith.addf %99, %104 : vector<1x256xf32>
    %106 = vector.extract_strided_slice %21 {offsets = [0, 20], sizes = [4, 1], strides = [1, 1]} : vector<4x36xf32> to vector<4x1xf32>
    %107 = vector.broadcast %106 : vector<4x1xf32> to vector<4x256xf32>
    %108 = arith.mulf %107, %57 : vector<4x256xf32>
    %cst_31 = arith.constant dense<0.000000e+00> : vector<256xf32>
    %109 = vector.multi_reduction <add>, %108, %cst_31 [0] : vector<4x256xf32> to vector<256xf32>
    %110 = vector.shape_cast %109 : vector<256xf32> to vector<1x256xf32>
    %111 = arith.addf %105, %110 : vector<1x256xf32>
    %112 = vector.extract_strided_slice %21 {offsets = [0, 24], sizes = [4, 1], strides = [1, 1]} : vector<4x36xf32> to vector<4x1xf32>
    %113 = vector.broadcast %112 : vector<4x1xf32> to vector<4x256xf32>
    %114 = arith.mulf %113, %64 : vector<4x256xf32>
    %cst_32 = arith.constant dense<0.000000e+00> : vector<256xf32>
    %115 = vector.multi_reduction <add>, %114, %cst_32 [0] : vector<4x256xf32> to vector<256xf32>
    %116 = vector.shape_cast %115 : vector<256xf32> to vector<1x256xf32>
    %117 = arith.addf %111, %116 : vector<1x256xf32>
    %118 = vector.extract_strided_slice %21 {offsets = [0, 28], sizes = [4, 1], strides = [1, 1]} : vector<4x36xf32> to vector<4x1xf32>
    %119 = vector.broadcast %118 : vector<4x1xf32> to vector<4x256xf32>
    %120 = arith.mulf %119, %67 : vector<4x256xf32>
    %cst_33 = arith.constant dense<0.000000e+00> : vector<256xf32>
    %121 = vector.multi_reduction <add>, %120, %cst_33 [0] : vector<4x256xf32> to vector<256xf32>
    %122 = vector.shape_cast %121 : vector<256xf32> to vector<1x256xf32>
    %123 = arith.addf %117, %122 : vector<1x256xf32>
    %124 = vector.extract_strided_slice %21 {offsets = [0, 32], sizes = [4, 1], strides = [1, 1]} : vector<4x36xf32> to vector<4x1xf32>
    %125 = vector.broadcast %124 : vector<4x1xf32> to vector<4x256xf32>
    %126 = arith.mulf %125, %74 : vector<4x256xf32>
    %cst_34 = arith.constant dense<0.000000e+00> : vector<256xf32>
    %127 = vector.multi_reduction <add>, %126, %cst_34 [0] : vector<4x256xf32> to vector<256xf32>
    %128 = vector.shape_cast %127 : vector<256xf32> to vector<1x256xf32>
    %129 = arith.addf %123, %128 : vector<1x256xf32>
    %cst_35 = arith.constant 0.000000e+00 : f32
    %130 = vector.broadcast %cst_35 : f32 to vector<1x256xf32>
    %131 = vector.extract_strided_slice %21 {offsets = [0, 1], sizes = [4, 1], strides = [1, 1]} : vector<4x36xf32> to vector<4x1xf32>
    %132 = vector.broadcast %131 : vector<4x1xf32> to vector<4x256xf32>
    %133 = arith.mulf %132, %33 : vector<4x256xf32>
    %cst_36 = arith.constant dense<0.000000e+00> : vector<256xf32>
    %134 = vector.multi_reduction <add>, %133, %cst_36 [0] : vector<4x256xf32> to vector<256xf32>
    %135 = vector.shape_cast %134 : vector<256xf32> to vector<1x256xf32>
    %136 = arith.addf %130, %135 : vector<1x256xf32>
    %137 = vector.extract_strided_slice %21 {offsets = [0, 5], sizes = [4, 1], strides = [1, 1]} : vector<4x36xf32> to vector<4x1xf32>
    %138 = vector.broadcast %137 : vector<4x1xf32> to vector<4x256xf32>
    %139 = arith.mulf %138, %36 : vector<4x256xf32>
    %cst_37 = arith.constant dense<0.000000e+00> : vector<256xf32>
    %140 = vector.multi_reduction <add>, %139, %cst_37 [0] : vector<4x256xf32> to vector<256xf32>
    %141 = vector.shape_cast %140 : vector<256xf32> to vector<1x256xf32>
    %142 = arith.addf %136, %141 : vector<1x256xf32>
    %143 = vector.extract_strided_slice %21 {offsets = [0, 9], sizes = [4, 1], strides = [1, 1]} : vector<4x36xf32> to vector<4x1xf32>
    %144 = vector.broadcast %143 : vector<4x1xf32> to vector<4x256xf32>
    %145 = arith.mulf %144, %43 : vector<4x256xf32>
    %cst_38 = arith.constant dense<0.000000e+00> : vector<256xf32>
    %146 = vector.multi_reduction <add>, %145, %cst_38 [0] : vector<4x256xf32> to vector<256xf32>
    %147 = vector.shape_cast %146 : vector<256xf32> to vector<1x256xf32>
    %148 = arith.addf %142, %147 : vector<1x256xf32>
    %149 = vector.extract_strided_slice %21 {offsets = [0, 13], sizes = [4, 1], strides = [1, 1]} : vector<4x36xf32> to vector<4x1xf32>
    %150 = vector.broadcast %149 : vector<4x1xf32> to vector<4x256xf32>
    %151 = arith.mulf %150, %50 : vector<4x256xf32>
    %cst_39 = arith.constant dense<0.000000e+00> : vector<256xf32>
    %152 = vector.multi_reduction <add>, %151, %cst_39 [0] : vector<4x256xf32> to vector<256xf32>
    %153 = vector.shape_cast %152 : vector<256xf32> to vector<1x256xf32>
    %154 = arith.addf %148, %153 : vector<1x256xf32>
    %155 = vector.extract_strided_slice %21 {offsets = [0, 17], sizes = [4, 1], strides = [1, 1]} : vector<4x36xf32> to vector<4x1xf32>
    %156 = vector.broadcast %155 : vector<4x1xf32> to vector<4x256xf32>
    %157 = arith.mulf %156, %26 : vector<4x256xf32>
    %cst_40 = arith.constant dense<0.000000e+00> : vector<256xf32>
    %158 = vector.multi_reduction <add>, %157, %cst_40 [0] : vector<4x256xf32> to vector<256xf32>
    %159 = vector.shape_cast %158 : vector<256xf32> to vector<1x256xf32>
    %160 = arith.addf %154, %159 : vector<1x256xf32>
    %161 = vector.extract_strided_slice %21 {offsets = [0, 21], sizes = [4, 1], strides = [1, 1]} : vector<4x36xf32> to vector<4x1xf32>
    %162 = vector.broadcast %161 : vector<4x1xf32> to vector<4x256xf32>
    %163 = arith.mulf %162, %57 : vector<4x256xf32>
    %cst_41 = arith.constant dense<0.000000e+00> : vector<256xf32>
    %164 = vector.multi_reduction <add>, %163, %cst_41 [0] : vector<4x256xf32> to vector<256xf32>
    %165 = vector.shape_cast %164 : vector<256xf32> to vector<1x256xf32>
    %166 = arith.addf %160, %165 : vector<1x256xf32>
    %167 = vector.extract_strided_slice %21 {offsets = [0, 25], sizes = [4, 1], strides = [1, 1]} : vector<4x36xf32> to vector<4x1xf32>
    %168 = vector.broadcast %167 : vector<4x1xf32> to vector<4x256xf32>
    %169 = arith.mulf %168, %64 : vector<4x256xf32>
    %cst_42 = arith.constant dense<0.000000e+00> : vector<256xf32>
    %170 = vector.multi_reduction <add>, %169, %cst_42 [0] : vector<4x256xf32> to vector<256xf32>
    %171 = vector.shape_cast %170 : vector<256xf32> to vector<1x256xf32>
    %172 = arith.addf %166, %171 : vector<1x256xf32>
    %173 = vector.extract_strided_slice %21 {offsets = [0, 29], sizes = [4, 1], strides = [1, 1]} : vector<4x36xf32> to vector<4x1xf32>
    %174 = vector.broadcast %173 : vector<4x1xf32> to vector<4x256xf32>
    %175 = arith.mulf %174, %67 : vector<4x256xf32>
    %cst_43 = arith.constant dense<0.000000e+00> : vector<256xf32>
    %176 = vector.multi_reduction <add>, %175, %cst_43 [0] : vector<4x256xf32> to vector<256xf32>
    %177 = vector.shape_cast %176 : vector<256xf32> to vector<1x256xf32>
    %178 = arith.addf %172, %177 : vector<1x256xf32>
    %179 = vector.extract_strided_slice %21 {offsets = [0, 33], sizes = [4, 1], strides = [1, 1]} : vector<4x36xf32> to vector<4x1xf32>
    %180 = vector.broadcast %179 : vector<4x1xf32> to vector<4x256xf32>
    %181 = arith.mulf %180, %74 : vector<4x256xf32>
    %cst_44 = arith.constant dense<0.000000e+00> : vector<256xf32>
    %182 = vector.multi_reduction <add>, %181, %cst_44 [0] : vector<4x256xf32> to vector<256xf32>
    %183 = vector.shape_cast %182 : vector<256xf32> to vector<1x256xf32>
    %184 = arith.addf %178, %183 : vector<1x256xf32>
    %cst_45 = arith.constant 0.000000e+00 : f32
    %185 = vector.broadcast %cst_45 : f32 to vector<1x256xf32>
    %186 = vector.extract_strided_slice %21 {offsets = [0, 2], sizes = [4, 1], strides = [1, 1]} : vector<4x36xf32> to vector<4x1xf32>
    %187 = vector.broadcast %186 : vector<4x1xf32> to vector<4x256xf32>
    %188 = arith.mulf %187, %33 : vector<4x256xf32>
    %cst_46 = arith.constant dense<0.000000e+00> : vector<256xf32>
    %189 = vector.multi_reduction <add>, %188, %cst_46 [0] : vector<4x256xf32> to vector<256xf32>
    %190 = vector.shape_cast %189 : vector<256xf32> to vector<1x256xf32>
    %191 = arith.addf %185, %190 : vector<1x256xf32>
    %192 = vector.extract_strided_slice %21 {offsets = [0, 6], sizes = [4, 1], strides = [1, 1]} : vector<4x36xf32> to vector<4x1xf32>
    %193 = vector.broadcast %192 : vector<4x1xf32> to vector<4x256xf32>
    %194 = arith.mulf %193, %36 : vector<4x256xf32>
    %cst_47 = arith.constant dense<0.000000e+00> : vector<256xf32>
    %195 = vector.multi_reduction <add>, %194, %cst_47 [0] : vector<4x256xf32> to vector<256xf32>
    %196 = vector.shape_cast %195 : vector<256xf32> to vector<1x256xf32>
    %197 = arith.addf %191, %196 : vector<1x256xf32>
    %198 = vector.extract_strided_slice %21 {offsets = [0, 10], sizes = [4, 1], strides = [1, 1]} : vector<4x36xf32> to vector<4x1xf32>
    %199 = vector.broadcast %198 : vector<4x1xf32> to vector<4x256xf32>
    %200 = arith.mulf %199, %43 : vector<4x256xf32>
    %cst_48 = arith.constant dense<0.000000e+00> : vector<256xf32>
    %201 = vector.multi_reduction <add>, %200, %cst_48 [0] : vector<4x256xf32> to vector<256xf32>
    %202 = vector.shape_cast %201 : vector<256xf32> to vector<1x256xf32>
    %203 = arith.addf %197, %202 : vector<1x256xf32>
    %204 = vector.extract_strided_slice %21 {offsets = [0, 14], sizes = [4, 1], strides = [1, 1]} : vector<4x36xf32> to vector<4x1xf32>
    %205 = vector.broadcast %204 : vector<4x1xf32> to vector<4x256xf32>
    %206 = arith.mulf %205, %50 : vector<4x256xf32>
    %cst_49 = arith.constant dense<0.000000e+00> : vector<256xf32>
    %207 = vector.multi_reduction <add>, %206, %cst_49 [0] : vector<4x256xf32> to vector<256xf32>
    %208 = vector.shape_cast %207 : vector<256xf32> to vector<1x256xf32>
    %209 = arith.addf %203, %208 : vector<1x256xf32>
    %210 = vector.extract_strided_slice %21 {offsets = [0, 18], sizes = [4, 1], strides = [1, 1]} : vector<4x36xf32> to vector<4x1xf32>
    %211 = vector.broadcast %210 : vector<4x1xf32> to vector<4x256xf32>
    %212 = arith.mulf %211, %26 : vector<4x256xf32>
    %cst_50 = arith.constant dense<0.000000e+00> : vector<256xf32>
    %213 = vector.multi_reduction <add>, %212, %cst_50 [0] : vector<4x256xf32> to vector<256xf32>
    %214 = vector.shape_cast %213 : vector<256xf32> to vector<1x256xf32>
    %215 = arith.addf %209, %214 : vector<1x256xf32>
    %216 = vector.extract_strided_slice %21 {offsets = [0, 22], sizes = [4, 1], strides = [1, 1]} : vector<4x36xf32> to vector<4x1xf32>
    %217 = vector.broadcast %216 : vector<4x1xf32> to vector<4x256xf32>
    %218 = arith.mulf %217, %57 : vector<4x256xf32>
    %cst_51 = arith.constant dense<0.000000e+00> : vector<256xf32>
    %219 = vector.multi_reduction <add>, %218, %cst_51 [0] : vector<4x256xf32> to vector<256xf32>
    %220 = vector.shape_cast %219 : vector<256xf32> to vector<1x256xf32>
    %221 = arith.addf %215, %220 : vector<1x256xf32>
    %222 = vector.extract_strided_slice %21 {offsets = [0, 26], sizes = [4, 1], strides = [1, 1]} : vector<4x36xf32> to vector<4x1xf32>
    %223 = vector.broadcast %222 : vector<4x1xf32> to vector<4x256xf32>
    %224 = arith.mulf %223, %64 : vector<4x256xf32>
    %cst_52 = arith.constant dense<0.000000e+00> : vector<256xf32>
    %225 = vector.multi_reduction <add>, %224, %cst_52 [0] : vector<4x256xf32> to vector<256xf32>
    %226 = vector.shape_cast %225 : vector<256xf32> to vector<1x256xf32>
    %227 = arith.addf %221, %226 : vector<1x256xf32>
    %228 = vector.extract_strided_slice %21 {offsets = [0, 30], sizes = [4, 1], strides = [1, 1]} : vector<4x36xf32> to vector<4x1xf32>
    %229 = vector.broadcast %228 : vector<4x1xf32> to vector<4x256xf32>
    %230 = arith.mulf %229, %67 : vector<4x256xf32>
    %cst_53 = arith.constant dense<0.000000e+00> : vector<256xf32>
    %231 = vector.multi_reduction <add>, %230, %cst_53 [0] : vector<4x256xf32> to vector<256xf32>
    %232 = vector.shape_cast %231 : vector<256xf32> to vector<1x256xf32>
    %233 = arith.addf %227, %232 : vector<1x256xf32>
    %234 = vector.extract_strided_slice %21 {offsets = [0, 34], sizes = [4, 1], strides = [1, 1]} : vector<4x36xf32> to vector<4x1xf32>
    %235 = vector.broadcast %234 : vector<4x1xf32> to vector<4x256xf32>
    %236 = arith.mulf %235, %74 : vector<4x256xf32>
    %cst_54 = arith.constant dense<0.000000e+00> : vector<256xf32>
    %237 = vector.multi_reduction <add>, %236, %cst_54 [0] : vector<4x256xf32> to vector<256xf32>
    %238 = vector.shape_cast %237 : vector<256xf32> to vector<1x256xf32>
    %239 = arith.addf %233, %238 : vector<1x256xf32>
    %cst_55 = arith.constant 0.000000e+00 : f32
    %240 = vector.broadcast %cst_55 : f32 to vector<1x256xf32>
    %241 = vector.extract_strided_slice %21 {offsets = [0, 3], sizes = [4, 1], strides = [1, 1]} : vector<4x36xf32> to vector<4x1xf32>
    %242 = vector.broadcast %241 : vector<4x1xf32> to vector<4x256xf32>
    %243 = arith.mulf %242, %33 : vector<4x256xf32>
    %cst_56 = arith.constant dense<0.000000e+00> : vector<256xf32>
    %244 = vector.multi_reduction <add>, %243, %cst_56 [0] : vector<4x256xf32> to vector<256xf32>
    %245 = vector.shape_cast %244 : vector<256xf32> to vector<1x256xf32>
    %246 = arith.addf %240, %245 : vector<1x256xf32>
    %247 = vector.extract_strided_slice %21 {offsets = [0, 7], sizes = [4, 1], strides = [1, 1]} : vector<4x36xf32> to vector<4x1xf32>
    %248 = vector.broadcast %247 : vector<4x1xf32> to vector<4x256xf32>
    %249 = arith.mulf %248, %36 : vector<4x256xf32>
    %cst_57 = arith.constant dense<0.000000e+00> : vector<256xf32>
    %250 = vector.multi_reduction <add>, %249, %cst_57 [0] : vector<4x256xf32> to vector<256xf32>
    %251 = vector.shape_cast %250 : vector<256xf32> to vector<1x256xf32>
    %252 = arith.addf %246, %251 : vector<1x256xf32>
    %253 = vector.extract_strided_slice %21 {offsets = [0, 11], sizes = [4, 1], strides = [1, 1]} : vector<4x36xf32> to vector<4x1xf32>
    %254 = vector.broadcast %253 : vector<4x1xf32> to vector<4x256xf32>
    %255 = arith.mulf %254, %43 : vector<4x256xf32>
    %cst_58 = arith.constant dense<0.000000e+00> : vector<256xf32>
    %256 = vector.multi_reduction <add>, %255, %cst_58 [0] : vector<4x256xf32> to vector<256xf32>
    %257 = vector.shape_cast %256 : vector<256xf32> to vector<1x256xf32>
    %258 = arith.addf %252, %257 : vector<1x256xf32>
    %259 = vector.extract_strided_slice %21 {offsets = [0, 15], sizes = [4, 1], strides = [1, 1]} : vector<4x36xf32> to vector<4x1xf32>
    %260 = vector.broadcast %259 : vector<4x1xf32> to vector<4x256xf32>
    %261 = arith.mulf %260, %50 : vector<4x256xf32>
    %cst_59 = arith.constant dense<0.000000e+00> : vector<256xf32>
    %262 = vector.multi_reduction <add>, %261, %cst_59 [0] : vector<4x256xf32> to vector<256xf32>
    %263 = vector.shape_cast %262 : vector<256xf32> to vector<1x256xf32>
    %264 = arith.addf %258, %263 : vector<1x256xf32>
    %265 = vector.extract_strided_slice %21 {offsets = [0, 19], sizes = [4, 1], strides = [1, 1]} : vector<4x36xf32> to vector<4x1xf32>
    %266 = vector.broadcast %265 : vector<4x1xf32> to vector<4x256xf32>
    %267 = arith.mulf %266, %26 : vector<4x256xf32>
    %cst_60 = arith.constant dense<0.000000e+00> : vector<256xf32>
    %268 = vector.multi_reduction <add>, %267, %cst_60 [0] : vector<4x256xf32> to vector<256xf32>
    %269 = vector.shape_cast %268 : vector<256xf32> to vector<1x256xf32>
    %270 = arith.addf %264, %269 : vector<1x256xf32>
    %271 = vector.extract_strided_slice %21 {offsets = [0, 23], sizes = [4, 1], strides = [1, 1]} : vector<4x36xf32> to vector<4x1xf32>
    %272 = vector.broadcast %271 : vector<4x1xf32> to vector<4x256xf32>
    %273 = arith.mulf %272, %57 : vector<4x256xf32>
    %cst_61 = arith.constant dense<0.000000e+00> : vector<256xf32>
    %274 = vector.multi_reduction <add>, %273, %cst_61 [0] : vector<4x256xf32> to vector<256xf32>
    %275 = vector.shape_cast %274 : vector<256xf32> to vector<1x256xf32>
    %276 = arith.addf %270, %275 : vector<1x256xf32>
    %277 = vector.extract_strided_slice %21 {offsets = [0, 27], sizes = [4, 1], strides = [1, 1]} : vector<4x36xf32> to vector<4x1xf32>
    %278 = vector.broadcast %277 : vector<4x1xf32> to vector<4x256xf32>
    %279 = arith.mulf %278, %64 : vector<4x256xf32>
    %cst_62 = arith.constant dense<0.000000e+00> : vector<256xf32>
    %280 = vector.multi_reduction <add>, %279, %cst_62 [0] : vector<4x256xf32> to vector<256xf32>
    %281 = vector.shape_cast %280 : vector<256xf32> to vector<1x256xf32>
    %282 = arith.addf %276, %281 : vector<1x256xf32>
    %283 = vector.extract_strided_slice %21 {offsets = [0, 31], sizes = [4, 1], strides = [1, 1]} : vector<4x36xf32> to vector<4x1xf32>
    %284 = vector.broadcast %283 : vector<4x1xf32> to vector<4x256xf32>
    %285 = arith.mulf %284, %67 : vector<4x256xf32>
    %cst_63 = arith.constant dense<0.000000e+00> : vector<256xf32>
    %286 = vector.multi_reduction <add>, %285, %cst_63 [0] : vector<4x256xf32> to vector<256xf32>
    %287 = vector.shape_cast %286 : vector<256xf32> to vector<1x256xf32>
    %288 = arith.addf %282, %287 : vector<1x256xf32>
    %289 = vector.extract_strided_slice %21 {offsets = [0, 35], sizes = [4, 1], strides = [1, 1]} : vector<4x36xf32> to vector<4x1xf32>
    %290 = vector.broadcast %289 : vector<4x1xf32> to vector<4x256xf32>
    %291 = arith.mulf %290, %74 : vector<4x256xf32>
    %cst_64 = arith.constant dense<0.000000e+00> : vector<256xf32>
    %292 = vector.multi_reduction <add>, %291, %cst_64 [0] : vector<4x256xf32> to vector<256xf32>
    %293 = vector.shape_cast %292 : vector<256xf32> to vector<1x256xf32>
    %294 = arith.addf %288, %293 : vector<1x256xf32>
    %295 = tpu.concatenate %129, %184, %239, %294 in 0 : vector<1x256xf32>, vector<1x256xf32>, vector<1x256xf32>, vector<1x256xf32> -> vector<4x256xf32>
    %cst_65 = arith.constant 0.000000e+00 : f32
    %296 = vector.broadcast %cst_65 : f32 to vector<4x17xf32>
    %297 = vector.extract_strided_slice %295 {offsets = [0, 0], sizes = [4, 239], strides = [1, 1]} : vector<4x256xf32> to vector<4x239xf32>
    %298 = tpu.concatenate %296, %297 in 1 : vector<4x17xf32>, vector<4x239xf32> -> vector<4x256xf32>
    %cst_66 = arith.constant 0.000000e+00 : f32
    %299 = vector.shape_cast %18 : vector<1x256xi1> to vector<1x256xi1>
    %300 = vector.broadcast %299 : vector<1x256xi1> to vector<4x256xi1>
    %301 = vector.broadcast %cst_66 : f32 to vector<4x256xf32>
    %302 = arith.select %300, %298, %301 : vector<4x256xi1>, vector<4x256xf32>
    %cst_67 = arith.constant 0.000000e+00 : f32
    %303 = vector.broadcast %cst_67 : f32 to vector<4x16xf32>
    %304 = vector.extract_strided_slice %295 {offsets = [0, 0], sizes = [4, 240], strides = [1, 1]} : vector<4x256xf32> to vector<4x240xf32>
    %305 = tpu.concatenate %303, %304 in 1 : vector<4x16xf32>, vector<4x240xf32> -> vector<4x256xf32>
    %cst_68 = arith.constant 0.000000e+00 : f32
    %306 = vector.broadcast %cst_68 : f32 to vector<4x15xf32>
    %307 = vector.extract_strided_slice %295 {offsets = [0, 0], sizes = [4, 241], strides = [1, 1]} : vector<4x256xf32> to vector<4x241xf32>
    %308 = tpu.concatenate %306, %307 in 1 : vector<4x15xf32>, vector<4x241xf32> -> vector<4x256xf32>
    %cst_69 = arith.constant 0.000000e+00 : f32
    %309 = vector.shape_cast %20 : vector<1x256xi1> to vector<1x256xi1>
    %310 = vector.broadcast %309 : vector<1x256xi1> to vector<4x256xi1>
    %311 = vector.broadcast %cst_69 : f32 to vector<4x256xf32>
    %312 = arith.select %310, %308, %311 : vector<4x256xi1>, vector<4x256xf32>
    %cst_70 = arith.constant 0.000000e+00 : f32
    %313 = vector.broadcast %cst_70 : f32 to vector<4x1xf32>
    %314 = vector.extract_strided_slice %295 {offsets = [0, 0], sizes = [4, 255], strides = [1, 1]} : vector<4x256xf32> to vector<4x255xf32>
    %315 = tpu.concatenate %313, %314 in 1 : vector<4x1xf32>, vector<4x255xf32> -> vector<4x256xf32>
    %cst_71 = arith.constant 0.000000e+00 : f32
    %316 = vector.shape_cast %18 : vector<1x256xi1> to vector<1x256xi1>
    %317 = vector.broadcast %316 : vector<1x256xi1> to vector<4x256xi1>
    %318 = vector.broadcast %cst_71 : f32 to vector<4x256xf32>
    %319 = arith.select %317, %315, %318 : vector<4x256xi1>, vector<4x256xf32>
    %320 = vector.extract_strided_slice %295 {offsets = [0, 1], sizes = [4, 255], strides = [1, 1]} : vector<4x256xf32> to vector<4x255xf32>
    %cst_72 = arith.constant 0.000000e+00 : f32
    %321 = vector.broadcast %cst_72 : f32 to vector<4x1xf32>
    %322 = tpu.concatenate %320, %321 in 1 : vector<4x255xf32>, vector<4x1xf32> -> vector<4x256xf32>
    %cst_73 = arith.constant 0.000000e+00 : f32
    %323 = vector.shape_cast %20 : vector<1x256xi1> to vector<1x256xi1>
    %324 = vector.broadcast %323 : vector<1x256xi1> to vector<4x256xi1>
    %325 = vector.broadcast %cst_73 : f32 to vector<4x256xf32>
    %326 = arith.select %324, %322, %325 : vector<4x256xi1>, vector<4x256xf32>
    %327 = vector.extract_strided_slice %295 {offsets = [0, 15], sizes = [4, 241], strides = [1, 1]} : vector<4x256xf32> to vector<4x241xf32>
    %cst_74 = arith.constant 0.000000e+00 : f32
    %328 = vector.broadcast %cst_74 : f32 to vector<4x15xf32>
    %329 = tpu.concatenate %327, %328 in 1 : vector<4x241xf32>, vector<4x15xf32> -> vector<4x256xf32>
    %cst_75 = arith.constant 0.000000e+00 : f32
    %330 = vector.shape_cast %18 : vector<1x256xi1> to vector<1x256xi1>
    %331 = vector.broadcast %330 : vector<1x256xi1> to vector<4x256xi1>
    %332 = vector.broadcast %cst_75 : f32 to vector<4x256xf32>
    %333 = arith.select %331, %329, %332 : vector<4x256xi1>, vector<4x256xf32>
    %334 = vector.extract_strided_slice %295 {offsets = [0, 16], sizes = [4, 240], strides = [1, 1]} : vector<4x256xf32> to vector<4x240xf32>
    %cst_76 = arith.constant 0.000000e+00 : f32
    %335 = vector.broadcast %cst_76 : f32 to vector<4x16xf32>
    %336 = tpu.concatenate %334, %335 in 1 : vector<4x240xf32>, vector<4x16xf32> -> vector<4x256xf32>
    %337 = vector.extract_strided_slice %295 {offsets = [0, 17], sizes = [4, 239], strides = [1, 1]} : vector<4x256xf32> to vector<4x239xf32>
    %cst_77 = arith.constant 0.000000e+00 : f32
    %338 = vector.broadcast %cst_77 : f32 to vector<4x17xf32>
    %339 = tpu.concatenate %337, %338 in 1 : vector<4x239xf32>, vector<4x17xf32> -> vector<4x256xf32>
    %cst_78 = arith.constant 0.000000e+00 : f32
    %340 = vector.shape_cast %20 : vector<1x256xi1> to vector<1x256xi1>
    %341 = vector.broadcast %340 : vector<1x256xi1> to vector<4x256xi1>
    %342 = vector.broadcast %cst_78 : f32 to vector<4x256xf32>
    %343 = arith.select %341, %339, %342 : vector<4x256xi1>, vector<4x256xf32>
    %cst_79 = arith.constant 0.000000e+00 : f32
    %344 = vector.broadcast %cst_79 : f32 to vector<4x256xf32>
    %345 = vector.extract_strided_slice %22 {offsets = [0, 0], sizes = [4, 1], strides = [1, 1]} : vector<4x9xf32> to vector<4x1xf32>
    %346 = vector.broadcast %345 : vector<4x1xf32> to vector<4x256xf32>
    %347 = arith.mulf %346, %302 : vector<4x256xf32>
    %348 = arith.addf %344, %347 : vector<4x256xf32>
    %349 = vector.extract_strided_slice %22 {offsets = [0, 1], sizes = [4, 1], strides = [1, 1]} : vector<4x9xf32> to vector<4x1xf32>
    %350 = vector.broadcast %349 : vector<4x1xf32> to vector<4x256xf32>
    %351 = arith.mulf %350, %305 : vector<4x256xf32>
    %352 = arith.addf %348, %351 : vector<4x256xf32>
    %353 = vector.extract_strided_slice %22 {offsets = [0, 2], sizes = [4, 1], strides = [1, 1]} : vector<4x9xf32> to vector<4x1xf32>
    %354 = vector.broadcast %353 : vector<4x1xf32> to vector<4x256xf32>
    %355 = arith.mulf %354, %312 : vector<4x256xf32>
    %356 = arith.addf %352, %355 : vector<4x256xf32>
    %357 = vector.extract_strided_slice %22 {offsets = [0, 3], sizes = [4, 1], strides = [1, 1]} : vector<4x9xf32> to vector<4x1xf32>
    %358 = vector.broadcast %357 : vector<4x1xf32> to vector<4x256xf32>
    %359 = arith.mulf %358, %319 : vector<4x256xf32>
    %360 = arith.addf %356, %359 : vector<4x256xf32>
    %361 = vector.extract_strided_slice %22 {offsets = [0, 4], sizes = [4, 1], strides = [1, 1]} : vector<4x9xf32> to vector<4x1xf32>
    %362 = vector.broadcast %361 : vector<4x1xf32> to vector<4x256xf32>
    %363 = arith.mulf %362, %295 : vector<4x256xf32>
    %364 = arith.addf %360, %363 : vector<4x256xf32>
    %365 = vector.extract_strided_slice %22 {offsets = [0, 5], sizes = [4, 1], strides = [1, 1]} : vector<4x9xf32> to vector<4x1xf32>
    %366 = vector.broadcast %365 : vector<4x1xf32> to vector<4x256xf32>
    %367 = arith.mulf %366, %326 : vector<4x256xf32>
    %368 = arith.addf %364, %367 : vector<4x256xf32>
    %369 = vector.extract_strided_slice %22 {offsets = [0, 6], sizes = [4, 1], strides = [1, 1]} : vector<4x9xf32> to vector<4x1xf32>
    %370 = vector.broadcast %369 : vector<4x1xf32> to vector<4x256xf32>
    %371 = arith.mulf %370, %333 : vector<4x256xf32>
    %372 = arith.addf %368, %371 : vector<4x256xf32>
    %373 = vector.extract_strided_slice %22 {offsets = [0, 7], sizes = [4, 1], strides = [1, 1]} : vector<4x9xf32> to vector<4x1xf32>
    %374 = vector.broadcast %373 : vector<4x1xf32> to vector<4x256xf32>
    %375 = arith.mulf %374, %336 : vector<4x256xf32>
    %376 = arith.addf %372, %375 : vector<4x256xf32>
    %377 = vector.extract_strided_slice %22 {offsets = [0, 8], sizes = [4, 1], strides = [1, 1]} : vector<4x9xf32> to vector<4x1xf32>
    %378 = vector.broadcast %377 : vector<4x1xf32> to vector<4x256xf32>
    %379 = arith.mulf %378, %343 : vector<4x256xf32>
    %380 = arith.addf %376, %379 : vector<4x256xf32>
    %381 = tpu.concatenate %295, %380 in 0 : vector<4x256xf32>, vector<4x256xf32> -> vector<8x256xf32>
    %c0_80 = arith.constant 0 : index
    %c0_81 = arith.constant 0 : index
    %c0_82 = arith.constant 0 : index
    %382 = vector.load %arg5[%c0_80, %c0_81, %c0_82] : memref<2x8x256xf32, #tpu.memory_space<vmem>>, vector<1x8x256xf32>
    %383 = vector.shape_cast %382 : vector<1x8x256xf32> to vector<8x256xf32>
    %384 = vector.shape_cast %381 : vector<8x256xf32> to vector<1x8x256xf32>
    tpu.vector_store %arg5[%c0_80, %c0_81, %c0_82], %384 {strides = array<i32>} : memref<2x8x256xf32, #tpu.memory_space<vmem>>, vector<1x8x256xf32>,
    %cst_83 = arith.constant dense<0.000000e+00> : vector<8xf32>
    %385 = vector.multi_reduction <add>, %381, %cst_83 [1] : vector<8x256xf32> to vector<8xf32>
    %386 = vector.shape_cast %385 : vector<8xf32> to vector<8x1xf32>
    %387 = arith.addf %23, %386 : vector<8x1xf32>
    %388 = arith.mulf %381, %381 : vector<8x256xf32>
    %cst_84 = arith.constant dense<0.000000e+00> : vector<8xf32>
    %389 = vector.multi_reduction <add>, %388, %cst_84 [1] : vector<8x256xf32> to vector<8xf32>
    %390 = vector.shape_cast %389 : vector<8xf32> to vector<8x1xf32>
    %391 = arith.addf %24, %390 : vector<8x1xf32>
    %c1 = arith.constant 1 : index
    %c0_85 = arith.constant 0 : index
    %c0_86 = arith.constant 0 : index
    %392 = vector.load %arg0[%c1, %c0_85, %c0_86] : memref<2x4x256xf32, #tpu.memory_space<vmem>>, vector<1x4x256xf32>
    %393 = vector.shape_cast %392 : vector<1x4x256xf32> to vector<4x256xf32>
    %cst_87 = arith.constant 0.000000e+00 : f32
    %394 = vector.broadcast %cst_87 : f32 to vector<4x17xf32>
    %395 = vector.extract_strided_slice %393 {offsets = [0, 0], sizes = [4, 239], strides = [1, 1]} : vector<4x256xf32> to vector<4x239xf32>
    %396 = tpu.concatenate %394, %395 in 1 : vector<4x17xf32>, vector<4x239xf32> -> vector<4x256xf32>
    %cst_88 = arith.constant 0.000000e+00 : f32
    %397 = vector.shape_cast %18 : vector<1x256xi1> to vector<1x256xi1>
    %398 = vector.broadcast %397 : vector<1x256xi1> to vector<4x256xi1>
    %399 = vector.broadcast %cst_88 : f32 to vector<4x256xf32>
    %400 = arith.select %398, %396, %399 : vector<4x256xi1>, vector<4x256xf32>
    %cst_89 = arith.constant 0.000000e+00 : f32
    %401 = vector.broadcast %cst_89 : f32 to vector<4x16xf32>
    %402 = vector.extract_strided_slice %393 {offsets = [0, 0], sizes = [4, 240], strides = [1, 1]} : vector<4x256xf32> to vector<4x240xf32>
    %403 = tpu.concatenate %401, %402 in 1 : vector<4x16xf32>, vector<4x240xf32> -> vector<4x256xf32>
    %cst_90 = arith.constant 0.000000e+00 : f32
    %404 = vector.broadcast %cst_90 : f32 to vector<4x15xf32>
    %405 = vector.extract_strided_slice %393 {offsets = [0, 0], sizes = [4, 241], strides = [1, 1]} : vector<4x256xf32> to vector<4x241xf32>
    %406 = tpu.concatenate %404, %405 in 1 : vector<4x15xf32>, vector<4x241xf32> -> vector<4x256xf32>
    %cst_91 = arith.constant 0.000000e+00 : f32
    %407 = vector.shape_cast %20 : vector<1x256xi1> to vector<1x256xi1>
    %408 = vector.broadcast %407 : vector<1x256xi1> to vector<4x256xi1>
    %409 = vector.broadcast %cst_91 : f32 to vector<4x256xf32>
    %410 = arith.select %408, %406, %409 : vector<4x256xi1>, vector<4x256xf32>
    %cst_92 = arith.constant 0.000000e+00 : f32
    %411 = vector.broadcast %cst_92 : f32 to vector<4x1xf32>
    %412 = vector.extract_strided_slice %393 {offsets = [0, 0], sizes = [4, 255], strides = [1, 1]} : vector<4x256xf32> to vector<4x255xf32>
    %413 = tpu.concatenate %411, %412 in 1 : vector<4x1xf32>, vector<4x255xf32> -> vector<4x256xf32>
    %cst_93 = arith.constant 0.000000e+00 : f32
    %414 = vector.shape_cast %18 : vector<1x256xi1> to vector<1x256xi1>
    %415 = vector.broadcast %414 : vector<1x256xi1> to vector<4x256xi1>
    %416 = vector.broadcast %cst_93 : f32 to vector<4x256xf32>
    %417 = arith.select %415, %413, %416 : vector<4x256xi1>, vector<4x256xf32>
    %418 = vector.extract_strided_slice %393 {offsets = [0, 1], sizes = [4, 255], strides = [1, 1]} : vector<4x256xf32> to vector<4x255xf32>
    %cst_94 = arith.constant 0.000000e+00 : f32
    %419 = vector.broadcast %cst_94 : f32 to vector<4x1xf32>
    %420 = tpu.concatenate %418, %419 in 1 : vector<4x255xf32>, vector<4x1xf32> -> vector<4x256xf32>
    %cst_95 = arith.constant 0.000000e+00 : f32
    %421 = vector.shape_cast %20 : vector<1x256xi1> to vector<1x256xi1>
    %422 = vector.broadcast %421 : vector<1x256xi1> to vector<4x256xi1>
    %423 = vector.broadcast %cst_95 : f32 to vector<4x256xf32>
    %424 = arith.select %422, %420, %423 : vector<4x256xi1>, vector<4x256xf32>
    %425 = vector.extract_strided_slice %393 {offsets = [0, 15], sizes = [4, 241], strides = [1, 1]} : vector<4x256xf32> to vector<4x241xf32>
    %cst_96 = arith.constant 0.000000e+00 : f32
    %426 = vector.broadcast %cst_96 : f32 to vector<4x15xf32>
    %427 = tpu.concatenate %425, %426 in 1 : vector<4x241xf32>, vector<4x15xf32> -> vector<4x256xf32>
    %cst_97 = arith.constant 0.000000e+00 : f32
    %428 = vector.shape_cast %18 : vector<1x256xi1> to vector<1x256xi1>
    %429 = vector.broadcast %428 : vector<1x256xi1> to vector<4x256xi1>
    %430 = vector.broadcast %cst_97 : f32 to vector<4x256xf32>
    %431 = arith.select %429, %427, %430 : vector<4x256xi1>, vector<4x256xf32>
    %432 = vector.extract_strided_slice %393 {offsets = [0, 16], sizes = [4, 240], strides = [1, 1]} : vector<4x256xf32> to vector<4x240xf32>
    %cst_98 = arith.constant 0.000000e+00 : f32
    %433 = vector.broadcast %cst_98 : f32 to vector<4x16xf32>
    %434 = tpu.concatenate %432, %433 in 1 : vector<4x240xf32>, vector<4x16xf32> -> vector<4x256xf32>
    %435 = vector.extract_strided_slice %393 {offsets = [0, 17], sizes = [4, 239], strides = [1, 1]} : vector<4x256xf32> to vector<4x239xf32>
    %cst_99 = arith.constant 0.000000e+00 : f32
    %436 = vector.broadcast %cst_99 : f32 to vector<4x17xf32>
    %437 = tpu.concatenate %435, %436 in 1 : vector<4x239xf32>, vector<4x17xf32> -> vector<4x256xf32>
    %cst_100 = arith.constant 0.000000e+00 : f32
    %438 = vector.shape_cast %20 : vector<1x256xi1> to vector<1x256xi1>
    %439 = vector.broadcast %438 : vector<1x256xi1> to vector<4x256xi1>
    %440 = vector.broadcast %cst_100 : f32 to vector<4x256xf32>
    %441 = arith.select %439, %437, %440 : vector<4x256xi1>, vector<4x256xf32>
    %cst_101 = arith.constant 0.000000e+00 : f32
    %442 = vector.broadcast %cst_101 : f32 to vector<1x256xf32>
    %443 = vector.extract_strided_slice %21 {offsets = [0, 0], sizes = [4, 1], strides = [1, 1]} : vector<4x36xf32> to vector<4x1xf32>
    %444 = vector.broadcast %443 : vector<4x1xf32> to vector<4x256xf32>
    %445 = arith.mulf %444, %400 : vector<4x256xf32>
    %cst_102 = arith.constant dense<0.000000e+00> : vector<256xf32>
    %446 = vector.multi_reduction <add>, %445, %cst_102 [0] : vector<4x256xf32> to vector<256xf32>
    %447 = vector.shape_cast %446 : vector<256xf32> to vector<1x256xf32>
    %448 = arith.addf %442, %447 : vector<1x256xf32>
    %449 = vector.extract_strided_slice %21 {offsets = [0, 4], sizes = [4, 1], strides = [1, 1]} : vector<4x36xf32> to vector<4x1xf32>
    %450 = vector.broadcast %449 : vector<4x1xf32> to vector<4x256xf32>
    %451 = arith.mulf %450, %403 : vector<4x256xf32>
    %cst_103 = arith.constant dense<0.000000e+00> : vector<256xf32>
    %452 = vector.multi_reduction <add>, %451, %cst_103 [0] : vector<4x256xf32> to vector<256xf32>
    %453 = vector.shape_cast %452 : vector<256xf32> to vector<1x256xf32>
    %454 = arith.addf %448, %453 : vector<1x256xf32>
    %455 = vector.extract_strided_slice %21 {offsets = [0, 8], sizes = [4, 1], strides = [1, 1]} : vector<4x36xf32> to vector<4x1xf32>
    %456 = vector.broadcast %455 : vector<4x1xf32> to vector<4x256xf32>
    %457 = arith.mulf %456, %410 : vector<4x256xf32>
    %cst_104 = arith.constant dense<0.000000e+00> : vector<256xf32>
    %458 = vector.multi_reduction <add>, %457, %cst_104 [0] : vector<4x256xf32> to vector<256xf32>
    %459 = vector.shape_cast %458 : vector<256xf32> to vector<1x256xf32>
    %460 = arith.addf %454, %459 : vector<1x256xf32>
    %461 = vector.extract_strided_slice %21 {offsets = [0, 12], sizes = [4, 1], strides = [1, 1]} : vector<4x36xf32> to vector<4x1xf32>
    %462 = vector.broadcast %461 : vector<4x1xf32> to vector<4x256xf32>
    %463 = arith.mulf %462, %417 : vector<4x256xf32>
    %cst_105 = arith.constant dense<0.000000e+00> : vector<256xf32>
    %464 = vector.multi_reduction <add>, %463, %cst_105 [0] : vector<4x256xf32> to vector<256xf32>
    %465 = vector.shape_cast %464 : vector<256xf32> to vector<1x256xf32>
    %466 = arith.addf %460, %465 : vector<1x256xf32>
    %467 = vector.extract_strided_slice %21 {offsets = [0, 16], sizes = [4, 1], strides = [1, 1]} : vector<4x36xf32> to vector<4x1xf32>
    %468 = vector.broadcast %467 : vector<4x1xf32> to vector<4x256xf32>
    %469 = arith.mulf %468, %393 : vector<4x256xf32>
    %cst_106 = arith.constant dense<0.000000e+00> : vector<256xf32>
    %470 = vector.multi_reduction <add>, %469, %cst_106 [0] : vector<4x256xf32> to vector<256xf32>
    %471 = vector.shape_cast %470 : vector<256xf32> to vector<1x256xf32>
    %472 = arith.addf %466, %471 : vector<1x256xf32>
    %473 = vector.extract_strided_slice %21 {offsets = [0, 20], sizes = [4, 1], strides = [1, 1]} : vector<4x36xf32> to vector<4x1xf32>
    %474 = vector.broadcast %473 : vector<4x1xf32> to vector<4x256xf32>
    %475 = arith.mulf %474, %424 : vector<4x256xf32>
    %cst_107 = arith.constant dense<0.000000e+00> : vector<256xf32>
    %476 = vector.multi_reduction <add>, %475, %cst_107 [0] : vector<4x256xf32> to vector<256xf32>
    %477 = vector.shape_cast %476 : vector<256xf32> to vector<1x256xf32>
    %478 = arith.addf %472, %477 : vector<1x256xf32>
    %479 = vector.extract_strided_slice %21 {offsets = [0, 24], sizes = [4, 1], strides = [1, 1]} : vector<4x36xf32> to vector<4x1xf32>
    %480 = vector.broadcast %479 : vector<4x1xf32> to vector<4x256xf32>
    %481 = arith.mulf %480, %431 : vector<4x256xf32>
    %cst_108 = arith.constant dense<0.000000e+00> : vector<256xf32>
    %482 = vector.multi_reduction <add>, %481, %cst_108 [0] : vector<4x256xf32> to vector<256xf32>
    %483 = vector.shape_cast %482 : vector<256xf32> to vector<1x256xf32>
    %484 = arith.addf %478, %483 : vector<1x256xf32>
    %485 = vector.extract_strided_slice %21 {offsets = [0, 28], sizes = [4, 1], strides = [1, 1]} : vector<4x36xf32> to vector<4x1xf32>
    %486 = vector.broadcast %485 : vector<4x1xf32> to vector<4x256xf32>
    %487 = arith.mulf %486, %434 : vector<4x256xf32>
    %cst_109 = arith.constant dense<0.000000e+00> : vector<256xf32>
    %488 = vector.multi_reduction <add>, %487, %cst_109 [0] : vector<4x256xf32> to vector<256xf32>
    %489 = vector.shape_cast %488 : vector<256xf32> to vector<1x256xf32>
    %490 = arith.addf %484, %489 : vector<1x256xf32>
    %491 = vector.extract_strided_slice %21 {offsets = [0, 32], sizes = [4, 1], strides = [1, 1]} : vector<4x36xf32> to vector<4x1xf32>
    %492 = vector.broadcast %491 : vector<4x1xf32> to vector<4x256xf32>
    %493 = arith.mulf %492, %441 : vector<4x256xf32>
    %cst_110 = arith.constant dense<0.000000e+00> : vector<256xf32>
    %494 = vector.multi_reduction <add>, %493, %cst_110 [0] : vector<4x256xf32> to vector<256xf32>
    %495 = vector.shape_cast %494 : vector<256xf32> to vector<1x256xf32>
    %496 = arith.addf %490, %495 : vector<1x256xf32>
    %cst_111 = arith.constant 0.000000e+00 : f32
    %497 = vector.broadcast %cst_111 : f32 to vector<1x256xf32>
    %498 = vector.extract_strided_slice %21 {offsets = [0, 1], sizes = [4, 1], strides = [1, 1]} : vector<4x36xf32> to vector<4x1xf32>
    %499 = vector.broadcast %498 : vector<4x1xf32> to vector<4x256xf32>
    %500 = arith.mulf %499, %400 : vector<4x256xf32>
    %cst_112 = arith.constant dense<0.000000e+00> : vector<256xf32>
    %501 = vector.multi_reduction <add>, %500, %cst_112 [0] : vector<4x256xf32> to vector<256xf32>
    %502 = vector.shape_cast %501 : vector<256xf32> to vector<1x256xf32>
    %503 = arith.addf %497, %502 : vector<1x256xf32>
    %504 = vector.extract_strided_slice %21 {offsets = [0, 5], sizes = [4, 1], strides = [1, 1]} : vector<4x36xf32> to vector<4x1xf32>
    %505 = vector.broadcast %504 : vector<4x1xf32> to vector<4x256xf32>
    %506 = arith.mulf %505, %403 : vector<4x256xf32>
    %cst_113 = arith.constant dense<0.000000e+00> : vector<256xf32>
    %507 = vector.multi_reduction <add>, %506, %cst_113 [0] : vector<4x256xf32> to vector<256xf32>
    %508 = vector.shape_cast %507 : vector<256xf32> to vector<1x256xf32>
    %509 = arith.addf %503, %508 : vector<1x256xf32>
    %510 = vector.extract_strided_slice %21 {offsets = [0, 9], sizes = [4, 1], strides = [1, 1]} : vector<4x36xf32> to vector<4x1xf32>
    %511 = vector.broadcast %510 : vector<4x1xf32> to vector<4x256xf32>
    %512 = arith.mulf %511, %410 : vector<4x256xf32>
    %cst_114 = arith.constant dense<0.000000e+00> : vector<256xf32>
    %513 = vector.multi_reduction <add>, %512, %cst_114 [0] : vector<4x256xf32> to vector<256xf32>
    %514 = vector.shape_cast %513 : vector<256xf32> to vector<1x256xf32>
    %515 = arith.addf %509, %514 : vector<1x256xf32>
    %516 = vector.extract_strided_slice %21 {offsets = [0, 13], sizes = [4, 1], strides = [1, 1]} : vector<4x36xf32> to vector<4x1xf32>
    %517 = vector.broadcast %516 : vector<4x1xf32> to vector<4x256xf32>
    %518 = arith.mulf %517, %417 : vector<4x256xf32>
    %cst_115 = arith.constant dense<0.000000e+00> : vector<256xf32>
    %519 = vector.multi_reduction <add>, %518, %cst_115 [0] : vector<4x256xf32> to vector<256xf32>
    %520 = vector.shape_cast %519 : vector<256xf32> to vector<1x256xf32>
    %521 = arith.addf %515, %520 : vector<1x256xf32>
    %522 = vector.extract_strided_slice %21 {offsets = [0, 17], sizes = [4, 1], strides = [1, 1]} : vector<4x36xf32> to vector<4x1xf32>
    %523 = vector.broadcast %522 : vector<4x1xf32> to vector<4x256xf32>
    %524 = arith.mulf %523, %393 : vector<4x256xf32>
    %cst_116 = arith.constant dense<0.000000e+00> : vector<256xf32>
    %525 = vector.multi_reduction <add>, %524, %cst_116 [0] : vector<4x256xf32> to vector<256xf32>
    %526 = vector.shape_cast %525 : vector<256xf32> to vector<1x256xf32>
    %527 = arith.addf %521, %526 : vector<1x256xf32>
    %528 = vector.extract_strided_slice %21 {offsets = [0, 21], sizes = [4, 1], strides = [1, 1]} : vector<4x36xf32> to vector<4x1xf32>
    %529 = vector.broadcast %528 : vector<4x1xf32> to vector<4x256xf32>
    %530 = arith.mulf %529, %424 : vector<4x256xf32>
    %cst_117 = arith.constant dense<0.000000e+00> : vector<256xf32>
    %531 = vector.multi_reduction <add>, %530, %cst_117 [0] : vector<4x256xf32> to vector<256xf32>
    %532 = vector.shape_cast %531 : vector<256xf32> to vector<1x256xf32>
    %533 = arith.addf %527, %532 : vector<1x256xf32>
    %534 = vector.extract_strided_slice %21 {offsets = [0, 25], sizes = [4, 1], strides = [1, 1]} : vector<4x36xf32> to vector<4x1xf32>
    %535 = vector.broadcast %534 : vector<4x1xf32> to vector<4x256xf32>
    %536 = arith.mulf %535, %431 : vector<4x256xf32>
    %cst_118 = arith.constant dense<0.000000e+00> : vector<256xf32>
    %537 = vector.multi_reduction <add>, %536, %cst_118 [0] : vector<4x256xf32> to vector<256xf32>
    %538 = vector.shape_cast %537 : vector<256xf32> to vector<1x256xf32>
    %539 = arith.addf %533, %538 : vector<1x256xf32>
    %540 = vector.extract_strided_slice %21 {offsets = [0, 29], sizes = [4, 1], strides = [1, 1]} : vector<4x36xf32> to vector<4x1xf32>
    %541 = vector.broadcast %540 : vector<4x1xf32> to vector<4x256xf32>
    %542 = arith.mulf %541, %434 : vector<4x256xf32>
    %cst_119 = arith.constant dense<0.000000e+00> : vector<256xf32>
    %543 = vector.multi_reduction <add>, %542, %cst_119 [0] : vector<4x256xf32> to vector<256xf32>
    %544 = vector.shape_cast %543 : vector<256xf32> to vector<1x256xf32>
    %545 = arith.addf %539, %544 : vector<1x256xf32>
    %546 = vector.extract_strided_slice %21 {offsets = [0, 33], sizes = [4, 1], strides = [1, 1]} : vector<4x36xf32> to vector<4x1xf32>
    %547 = vector.broadcast %546 : vector<4x1xf32> to vector<4x256xf32>
    %548 = arith.mulf %547, %441 : vector<4x256xf32>
    %cst_120 = arith.constant dense<0.000000e+00> : vector<256xf32>
    %549 = vector.multi_reduction <add>, %548, %cst_120 [0] : vector<4x256xf32> to vector<256xf32>
    %550 = vector.shape_cast %549 : vector<256xf32> to vector<1x256xf32>
    %551 = arith.addf %545, %550 : vector<1x256xf32>
    %cst_121 = arith.constant 0.000000e+00 : f32
    %552 = vector.broadcast %cst_121 : f32 to vector<1x256xf32>
    %553 = vector.extract_strided_slice %21 {offsets = [0, 2], sizes = [4, 1], strides = [1, 1]} : vector<4x36xf32> to vector<4x1xf32>
    %554 = vector.broadcast %553 : vector<4x1xf32> to vector<4x256xf32>
    %555 = arith.mulf %554, %400 : vector<4x256xf32>
    %cst_122 = arith.constant dense<0.000000e+00> : vector<256xf32>
    %556 = vector.multi_reduction <add>, %555, %cst_122 [0] : vector<4x256xf32> to vector<256xf32>
    %557 = vector.shape_cast %556 : vector<256xf32> to vector<1x256xf32>
    %558 = arith.addf %552, %557 : vector<1x256xf32>
    %559 = vector.extract_strided_slice %21 {offsets = [0, 6], sizes = [4, 1], strides = [1, 1]} : vector<4x36xf32> to vector<4x1xf32>
    %560 = vector.broadcast %559 : vector<4x1xf32> to vector<4x256xf32>
    %561 = arith.mulf %560, %403 : vector<4x256xf32>
    %cst_123 = arith.constant dense<0.000000e+00> : vector<256xf32>
    %562 = vector.multi_reduction <add>, %561, %cst_123 [0] : vector<4x256xf32> to vector<256xf32>
    %563 = vector.shape_cast %562 : vector<256xf32> to vector<1x256xf32>
    %564 = arith.addf %558, %563 : vector<1x256xf32>
    %565 = vector.extract_strided_slice %21 {offsets = [0, 10], sizes = [4, 1], strides = [1, 1]} : vector<4x36xf32> to vector<4x1xf32>
    %566 = vector.broadcast %565 : vector<4x1xf32> to vector<4x256xf32>
    %567 = arith.mulf %566, %410 : vector<4x256xf32>
    %cst_124 = arith.constant dense<0.000000e+00> : vector<256xf32>
    %568 = vector.multi_reduction <add>, %567, %cst_124 [0] : vector<4x256xf32> to vector<256xf32>
    %569 = vector.shape_cast %568 : vector<256xf32> to vector<1x256xf32>
    %570 = arith.addf %564, %569 : vector<1x256xf32>
    %571 = vector.extract_strided_slice %21 {offsets = [0, 14], sizes = [4, 1], strides = [1, 1]} : vector<4x36xf32> to vector<4x1xf32>
    %572 = vector.broadcast %571 : vector<4x1xf32> to vector<4x256xf32>
    %573 = arith.mulf %572, %417 : vector<4x256xf32>
    %cst_125 = arith.constant dense<0.000000e+00> : vector<256xf32>
    %574 = vector.multi_reduction <add>, %573, %cst_125 [0] : vector<4x256xf32> to vector<256xf32>
    %575 = vector.shape_cast %574 : vector<256xf32> to vector<1x256xf32>
    %576 = arith.addf %570, %575 : vector<1x256xf32>
    %577 = vector.extract_strided_slice %21 {offsets = [0, 18], sizes = [4, 1], strides = [1, 1]} : vector<4x36xf32> to vector<4x1xf32>
    %578 = vector.broadcast %577 : vector<4x1xf32> to vector<4x256xf32>
    %579 = arith.mulf %578, %393 : vector<4x256xf32>
    %cst_126 = arith.constant dense<0.000000e+00> : vector<256xf32>
    %580 = vector.multi_reduction <add>, %579, %cst_126 [0] : vector<4x256xf32> to vector<256xf32>
    %581 = vector.shape_cast %580 : vector<256xf32> to vector<1x256xf32>
    %582 = arith.addf %576, %581 : vector<1x256xf32>
    %583 = vector.extract_strided_slice %21 {offsets = [0, 22], sizes = [4, 1], strides = [1, 1]} : vector<4x36xf32> to vector<4x1xf32>
    %584 = vector.broadcast %583 : vector<4x1xf32> to vector<4x256xf32>
    %585 = arith.mulf %584, %424 : vector<4x256xf32>
    %cst_127 = arith.constant dense<0.000000e+00> : vector<256xf32>
    %586 = vector.multi_reduction <add>, %585, %cst_127 [0] : vector<4x256xf32> to vector<256xf32>
    %587 = vector.shape_cast %586 : vector<256xf32> to vector<1x256xf32>
    %588 = arith.addf %582, %587 : vector<1x256xf32>
    %589 = vector.extract_strided_slice %21 {offsets = [0, 26], sizes = [4, 1], strides = [1, 1]} : vector<4x36xf32> to vector<4x1xf32>
    %590 = vector.broadcast %589 : vector<4x1xf32> to vector<4x256xf32>
    %591 = arith.mulf %590, %431 : vector<4x256xf32>
    %cst_128 = arith.constant dense<0.000000e+00> : vector<256xf32>
    %592 = vector.multi_reduction <add>, %591, %cst_128 [0] : vector<4x256xf32> to vector<256xf32>
    %593 = vector.shape_cast %592 : vector<256xf32> to vector<1x256xf32>
    %594 = arith.addf %588, %593 : vector<1x256xf32>
    %595 = vector.extract_strided_slice %21 {offsets = [0, 30], sizes = [4, 1], strides = [1, 1]} : vector<4x36xf32> to vector<4x1xf32>
    %596 = vector.broadcast %595 : vector<4x1xf32> to vector<4x256xf32>
    %597 = arith.mulf %596, %434 : vector<4x256xf32>
    %cst_129 = arith.constant dense<0.000000e+00> : vector<256xf32>
    %598 = vector.multi_reduction <add>, %597, %cst_129 [0] : vector<4x256xf32> to vector<256xf32>
    %599 = vector.shape_cast %598 : vector<256xf32> to vector<1x256xf32>
    %600 = arith.addf %594, %599 : vector<1x256xf32>
    %601 = vector.extract_strided_slice %21 {offsets = [0, 34], sizes = [4, 1], strides = [1, 1]} : vector<4x36xf32> to vector<4x1xf32>
    %602 = vector.broadcast %601 : vector<4x1xf32> to vector<4x256xf32>
    %603 = arith.mulf %602, %441 : vector<4x256xf32>
    %cst_130 = arith.constant dense<0.000000e+00> : vector<256xf32>
    %604 = vector.multi_reduction <add>, %603, %cst_130 [0] : vector<4x256xf32> to vector<256xf32>
    %605 = vector.shape_cast %604 : vector<256xf32> to vector<1x256xf32>
    %606 = arith.addf %600, %605 : vector<1x256xf32>
    %cst_131 = arith.constant 0.000000e+00 : f32
    %607 = vector.broadcast %cst_131 : f32 to vector<1x256xf32>
    %608 = vector.extract_strided_slice %21 {offsets = [0, 3], sizes = [4, 1], strides = [1, 1]} : vector<4x36xf32> to vector<4x1xf32>
    %609 = vector.broadcast %608 : vector<4x1xf32> to vector<4x256xf32>
    %610 = arith.mulf %609, %400 : vector<4x256xf32>
    %cst_132 = arith.constant dense<0.000000e+00> : vector<256xf32>
    %611 = vector.multi_reduction <add>, %610, %cst_132 [0] : vector<4x256xf32> to vector<256xf32>
    %612 = vector.shape_cast %611 : vector<256xf32> to vector<1x256xf32>
    %613 = arith.addf %607, %612 : vector<1x256xf32>
    %614 = vector.extract_strided_slice %21 {offsets = [0, 7], sizes = [4, 1], strides = [1, 1]} : vector<4x36xf32> to vector<4x1xf32>
    %615 = vector.broadcast %614 : vector<4x1xf32> to vector<4x256xf32>
    %616 = arith.mulf %615, %403 : vector<4x256xf32>
    %cst_133 = arith.constant dense<0.000000e+00> : vector<256xf32>
    %617 = vector.multi_reduction <add>, %616, %cst_133 [0] : vector<4x256xf32> to vector<256xf32>
    %618 = vector.shape_cast %617 : vector<256xf32> to vector<1x256xf32>
    %619 = arith.addf %613, %618 : vector<1x256xf32>
    %620 = vector.extract_strided_slice %21 {offsets = [0, 11], sizes = [4, 1], strides = [1, 1]} : vector<4x36xf32> to vector<4x1xf32>
    %621 = vector.broadcast %620 : vector<4x1xf32> to vector<4x256xf32>
    %622 = arith.mulf %621, %410 : vector<4x256xf32>
    %cst_134 = arith.constant dense<0.000000e+00> : vector<256xf32>
    %623 = vector.multi_reduction <add>, %622, %cst_134 [0] : vector<4x256xf32> to vector<256xf32>
    %624 = vector.shape_cast %623 : vector<256xf32> to vector<1x256xf32>
    %625 = arith.addf %619, %624 : vector<1x256xf32>
    %626 = vector.extract_strided_slice %21 {offsets = [0, 15], sizes = [4, 1], strides = [1, 1]} : vector<4x36xf32> to vector<4x1xf32>
    %627 = vector.broadcast %626 : vector<4x1xf32> to vector<4x256xf32>
    %628 = arith.mulf %627, %417 : vector<4x256xf32>
    %cst_135 = arith.constant dense<0.000000e+00> : vector<256xf32>
    %629 = vector.multi_reduction <add>, %628, %cst_135 [0] : vector<4x256xf32> to vector<256xf32>
    %630 = vector.shape_cast %629 : vector<256xf32> to vector<1x256xf32>
    %631 = arith.addf %625, %630 : vector<1x256xf32>
    %632 = vector.extract_strided_slice %21 {offsets = [0, 19], sizes = [4, 1], strides = [1, 1]} : vector<4x36xf32> to vector<4x1xf32>
    %633 = vector.broadcast %632 : vector<4x1xf32> to vector<4x256xf32>
    %634 = arith.mulf %633, %393 : vector<4x256xf32>
    %cst_136 = arith.constant dense<0.000000e+00> : vector<256xf32>
    %635 = vector.multi_reduction <add>, %634, %cst_136 [0] : vector<4x256xf32> to vector<256xf32>
    %636 = vector.shape_cast %635 : vector<256xf32> to vector<1x256xf32>
    %637 = arith.addf %631, %636 : vector<1x256xf32>
    %638 = vector.extract_strided_slice %21 {offsets = [0, 23], sizes = [4, 1], strides = [1, 1]} : vector<4x36xf32> to vector<4x1xf32>
    %639 = vector.broadcast %638 : vector<4x1xf32> to vector<4x256xf32>
    %640 = arith.mulf %639, %424 : vector<4x256xf32>
    %cst_137 = arith.constant dense<0.000000e+00> : vector<256xf32>
    %641 = vector.multi_reduction <add>, %640, %cst_137 [0] : vector<4x256xf32> to vector<256xf32>
    %642 = vector.shape_cast %641 : vector<256xf32> to vector<1x256xf32>
    %643 = arith.addf %637, %642 : vector<1x256xf32>
    %644 = vector.extract_strided_slice %21 {offsets = [0, 27], sizes = [4, 1], strides = [1, 1]} : vector<4x36xf32> to vector<4x1xf32>
    %645 = vector.broadcast %644 : vector<4x1xf32> to vector<4x256xf32>
    %646 = arith.mulf %645, %431 : vector<4x256xf32>
    %cst_138 = arith.constant dense<0.000000e+00> : vector<256xf32>
    %647 = vector.multi_reduction <add>, %646, %cst_138 [0] : vector<4x256xf32> to vector<256xf32>
    %648 = vector.shape_cast %647 : vector<256xf32> to vector<1x256xf32>
    %649 = arith.addf %643, %648 : vector<1x256xf32>
    %650 = vector.extract_strided_slice %21 {offsets = [0, 31], sizes = [4, 1], strides = [1, 1]} : vector<4x36xf32> to vector<4x1xf32>
    %651 = vector.broadcast %650 : vector<4x1xf32> to vector<4x256xf32>
    %652 = arith.mulf %651, %434 : vector<4x256xf32>
    %cst_139 = arith.constant dense<0.000000e+00> : vector<256xf32>
    %653 = vector.multi_reduction <add>, %652, %cst_139 [0] : vector<4x256xf32> to vector<256xf32>
    %654 = vector.shape_cast %653 : vector<256xf32> to vector<1x256xf32>
    %655 = arith.addf %649, %654 : vector<1x256xf32>
    %656 = vector.extract_strided_slice %21 {offsets = [0, 35], sizes = [4, 1], strides = [1, 1]} : vector<4x36xf32> to vector<4x1xf32>
    %657 = vector.broadcast %656 : vector<4x1xf32> to vector<4x256xf32>
    %658 = arith.mulf %657, %441 : vector<4x256xf32>
    %cst_140 = arith.constant dense<0.000000e+00> : vector<256xf32>
    %659 = vector.multi_reduction <add>, %658, %cst_140 [0] : vector<4x256xf32> to vector<256xf32>
    %660 = vector.shape_cast %659 : vector<256xf32> to vector<1x256xf32>
    %661 = arith.addf %655, %660 : vector<1x256xf32>
    %662 = tpu.concatenate %496, %551, %606, %661 in 0 : vector<1x256xf32>, vector<1x256xf32>, vector<1x256xf32>, vector<1x256xf32> -> vector<4x256xf32>
    %cst_141 = arith.constant 0.000000e+00 : f32
    %663 = vector.broadcast %cst_141 : f32 to vector<4x17xf32>
    %664 = vector.extract_strided_slice %662 {offsets = [0, 0], sizes = [4, 239], strides = [1, 1]} : vector<4x256xf32> to vector<4x239xf32>
    %665 = tpu.concatenate %663, %664 in 1 : vector<4x17xf32>, vector<4x239xf32> -> vector<4x256xf32>
    %cst_142 = arith.constant 0.000000e+00 : f32
    %666 = vector.shape_cast %18 : vector<1x256xi1> to vector<1x256xi1>
    %667 = vector.broadcast %666 : vector<1x256xi1> to vector<4x256xi1>
    %668 = vector.broadcast %cst_142 : f32 to vector<4x256xf32>
    %669 = arith.select %667, %665, %668 : vector<4x256xi1>, vector<4x256xf32>
    %cst_143 = arith.constant 0.000000e+00 : f32
    %670 = vector.broadcast %cst_143 : f32 to vector<4x16xf32>
    %671 = vector.extract_strided_slice %662 {offsets = [0, 0], sizes = [4, 240], strides = [1, 1]} : vector<4x256xf32> to vector<4x240xf32>
    %672 = tpu.concatenate %670, %671 in 1 : vector<4x16xf32>, vector<4x240xf32> -> vector<4x256xf32>
    %cst_144 = arith.constant 0.000000e+00 : f32
    %673 = vector.broadcast %cst_144 : f32 to vector<4x15xf32>
    %674 = vector.extract_strided_slice %662 {offsets = [0, 0], sizes = [4, 241], strides = [1, 1]} : vector<4x256xf32> to vector<4x241xf32>
    %675 = tpu.concatenate %673, %674 in 1 : vector<4x15xf32>, vector<4x241xf32> -> vector<4x256xf32>
    %cst_145 = arith.constant 0.000000e+00 : f32
    %676 = vector.shape_cast %20 : vector<1x256xi1> to vector<1x256xi1>
    %677 = vector.broadcast %676 : vector<1x256xi1> to vector<4x256xi1>
    %678 = vector.broadcast %cst_145 : f32 to vector<4x256xf32>
    %679 = arith.select %677, %675, %678 : vector<4x256xi1>, vector<4x256xf32>
    %cst_146 = arith.constant 0.000000e+00 : f32
    %680 = vector.broadcast %cst_146 : f32 to vector<4x1xf32>
    %681 = vector.extract_strided_slice %662 {offsets = [0, 0], sizes = [4, 255], strides = [1, 1]} : vector<4x256xf32> to vector<4x255xf32>
    %682 = tpu.concatenate %680, %681 in 1 : vector<4x1xf32>, vector<4x255xf32> -> vector<4x256xf32>
    %cst_147 = arith.constant 0.000000e+00 : f32
    %683 = vector.shape_cast %18 : vector<1x256xi1> to vector<1x256xi1>
    %684 = vector.broadcast %683 : vector<1x256xi1> to vector<4x256xi1>
    %685 = vector.broadcast %cst_147 : f32 to vector<4x256xf32>
    %686 = arith.select %684, %682, %685 : vector<4x256xi1>, vector<4x256xf32>
    %687 = vector.extract_strided_slice %662 {offsets = [0, 1], sizes = [4, 255], strides = [1, 1]} : vector<4x256xf32> to vector<4x255xf32>
    %cst_148 = arith.constant 0.000000e+00 : f32
    %688 = vector.broadcast %cst_148 : f32 to vector<4x1xf32>
    %689 = tpu.concatenate %687, %688 in 1 : vector<4x255xf32>, vector<4x1xf32> -> vector<4x256xf32>
    %cst_149 = arith.constant 0.000000e+00 : f32
    %690 = vector.shape_cast %20 : vector<1x256xi1> to vector<1x256xi1>
    %691 = vector.broadcast %690 : vector<1x256xi1> to vector<4x256xi1>
    %692 = vector.broadcast %cst_149 : f32 to vector<4x256xf32>
    %693 = arith.select %691, %689, %692 : vector<4x256xi1>, vector<4x256xf32>
    %694 = vector.extract_strided_slice %662 {offsets = [0, 15], sizes = [4, 241], strides = [1, 1]} : vector<4x256xf32> to vector<4x241xf32>
    %cst_150 = arith.constant 0.000000e+00 : f32
    %695 = vector.broadcast %cst_150 : f32 to vector<4x15xf32>
    %696 = tpu.concatenate %694, %695 in 1 : vector<4x241xf32>, vector<4x15xf32> -> vector<4x256xf32>
    %cst_151 = arith.constant 0.000000e+00 : f32
    %697 = vector.shape_cast %18 : vector<1x256xi1> to vector<1x256xi1>
    %698 = vector.broadcast %697 : vector<1x256xi1> to vector<4x256xi1>
    %699 = vector.broadcast %cst_151 : f32 to vector<4x256xf32>
    %700 = arith.select %698, %696, %699 : vector<4x256xi1>, vector<4x256xf32>
    %701 = vector.extract_strided_slice %662 {offsets = [0, 16], sizes = [4, 240], strides = [1, 1]} : vector<4x256xf32> to vector<4x240xf32>
    %cst_152 = arith.constant 0.000000e+00 : f32
    %702 = vector.broadcast %cst_152 : f32 to vector<4x16xf32>
    %703 = tpu.concatenate %701, %702 in 1 : vector<4x240xf32>, vector<4x16xf32> -> vector<4x256xf32>
    %704 = vector.extract_strided_slice %662 {offsets = [0, 17], sizes = [4, 239], strides = [1, 1]} : vector<4x256xf32> to vector<4x239xf32>
    %cst_153 = arith.constant 0.000000e+00 : f32
    %705 = vector.broadcast %cst_153 : f32 to vector<4x17xf32>
    %706 = tpu.concatenate %704, %705 in 1 : vector<4x239xf32>, vector<4x17xf32> -> vector<4x256xf32>
    %cst_154 = arith.constant 0.000000e+00 : f32
    %707 = vector.shape_cast %20 : vector<1x256xi1> to vector<1x256xi1>
    %708 = vector.broadcast %707 : vector<1x256xi1> to vector<4x256xi1>
    %709 = vector.broadcast %cst_154 : f32 to vector<4x256xf32>
    %710 = arith.select %708, %706, %709 : vector<4x256xi1>, vector<4x256xf32>
    %cst_155 = arith.constant 0.000000e+00 : f32
    %711 = vector.broadcast %cst_155 : f32 to vector<4x256xf32>
    %712 = vector.extract_strided_slice %22 {offsets = [0, 0], sizes = [4, 1], strides = [1, 1]} : vector<4x9xf32> to vector<4x1xf32>
    %713 = vector.broadcast %712 : vector<4x1xf32> to vector<4x256xf32>
    %714 = arith.mulf %713, %669 : vector<4x256xf32>
    %715 = arith.addf %711, %714 : vector<4x256xf32>
    %716 = vector.extract_strided_slice %22 {offsets = [0, 1], sizes = [4, 1], strides = [1, 1]} : vector<4x9xf32> to vector<4x1xf32>
    %717 = vector.broadcast %716 : vector<4x1xf32> to vector<4x256xf32>
    %718 = arith.mulf %717, %672 : vector<4x256xf32>
    %719 = arith.addf %715, %718 : vector<4x256xf32>
    %720 = vector.extract_strided_slice %22 {offsets = [0, 2], sizes = [4, 1], strides = [1, 1]} : vector<4x9xf32> to vector<4x1xf32>
    %721 = vector.broadcast %720 : vector<4x1xf32> to vector<4x256xf32>
    %722 = arith.mulf %721, %679 : vector<4x256xf32>
    %723 = arith.addf %719, %722 : vector<4x256xf32>
    %724 = vector.extract_strided_slice %22 {offsets = [0, 3], sizes = [4, 1], strides = [1, 1]} : vector<4x9xf32> to vector<4x1xf32>
    %725 = vector.broadcast %724 : vector<4x1xf32> to vector<4x256xf32>
    %726 = arith.mulf %725, %686 : vector<4x256xf32>
    %727 = arith.addf %723, %726 : vector<4x256xf32>
    %728 = vector.extract_strided_slice %22 {offsets = [0, 4], sizes = [4, 1], strides = [1, 1]} : vector<4x9xf32> to vector<4x1xf32>
    %729 = vector.broadcast %728 : vector<4x1xf32> to vector<4x256xf32>
    %730 = arith.mulf %729, %662 : vector<4x256xf32>
    %731 = arith.addf %727, %730 : vector<4x256xf32>
    %732 = vector.extract_strided_slice %22 {offsets = [0, 5], sizes = [4, 1], strides = [1, 1]} : vector<4x9xf32> to vector<4x1xf32>
    %733 = vector.broadcast %732 : vector<4x1xf32> to vector<4x256xf32>
    %734 = arith.mulf %733, %693 : vector<4x256xf32>
    %735 = arith.addf %731, %734 : vector<4x256xf32>
    %736 = vector.extract_strided_slice %22 {offsets = [0, 6], sizes = [4, 1], strides = [1, 1]} : vector<4x9xf32> to vector<4x1xf32>
    %737 = vector.broadcast %736 : vector<4x1xf32> to vector<4x256xf32>
    %738 = arith.mulf %737, %700 : vector<4x256xf32>
    %739 = arith.addf %735, %738 : vector<4x256xf32>
    %740 = vector.extract_strided_slice %22 {offsets = [0, 7], sizes = [4, 1], strides = [1, 1]} : vector<4x9xf32> to vector<4x1xf32>
    %741 = vector.broadcast %740 : vector<4x1xf32> to vector<4x256xf32>
    %742 = arith.mulf %741, %703 : vector<4x256xf32>
    %743 = arith.addf %739, %742 : vector<4x256xf32>
    %744 = vector.extract_strided_slice %22 {offsets = [0, 8], sizes = [4, 1], strides = [1, 1]} : vector<4x9xf32> to vector<4x1xf32>
    %745 = vector.broadcast %744 : vector<4x1xf32> to vector<4x256xf32>
    %746 = arith.mulf %745, %710 : vector<4x256xf32>
    %747 = arith.addf %743, %746 : vector<4x256xf32>
    %748 = tpu.concatenate %662, %747 in 0 : vector<4x256xf32>, vector<4x256xf32> -> vector<8x256xf32>
    %c1_156 = arith.constant 1 : index
    %c0_157 = arith.constant 0 : index
    %c0_158 = arith.constant 0 : index
    %749 = vector.load %arg5[%c1_156, %c0_157, %c0_158] : memref<2x8x256xf32, #tpu.memory_space<vmem>>, vector<1x8x256xf32>
    %750 = vector.shape_cast %749 : vector<1x8x256xf32> to vector<8x256xf32>
    %751 = vector.shape_cast %748 : vector<8x256xf32> to vector<1x8x256xf32>
    tpu.vector_store %arg5[%c1_156, %c0_157, %c0_158], %751 {strides = array<i32>} : memref<2x8x256xf32, #tpu.memory_space<vmem>>, vector<1x8x256xf32>,
    %cst_159 = arith.constant dense<0.000000e+00> : vector<8xf32>
    %752 = vector.multi_reduction <add>, %748, %cst_159 [1] : vector<8x256xf32> to vector<8xf32>
    %753 = vector.shape_cast %752 : vector<8xf32> to vector<8x1xf32>
    %754 = arith.addf %387, %753 : vector<8x1xf32>
    %755 = arith.mulf %748, %748 : vector<8x256xf32>
    %cst_160 = arith.constant dense<0.000000e+00> : vector<8xf32>
    %756 = vector.multi_reduction <add>, %755, %cst_160 [1] : vector<8x256xf32> to vector<8xf32>
    %757 = vector.shape_cast %756 : vector<8xf32> to vector<8x1xf32>
    %758 = arith.addf %391, %757 : vector<8x1xf32>
    %cst_161 = arith.constant 0.001953125 : f32
    %759 = vector.broadcast %cst_161 : f32 to vector<8x1xf32>
    %760 = arith.mulf %754, %759 : vector<8x1xf32>
    %cst_162 = arith.constant 0.001953125 : f32
    %761 = vector.broadcast %cst_162 : f32 to vector<8x1xf32>
    %762 = arith.mulf %758, %761 : vector<8x1xf32>
    %763 = arith.mulf %760, %760 : vector<8x1xf32>
    %764 = arith.subf %762, %763 : vector<8x1xf32>
    %cst_163 = arith.constant 9.99999974E-6 : f32
    %765 = vector.broadcast %cst_163 : f32 to vector<8x1xf32>
    %766 = arith.addf %764, %765 : vector<8x1xf32>
    %767 = math.rsqrt %766 : vector<8x1xf32>
    %c0_164 = arith.constant 0 : index
    %c0_165 = arith.constant 0 : index
    %768 = vector.load %arg3[%c0_164, %c0_165] : memref<8x1xf32, #tpu.memory_space<vmem>>, vector<8x1xf32>
    %769 = arith.mulf %768, %767 : vector<8x1xf32>
    %c0_166 = arith.constant 0 : index
    %c0_167 = arith.constant 0 : index
    %770 = vector.load %arg4[%c0_166, %c0_167] : memref<8x1xf32, #tpu.memory_space<vmem>>, vector<8x1xf32>
    %771 = arith.mulf %760, %769 : vector<8x1xf32>
    %772 = arith.subf %770, %771 : vector<8x1xf32>
    %c0_168 = arith.constant 0 : index
    %c0_169 = arith.constant 0 : index
    %c0_170 = arith.constant 0 : index
    %773 = vector.load %arg5[%c0_168, %c0_169, %c0_170] : memref<2x8x256xf32, #tpu.memory_space<vmem>>, vector<1x8x256xf32>
    %774 = vector.shape_cast %773 : vector<1x8x256xf32> to vector<8x256xf32>
    %775 = vector.broadcast %769 : vector<8x1xf32> to vector<8x256xf32>
    %776 = arith.mulf %774, %775 : vector<8x256xf32>
    %777 = vector.broadcast %772 : vector<8x1xf32> to vector<8x256xf32>
    %778 = arith.addf %776, %777 : vector<8x256xf32>
    %cst_171 = arith.constant 0.000000e+00 : f32
    %779 = vector.broadcast %cst_171 : f32 to vector<8x256xf32>
    %780 = arith.maximumf %778, %779 : vector<8x256xf32>
    %c0_172 = arith.constant 0 : index
    %c0_173 = arith.constant 0 : index
    %c0_174 = arith.constant 0 : index
    %781 = vector.load %arg5[%c0_172, %c0_173, %c0_174] : memref<2x8x256xf32, #tpu.memory_space<vmem>>, vector<1x8x256xf32>
    %782 = vector.shape_cast %781 : vector<1x8x256xf32> to vector<8x256xf32>
    %783 = vector.shape_cast %780 : vector<8x256xf32> to vector<1x8x256xf32>
    tpu.vector_store %arg5[%c0_172, %c0_173, %c0_174], %783 {strides = array<i32>} : memref<2x8x256xf32, #tpu.memory_space<vmem>>, vector<1x8x256xf32>,
    %c1_175 = arith.constant 1 : index
    %c0_176 = arith.constant 0 : index
    %c0_177 = arith.constant 0 : index
    %784 = vector.load %arg5[%c1_175, %c0_176, %c0_177] : memref<2x8x256xf32, #tpu.memory_space<vmem>>, vector<1x8x256xf32>
    %785 = vector.shape_cast %784 : vector<1x8x256xf32> to vector<8x256xf32>
    %786 = vector.broadcast %769 : vector<8x1xf32> to vector<8x256xf32>
    %787 = arith.mulf %785, %786 : vector<8x256xf32>
    %788 = vector.broadcast %772 : vector<8x1xf32> to vector<8x256xf32>
    %789 = arith.addf %787, %788 : vector<8x256xf32>
    %cst_178 = arith.constant 0.000000e+00 : f32
    %790 = vector.broadcast %cst_178 : f32 to vector<8x256xf32>
    %791 = arith.maximumf %789, %790 : vector<8x256xf32>
    %c1_179 = arith.constant 1 : index
    %c0_180 = arith.constant 0 : index
    %c0_181 = arith.constant 0 : index
    %792 = vector.load %arg5[%c1_179, %c0_180, %c0_181] : memref<2x8x256xf32, #tpu.memory_space<vmem>>, vector<1x8x256xf32>
    %793 = vector.shape_cast %792 : vector<1x8x256xf32> to vector<8x256xf32>
    %794 = vector.shape_cast %791 : vector<8x256xf32> to vector<1x8x256xf32>
    tpu.vector_store %arg5[%c1_179, %c0_180, %c0_181], %794 {strides = array<i32>} : memref<2x8x256xf32, #tpu.memory_space<vmem>>, vector<1x8x256xf32>,
    return
  }
}

</mosaic_0001>

<bundles_post_ra>
// kernel: ghost_module.1
= control target key start
LH: loop header
LB: loop body
LE: loop exit
PB: predicated region body
PF: predicated region fallthrough
CT: control target
= control target key end

     0   :  { %v3805_v0 = vmov 4   ;;  %v3806_v1 = vmov 0   ;;  %v3800_v4 = vmov 8   ;;  %s2234_s22 = smov 17   ;;  %v2235_v7 = vmov 16   ;;  %s2239_s23 = smov 15   ;;  %s3794_s1 = inlined_call_operand.vmem [shape: f32[4,36], index: 1, kind: input, shape index: {}]   ;;  %s3795_s0 = inlined_call_operand.vmem [shape: f32[2,4,256], index: 0, kind: input, shape index: {}]   ;;  %s3796_s2 = inlined_call_operand.vmem [shape: f32[4,9], index: 2, kind: input, shape index: {}]   ;;  %s3797_s3 = inlined_call_operand.vmem [shape: f32[8,1], index: 3, kind: input, shape index: {}]   ;;  %s3798_s4 = inlined_call_operand.vmem [shape: f32[8,1], index: 4, kind: input, shape index: {}]   ;;  %s3799_s5 = inlined_call_operand.vmem [shape: f32[2,8,256], index: 5, kind: output, shape index: {}]  }
   0x1   :  { %2183 = vset.pattern.permute.xlu2 %v3805_v0  ;;  %2182 = vset.pattern.permute.xlu1 %v3806_v1  ;;  %v2310_v2 = vld [vmem:[%s3794_s1] sm:$0xf]  ;;  %v2236_v8 = vmov 12   ;;  %s2237_s1 = smov 16   ;;  %v2238_v11 = vmov 24   ;;  %s2240_s24 = smov 1   ;;  %v20_v53 = vlaneseq }
   0x2   :  { %v2315_v3 = vld [vmem:[%s3795_s0] sm:$0xff]  ;;  %196 = vperm.xlu2 %2183, %v2310_v2   ;;  %173 = vperm.xlu1 %2182, %v2310_v2   ;;  %s2241_s25 = smov 127   ;;  %v2242_v18 = vmov 20   ;;  %v2243_v19 = vmov 28   ;;  %v3808_v22 = vmov 1   ;;  %s2245_s26 = smov 113  }
   0x3   :  { %55 = vst [vmem:[#allocation1] ss:$2 sm:$0xff] %v2315_v3  ;;  %2184 = vset.pattern.permute.xlu0 %v3800_v4  ;;  %s2246_s27 = smov 112   ;;  %v2247_v25 = vmov 32   ;;  %s2248_s28 = smov 111   ;;  %v2249_v32 = vmov 5  }
   0x4   :  { %v2250_v33 = vmov 13   ;;  %v2251_v34 = vmov 9   ;;  %v2252_v37 = vmov 17   ;;  %v2253_v38 = vmov 33   ;;  %v2379_v40 = vld [vmem:[%s3795_s0 + $0x8] sm:$0xff] }
   0x5   :  { %v2254_v39 = vmov 21   ;;  %v2255_v44 = vmov 25   ;;  %v2256_v45 = vmov 18   ;;  %v2257_v46 = vmov 29  }
   0x6   :  { %v3804_v50 = vmov 2   ;;  %v3803_v51 = vmov 3   ;;  %v3801_v52 = vmov 6   ;;  %v21_v56 = vand.u32 127, %v20_v53 }
   0x7   :  { %v2261_v59 = vmov 10   ;;  %v2262_v60 = vmov 23   ;;  %v2263_v61 = vmov 14   ;;  %vm62_vm0 = vcmask 138240  }
   0x8   :  { %v27_v58 = vand.u32 15, %v21_v56  ;;  %vm92_vm2 = vcmask 121856   ;;  %vm178_vm3 = vcmask 1043456   ;;  %vm80_vm4 = vcmask 130048  }
   0x9   :  { %vm110_vm8 = vcmask 7168   ;;  %vm138_vm9 = vcmask 924672   ;;  %vm124_vm10 = vcmask 1039360   ;;  %vm152_vm11 = vcmask 916480  }
   0xa   :  { %v56_v5 = vld.sshfl [vmem:[#allocation1] sm:$0xff pattern:$0x75316420]  ;;  %v57_v6 = vld.sshfl [vmem:[#allocation1 + $0x8] sm:$0xff pattern:$0x75316420]  ;;  %2186 = vset.pattern.permute.xlu2 %v2235_v7  ;;  %2185 = vset.pattern.permute.xlu1 %v2236_v8 }
   0xb   :  { %58 = vrot.lane.b32.xlu0 %v56_v5, %s2234_s22  ;;  %73 = vst [vmem:[#allocation1] ss:$2 sm:$0xff] %v2315_v3  ;;  %262 = vperm.xlu2 %2186, %v2310_v2   ;;  %vm2415_vm1 = vcmp.ge.s32.totalorder %v27_v58, 1  ;;  %v3879_v5 = vmov 0  ;;  %vm2447_vm6 = vcmp.le.s32.totalorder %v27_v58, 14  ;;  %vm164_vm12 = vcmask 908288  }
   0xc   :  { %v3880_v5 = vsel %vm2415_vm1, 4294967295, %v3879_v5  ;;  %vm985_vm13 = vcmask 1040384   ;;  %vm988_vm14 = vcmask 1041408   ;;  %vm991_vm15 = vcmask 1042432  }
   0xd   :  { %3881 = vst [vmem:[#allocation8_spill] sm:$0xff] %v3880_v5 }
  0x12   :  { %v74_v9 = vld.sshfl [vmem:[#allocation1] sm:$0xff pattern:$0x75316420]  ;;  %v75_v10 = vld.sshfl [vmem:[#allocation1 + $0x8] sm:$0xff pattern:$0x75316420] }
  0x13   :  { %60 = vrot.lane.b32.xlu0 %v57_v6, %s2234_s22  ;;  %76 = vrot.lane.b32.xlu1 %v74_v9, %s2237_s1  ;;  %85 = vst [vmem:[#allocation1] ss:$2 sm:$0xff] %v2315_v3  ;;  %v22_v6 = vadd.s32 128, %v21_v56 }
  0x14   :  { %2188 = vset.pattern.permute.xlu2 %v2238_v11 }
  0x1a   :  { %v86_v12 = vld.sshfl [vmem:[#allocation1] sm:$0xff pattern:$0x75316420]  ;;  %v87_v13 = vld.sshfl [vmem:[#allocation1 + $0x8] sm:$0xff pattern:$0x75316420] }
  0x1b   :  { %218 = vperm.xlu0 %2184, %v2310_v2   ;;  %78 = vrot.lane.b32.xlu1 %v75_v10, %s2237_s1  ;;  %103 = vst [vmem:[#allocation1] ss:$2 sm:$0xff] %v2315_v3 }
  0x1c   :  { %88 = vrot.lane.b32.xlu2 %v86_v12, %s2239_s23 }
  0x22   :  { %v104_v14 = vld.sshfl [vmem:[#allocation1] sm:$0xff pattern:$0x75316420]  ;;  %v105_v15 = vld.sshfl [vmem:[#allocation1 + $0x8] sm:$0xff pattern:$0x75316420] }
  0x23   :  { %240 = vperm.xlu1 %2185, %v2310_v2   ;;  %106 = vrot.lane.b32.xlu0 %v104_v14, %s2240_s24  ;;  %117 = vst [vmem:[#allocation1] ss:$2 sm:$0xff] %v2315_v3 }
  0x24   :  { %90 = vrot.lane.b32.xlu2 %v87_v13, %s2239_s23  ;;  %2189 = vset.pattern.permute.xlu0 %v2243_v19  ;;  %v34_v13 = vand.u32 15, %v22_v6  ;;  %v2266_v6 = vmov 30  }
  0x26   :  { %vm2436_vm5 = vcmp.ge.s32.totalorder %v34_v13, 1  ;;  %vm2460_vm7 = vcmp.le.s32.totalorder %v34_v13, 14 }
  0x2a   :  { %v119_v16 = vld.sshfl [vmem:[#allocation1 + $0x8] sm:$0xff pattern:$0x75316420]  ;;  %v118_v17 = vld.sshfl [vmem:[#allocation1] sm:$0xff pattern:$0x75316420] }
  0x2b   :  { %108 = vrot.lane.b32.xlu1 %v105_v15, %s2240_s24  ;;  %122 = vrot.lane.b32.xlu0 %v119_v16, %s2241_s25  ;;  %131 = vst [vmem:[#allocation1] ss:$2 sm:$0xff] %v2315_v3  ;;  %v2264_v15 = vmov 22  }
  0x2c   :  { %311 = vperm.xlu2 %2188, %v2310_v2   ;;  %2187 = vset.pattern.permute.xlu1 %v2242_v18  ;;  %v2265_v18 = vmov 26  }
  0x32   :  { %v133_v20 = vld.sshfl [vmem:[#allocation1 + $0x8] sm:$0xff pattern:$0x75316420]  ;;  %v132_v21 = vld.sshfl [vmem:[#allocation1] sm:$0xff pattern:$0x75316420] }
  0x33   :  { %289 = vperm.xlu1 %2187, %v2310_v2   ;;  %145 = vst [vmem:[#allocation1] ss:$2 sm:$0xff] %v2315_v3 }
  0x34   :  { %120 = vrot.lane.b32.xlu2 %v118_v17, %s2241_s25 }
  0x35   :  { %2191 = vset.pattern.permute.xlu2 %v3808_v22 }
  0x3a   :  { %v146_v23 = vld.sshfl [vmem:[#allocation1] sm:$0xff pattern:$0x75316420]  ;;  %v147_v24 = vld.sshfl [vmem:[#allocation1 + $0x8] sm:$0xff pattern:$0x75316420] }
  0x3b   :  { %134 = vrot.lane.b32.xlu1 %v132_v21, %s2245_s26  ;;  %148 = vrot.lane.b32.xlu0 %v146_v23, %s2246_s27  ;;  %157 = vst [vmem:[#allocation1] ss:$2 sm:$0xff] %v2315_v3 }
  0x3c   :  { %136 = vrot.lane.b32.xlu2 %v133_v20, %s2245_s26  ;;  %2190 = vset.pattern.permute.xlu1 %v2247_v25  ;;  %v3883_v20 = vmov 0 }
  0x3d   :  { %v3884_v20 = vsel %vm2436_vm5, 4294967295, %v3883_v20 }
  0x3e   :  { %3885 = vst [vmem:[#allocation10_spill] sm:$0xff] %v3884_v20 }
  0x42   :  { %v159_v26 = vld.sshfl [vmem:[#allocation1 + $0x8] sm:$0xff pattern:$0x75316420]  ;;  %v158_v27 = vld.sshfl [vmem:[#allocation1] sm:$0xff pattern:$0x75316420] }
  0x43   :  { %150 = vrot.lane.b32.xlu1 %v147_v24, %s2246_s27  ;;  %162 = vrot.lane.b32.xlu0 %v159_v26, %s2248_s28  ;;  %265 = vst [vmem:[#allocation1] ss:$2 sm:$0xff] %v2315_v3 }
  0x44   :  { %160 = vrot.lane.b32.xlu2 %v158_v27, %s2248_s28 }
  0x4a   :  { %v2351_v28 = vld.sshfl [vmem:[#allocation1] sm:$0xff pattern:$0x75316420]  ;;  %v2353_v29 = vld.sshfl [vmem:[#allocation1 + $0x8] sm:$0xff pattern:$0x75316420] }
  0x4b   :  { %468 = vst [vmem:[#allocation1] ss:$2 sm:$0xff] %v2315_v3  ;;  %355 = vperm.xlu1 %2190, %v2310_v2   ;;  %333 = vperm.xlu0 %2189, %v2310_v2  }
  0x4c   :  { %377 = vperm.xlu2 %2191, %v2310_v2  }
  0x52   :  { %v2359_v30 = vld.sshfl [vmem:[#allocation1] sm:$0xff pattern:$0x75316420]  ;;  %v2361_v31 = vld.sshfl [vmem:[#allocation1 + $0x8] sm:$0xff pattern:$0x75316420] }
  0x53   :  { %671 = vst [vmem:[#allocation1] ss:$2 sm:$0xff] %v2315_v3  ;;  %2192 = vset.pattern.permute.xlu1 %v2249_v32  ;;  %2194 = vset.pattern.permute.xlu0 %v2250_v33  ;;  %v3887_v33 = vmov 0 }
  0x54   :  { %2193 = vset.pattern.permute.xlu2 %v2251_v34  ;;  %399 = vperm.xlu1 %2192, %v2310_v2   ;;  %v3888_v33 = vsel %vm2447_vm6, 4294967295, %v3887_v33 }
  0x55   :  { %443 = vperm.xlu0 %2194, %v2310_v2   ;;  %421 = vperm.xlu2 %2193, %v2310_v2   ;;  %3889 = vst [vmem:[#allocation12_spill] sm:$0xff] %v3888_v33 }
  0x5a   :  { %v2368_v35 = vld.sshfl [vmem:[#allocation1] sm:$0xff pattern:$0x75316420]  ;;  %v2370_v36 = vld.sshfl [vmem:[#allocation1 + $0x8] sm:$0xff pattern:$0x75316420] }
  0x5b   :  { %3873 = vst [vmem:[#allocation2_spill] sm:$0xff] %v2368_v35 }
  0x5c   :  { %3874 = vst [vmem:[#allocation3_spill] sm:$0xff] %v2370_v36  ;;  %2195 = vset.pattern.permute.xlu1 %v2252_v37  ;;  %v2381_v41 = vpop.permute.xlu2 %196 }
  0x5d   :  { %874 = vst [vmem:[#allocation1] ss:$2 sm:$0xff] %v2315_v3  ;;  %2199 = vset.pattern.permute.xlu0 %v2253_v38  ;;  %2196 = vset.pattern.permute.xlu2 %v2254_v39 }
  0x5e   :  { %465 = vperm.xlu1 %2195, %v2310_v2   ;;  %558 = vperm.xlu0 %2199, %v2310_v2   ;;  %3875 = vst [vmem:[#allocation4_spill] sm:$0xff] %v2381_v41 }
  0x5f   :  { %492 = vperm.xlu2 %2196, %v2310_v2  }
  0x64   :  { %v2383_v42 = vld.sshfl [vmem:[#allocation1] sm:$0xff pattern:$0x75316420]  ;;  %v2385_v43 = vld.sshfl [vmem:[#allocation1 + $0x8] sm:$0xff pattern:$0x75316420] }
  0x65   :  { %3876 = vst [vmem:[#allocation5_spill] sm:$0xff] %v2383_v42  ;;  %v2393_v49 = vpop.permute.xlu2 %262 }
  0x66   :  { %3877 = vst [vmem:[#allocation6_spill] sm:$0xff] %v2385_v43  ;;  %2197 = vset.pattern.permute.xlu1 %v2255_v44  ;;  %2204 = vset.pattern.permute.xlu0 %v2256_v45  ;;  %v3891_v44 = vmov 0 }
  0x67   :  { %1168 = vst [vmem:[#allocation1] ss:$2 sm:$0xff] %v2379_v40  ;;  %2198 = vset.pattern.permute.xlu2 %v2257_v46  ;;  %514 = vperm.xlu1 %2197, %v2310_v2   ;;  %v3892_v44 = vsel %vm2460_vm7, 4294967295, %v3891_v44 }
  0x68   :  { %668 = vperm.xlu0 %2204, %v2310_v2   ;;  %536 = vperm.xlu2 %2198, %v2310_v2   ;;  %3893 = vst [vmem:[#allocation14_spill] sm:$0xff] %v3892_v44 }
  0x6e   :  { %v2391_v47 = vld.sshfl [vmem:[#allocation1] sm:$0xff pattern:$0x75316420]  ;;  %v1170_v48 = vld.sshfl [vmem:[#allocation1 + $0x8] sm:$0xff pattern:$0x75316420] }
  0x6f   :  { %1181 = vst [vmem:[#allocation1] ss:$2 sm:$0xff] %v2379_v40  ;;  %2200 = vset.pattern.permute.xlu1 %v3804_v50 }
  0x70   :  { %2209 = vset.pattern.permute.xlu0 %v3803_v51  ;;  %2201 = vset.pattern.permute.xlu2 %v3801_v52 }
  0x71   :  { %580 = vperm.xlu1 %2200, %v2310_v2   ;;  %783 = vperm.xlu0 %2209, %v2310_v2  }
  0x72   :  { %602 = vperm.xlu2 %2201, %v2310_v2  }
  0x74   :  { %v2412_v3 = vpop.permute.xlu1 %173 }
  0x75   :  { %3878 = vst [vmem:[#allocation7_spill] sm:$0xff] %v2412_v3 }
  0x76   :  { %v2402_v54 = vld.sshfl [vmem:[#allocation1] sm:$0xff pattern:$0x75316420]  ;;  %v2404_v55 = vld.sshfl [vmem:[#allocation1 + $0x8] sm:$0xff pattern:$0x75316420]  ;;  %v89_v57 = vpop.permute.xlu2 %88 }
  0x77   :  { %1192 = vst [vmem:[#allocation1] ss:$2 sm:$0xff] %v2379_v40  ;;  %v96_v34 = vsel %vm92_vm2, 0.0, %v89_v57 }
  0x78   :  { %v2467_v46 = vsel %vm2447_vm6, %v96_v34, 0.0 }
  0x79   :  { %2202 = vset.pattern.permute.xlu1 %v2261_v59  ;;  %2214 = vset.pattern.permute.xlu0 %v2262_v60 }
  0x7a   :  { %2203 = vset.pattern.permute.xlu2 %v2263_v61  ;;  %624 = vperm.xlu1 %2202, %v2310_v2  }
  0x7b   :  { %898 = vperm.xlu0 %2214, %v2310_v2   ;;  %646 = vperm.xlu2 %2203, %v2310_v2  }
  0x7d   :  { %v59_v7 = vpop.permute.xlu0 %58 }
  0x7e   :  { %v1193_v62 = vld.sshfl [vmem:[#allocation1] sm:$0xff pattern:$0x75316420]  ;;  %v2408_v63 = vld.sshfl [vmem:[#allocation1 + $0x8] sm:$0xff pattern:$0x75316420]  ;;  %v91_v9 = vpop.permute.xlu2 %90 }
  0x7f   :  { %1205 = vst [vmem:[#allocation1] ss:$2 sm:$0xff] %v2379_v40  ;;  %v66_v8 = vsel %vm62_vm0, 0.0, %v59_v7  ;;  %v93_v11 = vsel %vm92_vm2, %v89_v57, %v91_v9  ;;  %v270_v9 = vmul.f32 %v2351_v28, %v2393_v49 }
  0x80   :  { %v2422_v10 = vsel %vm2415_vm1, %v66_v8, 0.0  ;;  %v2478_v59 = vsel %vm2460_vm7, %v93_v11, 0.0 }
  0x81   :  { %3882 = vst [vmem:[#allocation9_spill] sm:$0xff] %v2422_v10  ;;  %v176_v12 = vmul.f32 %v2412_v3, %v2422_v10 }
  0x82   :  { %2205 = vset.pattern.permute.xlu1 %v2264_v15 }
  0x83   :  { %v179_v14 = vsel %vm178_vm3, %v176_v12, 0.0  ;;  %2206 = vset.pattern.permute.xlu2 %v2265_v18  ;;  %1173 = vrot.lane.b32.xlu0 %v1170_v48, %s2234_s22 }
  0x84   :  { %v180_v19 = vrot.slane %v179_v14, 4  ;;  %695 = vperm.xlu1 %2205, %v2310_v2   ;;  %717 = vperm.xlu2 %2206, %v2310_v2  }
  0x85   :  { %v61_v21 = vpop.permute.xlu0 %60  ;;  %v77_v23 = vpop.permute.xlu1 %76  ;;  %2223 = vset.pattern.permute.xlu0 %v2249_v32 }
  0x86   :  { %v2428_v16 = vld.sshfl [vmem:[#allocation1] sm:$0xff pattern:$0x75316420]  ;;  %v2430_v17 = vld.sshfl [vmem:[#allocation1 + $0x8] sm:$0xff pattern:$0x75316420]  ;;  %v181_v24 = vadd.f32 %v180_v19, %v179_v14  ;;  %v63_v25 = vsel %vm62_vm0, %v59_v7, %v61_v21  ;;  %v2445_v27 = vpop.permute.xlu2 %311 }
  0x87   :  { %1218 = vst [vmem:[#allocation1] ss:$2 sm:$0xff] %v2379_v40  ;;  %v2443_v26 = vsel %vm80_vm4, 0.0, %v77_v23  ;;  %v2454_v37 = vsel %vm2436_vm5, %v63_v25, 0.0  ;;  %v2267_v7 = vmov 34  }
  0x88   :  { %3886 = vst [vmem:[#allocation11_spill] sm:$0xff] %v2445_v27  ;;  %v199_v32 = vmul.f32 %v2381_v41, %v2443_v26  ;;  %v182_v38 = vrot.slane %v181_v24, 2  ;;  %v177_v39 = vmul.f32 %v2412_v3, %v2454_v37 }
  0x89   :  { %3890 = vst [vmem:[#allocation13_spill] sm:$0xff] %v2454_v37 }
  0x8a   :  { %v201_v45 = vsel %vm178_vm3, %v199_v32, 0.0  ;;  %v186_v48 = vsel %vm178_vm3, %v177_v39, 0.0  ;;  %v183_v58 = vadd.f32 %v182_v38, %v181_v24 }
  0x8b   :  { %v202_v53 = vrot.slane %v201_v45, 4  ;;  %1195 = vrot.lane.b32.xlu0 %v1193_v62, %s2239_s23  ;;  %v187_v60 = vrot.slane %v186_v48, 4 }
  0x8c   :  { %2207 = vset.pattern.permute.xlu1 %v2266_v6  ;;  %2208 = vset.pattern.permute.xlu2 %v2267_v7  ;;  %v184_v19 = vrot.slane %v183_v58, 1 }
  0x8d   :  { %v203_v61 = vadd.f32 %v202_v53, %v201_v45  ;;  %739 = vperm.xlu1 %2207, %v2310_v2   ;;  %761 = vperm.xlu2 %2208, %v2310_v2   ;;  %v2482_v8 = vpop.permute.xlu0 %218  ;;  %v79_v62 = vpop.permute.xlu1 %78  ;;  %v188_v12 = vadd.f32 %v187_v60, %v186_v48 }
  0x8e   :  { %v2470_v56 = vld.sshfl [vmem:[#allocation1] sm:$0xff pattern:$0x75316420]  ;;  %v2472_v57 = vld.sshfl [vmem:[#allocation1 + $0x8] sm:$0xff pattern:$0x75316420]  ;;  %v221_v11 = vmul.f32 %v2482_v8, %v2467_v46  ;;  %v2488_v14 = vpop.permute.xlu2 %120  ;;  %v222_v15 = vmul.f32 %v2482_v8, %v2478_v59  ;;  %v2493_v18 = vsel %vm80_vm4, %v77_v23, %v79_v62  ;;  %v271_v23 = vmul.f32 %v2353_v29, %v2393_v49 }
  0x8f   :  { %1231 = vst [vmem:[#allocation1] ss:$2 sm:$0xff] %v2379_v40  ;;  %v204_v13 = vrot.slane %v203_v61, 2  ;;  %v200_v28 = vmul.f32 %v2381_v41, %v2493_v18  ;;  %v189_v25 = vrot.slane %v188_v12, 2 }
  0x90   :  { %3894 = vst [vmem:[#allocation15_spill] sm:$0xff] %v2482_v8  ;;  %v223_v24 = vsel %vm178_vm3, %v221_v11, 0.0  ;;  %v230_v32 = vsel %vm178_vm3, %v222_v15, 0.0  ;;  %v3802_v15 = vmov 7  }
  0x91   :  { %v205_v21 = vadd.f32 %v204_v13, %v203_v61  ;;  %v224_v34 = vrot.slane %v223_v24, 4  ;;  %v231_v39 = vrot.slane %v230_v32, 4  ;;  %v208_v45 = vsel %vm178_vm3, %v200_v28, 0.0 }
  0x92   :  { %v185_v61 = vadd.f32 %v184_v19, %v183_v58  ;;  %v209_v62 = vrot.slane %v208_v45, 4  ;;  %v190_v13 = vadd.f32 %v189_v25, %v188_v12  ;;  %v2269_v28 = vmov 11  }
  0x93   :  { %v206_v38 = vrot.slane %v205_v21, 1  ;;  %v225_v60 = vadd.f32 %v224_v34, %v223_v24  ;;  %1210 = vrot.lane.b32.xlu0 %v2430_v17, %s2240_s24  ;;  %v232_v7 = vadd.f32 %v231_v39, %v230_v32  ;;  %v272_v24 = vsel %vm178_vm3, %v270_v9, 0.0 }
  0x94   :  { %v210_v52 = vadd.f32 %v209_v62, %v208_v45  ;;  %v279_v12 = vsel %vm178_vm3, %v271_v23, 0.0  ;;  %v191_v45 = vrot.slane %v190_v13, 1 }
  0x95   :  { %v207_v6 = vadd.f32 %v206_v38, %v205_v21  ;;  %v226_v11 = vrot.slane %v225_v60, 2  ;;  %2210 = vset.pattern.permute.xlu1 %v3802_v15  ;;  %2211 = vset.pattern.permute.xlu2 %v2269_v28  ;;  %v2508_v29 = vpop.permute.xlu1 %240  ;;  %v107_v4 = vpop.permute.xlu0 %106  ;;  %v233_v17 = vrot.slane %v232_v7, 2  ;;  %v280_v15 = vrot.slane %v279_v12, 4 }
  0x96   :  { %v1232_v48 = vld.sshfl [vmem:[#allocation1] sm:$0xff pattern:$0x75316420]  ;;  %v2502_v53 = vld.sshfl [vmem:[#allocation1 + $0x8] sm:$0xff pattern:$0x75316420]  ;;  %805 = vperm.xlu1 %2210, %v2310_v2   ;;  %827 = vperm.xlu2 %2211, %v2310_v2   ;;  %v2513_v58 = vpop.permute.xlu2 %136  ;;  %v192_v51 = vadd.f32 %v191_v45, %v190_v13 }
  0x97   :  { %1244 = vst [vmem:[#allocation1] ss:$2 sm:$0xff] %v2379_v40  ;;  %v215_v34 = vadd.f32 %v207_v6, %v185_v61  ;;  %v227_v19 = vadd.f32 %v226_v11, %v225_v60  ;;  %v114_v21 = vsel %vm110_vm8, 0.0, %v107_v4  ;;  %v142_v25 = vsel %vm138_vm9, %v2513_v58, 0.0 }
  0x98   :  { %3895 = vst [vmem:[#allocation16_spill] sm:$0xff] %v2508_v29  ;;  %v234_v32 = vadd.f32 %v233_v17, %v232_v7  ;;  %v211_v38 = vrot.slane %v210_v52, 2  ;;  %v2521_v9 = vsel %vm2415_vm1, %v114_v21, 0.0  ;;  %v2525_v39 = vsel %vm2436_vm5, %v142_v25, 0.0 }
  0x99   :  { %3896 = vst [vmem:[#allocation17_spill] sm:$0xff] %v2525_v39  ;;  %v228_v61 = vrot.slane %v227_v19, 1  ;;  %v243_v23 = vmul.f32 %v2508_v29, %v2521_v9  ;;  %v315_v62 = vmul.f32 %v2445_v27, %v2525_v39  ;;  %v273_v17 = vrot.slane %v272_v24, 4 }
  0x9a   :  { %v235_v60 = vrot.slane %v234_v32, 1  ;;  %v212_v6 = vadd.f32 %v211_v38, %v210_v52 }
  0x9b   :  { %v229_v28 = vadd.f32 %v228_v61, %v227_v19  ;;  %1234 = vrot.lane.b32.xlu0 %v1232_v48, %s2245_s26  ;;  %v245_v25 = vsel %vm178_vm3, %v243_v23, 0.0  ;;  %v323_v41 = vsel %vm178_vm3, %v315_v62, 0.0  ;;  %v2270_v19 = vmov 15  }
  0x9c   :  { %v213_v21 = vrot.slane %v212_v6, 1  ;;  %v246_v52 = vrot.slane %v245_v25, 4  ;;  %v236_v1 = vadd.f32 %v235_v60, %v234_v32  ;;  %v2271_v48 = vmov 19  }
  0x9d   :  { %v237_v50 = vadd.f32 %v229_v28, %v215_v34  ;;  %v109_v38 = vpop.permute.xlu1 %108  ;;  %v123_v0 = vpop.permute.xlu0 %122  ;;  %v274_v45 = vadd.f32 %v273_v17, %v272_v24  ;;  %v324_v28 = vrot.slane %v323_v41, 4 }
  0x9e   :  { %v2531_v7 = vld.sshfl [vmem:[#allocation1] sm:$0xff pattern:$0x75316420]  ;;  %v1246_v11 = vld.sshfl [vmem:[#allocation1 + $0x8] sm:$0xff pattern:$0x75316420]  ;;  %v214_v22 = vadd.f32 %v213_v21, %v212_v6  ;;  %2212 = vset.pattern.permute.xlu1 %v2270_v19  ;;  %2213 = vset.pattern.permute.xlu2 %v2271_v48  ;;  %v111_v61 = vsel %vm110_vm8, %v107_v4, %v109_v38  ;;  %v2538_v3 = vpop.permute.xlu2 %160  ;;  %v247_v23 = vadd.f32 %v246_v52, %v245_v25 }
  0x9f   :  { %1255 = vst [vmem:[#allocation1] ss:$2 sm:$0xff] %v2379_v40  ;;  %849 = vperm.xlu1 %2212, %v2310_v2   ;;  %871 = vperm.xlu2 %2213, %v2310_v2   ;;  %v2544_v13 = vsel %vm2436_vm5, %v111_v61, 0.0  ;;  %v125_v34 = vsel %vm124_vm10, %v2488_v14, %v123_v0  ;;  %v128_v32 = vsel %vm124_vm10, %v123_v0, 0.0  ;;  %v281_v6 = vadd.f32 %v280_v15, %v279_v12 }
  0xa0   :  { %v216_v60 = vadd.f32 %v214_v22, %v192_v51  ;;  %v244_v4 = vmul.f32 %v2508_v29, %v2544_v13  ;;  %v248_v62 = vrot.slane %v247_v23, 2  ;;  %v2554_v52 = vsel %vm2447_vm6, %v125_v34, 0.0 }
  0xa1   :  { %v2558_v14 = vsel %vm2460_vm7, %v128_v32, 0.0  ;;  %v275_v15 = vrot.slane %v274_v45, 2  ;;  %v282_v24 = vrot.slane %v281_v6, 2  ;;  %v325_v38 = vadd.f32 %v324_v28, %v323_v41 }
  0xa2   :  { %v238_v21 = vadd.f32 %v236_v1, %v216_v60  ;;  %v252_v25 = vsel %vm178_vm3, %v244_v4, 0.0  ;;  %v249_v51 = vadd.f32 %v248_v62, %v247_v23  ;;  %v2273_v32 = vmov 31  }
  0xa3   :  { %1249 = vrot.lane.b32.xlu0 %v1246_v11, %s2246_s27  ;;  %v253_v1 = vrot.slane %v252_v25, 4  ;;  %v2272_v11 = vmov 27   ;;  %v276_v4 = vadd.f32 %v275_v15, %v274_v45 }
  0xa4   :  { %v250_v12 = vrot.slane %v249_v51, 1 }
  0xa5   :  { %v2566_v17 = vpop.permute.xlu1 %289  ;;  %v254_v19 = vadd.f32 %v253_v1, %v252_v25  ;;  %v277_v8 = vrot.slane %v276_v4, 1 }
  0xa6   :  { %v2560_v0 = vld.sshfl [vmem:[#allocation1] sm:$0xff pattern:$0x75316420]  ;;  %v2562_v22 = vld.sshfl [vmem:[#allocation1 + $0x8] sm:$0xff pattern:$0x75316420]  ;;  %v292_v48 = vmul.f32 %v2566_v17, %v2554_v52  ;;  %v293_v61 = vmul.f32 %v2566_v17, %v2558_v14  ;;  %v2572_v34 = vpop.permute.xlu2 %377  ;;  %v251_v23 = vadd.f32 %v250_v12, %v249_v51  ;;  %v283_v12 = vadd.f32 %v282_v24, %v281_v6 }
  0xa7   :  { %3897 = vst [vmem:[#allocation18_spill] sm:$0xff] %v2560_v0  ;;  %2215 = vset.pattern.permute.xlu1 %v2272_v11  ;;  %2216 = vset.pattern.permute.xlu2 %v2273_v32  ;;  %v380_v60 = vmul.f32 %v2572_v34, %v2422_v10  ;;  %v255_v62 = vrot.slane %v254_v19, 2  ;;  %v326_v11 = vrot.slane %v325_v38, 2  ;;  %v278_v10 = vadd.f32 %v277_v8, %v276_v4 }
  0xa8   :  { %1340 = vst [vmem:[#allocation1] ss:$2 sm:$0xff] %v2379_v40  ;;  %v294_v41 = vsel %vm178_vm3, %v292_v48, 0.0  ;;  %v301_v28 = vsel %vm178_vm3, %v293_v61, 0.0  ;;  %920 = vperm.xlu1 %2215, %v2310_v2   ;;  %942 = vperm.xlu2 %2216, %v2310_v2   ;;  %v259_v25 = vadd.f32 %v251_v23, %v237_v50  ;;  %v381_v61 = vmul.f32 %v2572_v34, %v2454_v37 }
  0xa9   :  { %3898 = vst [vmem:[#allocation19_spill] sm:$0xff] %v2566_v17  ;;  %v295_v1 = vrot.slane %v294_v41, 4  ;;  %v302_v51 = vrot.slane %v301_v28, 4  ;;  %v256_v17 = vadd.f32 %v255_v62, %v254_v19  ;;  %v382_v32 = vsel %vm178_vm3, %v380_v60, 0.0 }
  0xaa   :  { %3899 = vst [vmem:[#allocation20_spill] sm:$0xff] %v2572_v34  ;;  %v383_v6 = vrot.slane %v382_v32, 4  ;;  %v284_v60 = vrot.slane %v283_v12, 1  ;;  %v389_v34 = vsel %vm178_vm3, %v381_v61, 0.0  ;;  %v2274_v37 = vmov 35  }
  0xab   :  { %v296_v45 = vadd.f32 %v295_v1, %v294_v41  ;;  %v303_v15 = vadd.f32 %v302_v51, %v301_v28  ;;  %v257_v48 = vrot.slane %v256_v17, 1  ;;  %v327_v28 = vadd.f32 %v326_v11, %v325_v38 }
  0xac   :  { %v390_v38 = vrot.slane %v389_v34, 4 }
  0xad   :  { %v297_v23 = vrot.slane %v296_v45, 2  ;;  %v304_v43 = vrot.slane %v303_v15, 2  ;;  %v135_v24 = vpop.permute.xlu1 %134  ;;  %v2585_v19 = vpop.permute.xlu0 %148  ;;  %v258_v41 = vadd.f32 %v257_v48, %v256_v17 }
  0xaf   :  { %v1341_v29 = vld.sshfl [vmem:[#allocation1] sm:$0xff pattern:$0x75316420]  ;;  %v1342_v20 = vld.sshfl [vmem:[#allocation1 + $0x8] sm:$0xff pattern:$0x75316420]  ;;  %v298_v1 = vadd.f32 %v297_v23, %v296_v45  ;;  %v305_v51 = vadd.f32 %v304_v43, %v303_v15  ;;  %v2588_v42 = vpop.permute.xlu2 %421  ;;  %v260_v36 = vadd.f32 %v258_v41, %v238_v21  ;;  %v285_v43 = vadd.f32 %v284_v60, %v283_v12 }
  0xb0   :  { %1507 = vst [vmem:[#allocation1] ss:$2 sm:$0xff] %v2379_v40  ;;  %v1345_v50 = vmul.f32 %v1341_v29, %v2393_v49  ;;  %v1346_v62 = vmul.f32 %v1342_v20, %v2393_v49  ;;  %v139_v29 = vsel %vm138_vm9, %v135_v24, %v2513_v58  ;;  %2217 = vset.pattern.permute.xlu1 %v2274_v37  ;;  %v3901_v58 = vmov 1  }
  0xb1   :  { %3900 = vst [vmem:[#allocation21_spill] sm:$0xff] %v2588_v42  ;;  %v299_v39 = vrot.slane %v298_v1, 1  ;;  %v306_v0 = vrot.slane %v305_v51, 1  ;;  %v384_v49 = vadd.f32 %v383_v6, %v382_v32  ;;  %1171 = vrot.lane.b32.xlu2 %v2391_v47, %s2234_s22  ;;  %964 = vperm.xlu1 %2217, %v2310_v2   ;;  %v2600_v8 = vsel %vm2415_vm1, %v139_v29, 0.0 }
  0xb2   :  { %v1347_v35 = vsel %vm178_vm3, %v1345_v50, 0.0  ;;  %v1354_v20 = vsel %vm178_vm3, %v1346_v62, 0.0  ;;  %2219 = vset.pattern.permute.xlu2 %v3901_v58  ;;  %v328_v37 = vrot.slane %v327_v28, 1  ;;  %v286_v21 = vadd.f32 %v278_v10, %v259_v25 }
  0xb3   :  { %v300_v17 = vadd.f32 %v299_v39, %v298_v1  ;;  %v1348_v4 = vrot.slane %v1347_v35, 4  ;;  %v307_v11 = vadd.f32 %v306_v0, %v305_v51  ;;  %v314_v47 = vmul.f32 %v2445_v27, %v2600_v8 }
  0xb4   :  { %v424_v2 = vmul.f32 %v2588_v42, %v2467_v46  ;;  %v1355_v12 = vrot.slane %v1354_v20, 4  ;;  %v385_v45 = vrot.slane %v384_v49, 2  ;;  %v287_v61 = vadd.f32 %v285_v43, %v260_v36 }
  0xb5   :  { %v2607_v32 = vadd.f32 %v300_v17, %v286_v21  ;;  %v151_v15 = vpop.permute.xlu1 %150  ;;  %v163_v48 = vpop.permute.xlu0 %162  ;;  %v316_v10 = vsel %vm178_vm3, %v314_v47, 0.0  ;;  %v425_v39 = vmul.f32 %v2588_v42, %v2478_v59  ;;  %v329_v25 = vadd.f32 %v328_v37, %v327_v28 }
  0xb6   :  { %v426_v0 = vsel %vm178_vm3, %v424_v2, 0.0  ;;  %v317_v50 = vrot.slane %v316_v10, 4  ;;  %v1349_v6 = vadd.f32 %v1348_v4, %v1347_v35  ;;  %v309_v24 = vadd.f32 %v307_v11, %v287_v61 }
  0xb7   :  { %v427_v23 = vrot.slane %v426_v0, 4  ;;  %v391_v60 = vadd.f32 %v390_v38, %v389_v34  ;;  %v433_v62 = vsel %vm178_vm3, %v425_v39, 0.0  ;;  %v1356_v41 = vadd.f32 %v1355_v12, %v1354_v20  ;;  %v2635_v58 = vld.sshfl [vmem:[#allocation1] sm:$0xff pattern:$0x75316420] }
  0xb8   :  { %v2614_v1 = vadd.f32 %v385_v45, %v384_v49  ;;  %v318_v36 = vadd.f32 %v317_v50, %v316_v10  ;;  %v434_v43 = vrot.slane %v433_v62, 4  ;;  %v165_v28 = vsel %vm164_vm12, %v2538_v3, %v163_v48  ;;  %v2641_v38 = vld.sshfl [vmem:[#allocation1 + $0x8] sm:$0xff pattern:$0x75316420] }
  0xb9   :  { %v428_v51 = vadd.f32 %v427_v23, %v426_v0  ;;  %1186 = vrot.lane.b32.xlu2 %v2404_v55, %s2237_s1  ;;  %v2618_v29 = vpop.permute.xlu2 %492  ;;  %v168_v35 = vsel %vm164_vm12, %v163_v48, 0.0  ;;  %1184 = vrot.lane.b32.xlu1 %v2402_v54, %s2237_s1  ;;  %v2629_v20 = vsel %vm2447_vm6, %v165_v28, 0.0  ;;  %v3905_v3 = vmov 0   ;;  %1674 = vst [vmem:[#allocation1] ss:$2 sm:$0xff] %v2379_v40 }
  0xba   :  { %3902 = vst [vmem:[#allocation22_spill] sm:$0xff] %v2618_v29  ;;  %v495_v34 = vmul.f32 %v2618_v29, %v2554_v52  ;;  %v319_v49 = vrot.slane %v318_v36, 2  ;;  %v2633_v55 = vsel %vm2460_vm7, %v168_v35, 0.0  ;;  %2218 = vset.pattern.permute.xlu1 %v3905_v3  ;;  %v1350_v37 = vrot.slane %v1349_v6, 2 }
  0xbb   :  { %3903 = vst [vmem:[#allocation23_spill] sm:$0xff] %v2629_v20  ;;  %v392_v21 = vrot.slane %v391_v60, 2  ;;  %v2639_v17 = vadd.f32 %v329_v25, %v309_v24  ;;  %v1357_v4 = vrot.slane %v1356_v41, 2  ;;  %v496_v47 = vmul.f32 %v2618_v29, %v2558_v14 }
  0xbc   :  { %3904 = vst [vmem:[#allocation24_spill] sm:$0xff] %v2633_v55  ;;  %v497_v54 = vsel %vm178_vm3, %v495_v34, 0.0  ;;  %v320_v11 = vadd.f32 %v319_v49, %v318_v36  ;;  %v387_v45 = vrot.slane %v2614_v1, 1  ;;  %v429_v48 = vrot.slane %v428_v51, 2 }
  0xbd   :  { %v2645_v2 = vpop.permute.xlu1 %355  ;;  %v2647_v12 = vpop.permute.xlu0 %333  ;;  %v435_v0 = vadd.f32 %v434_v43, %v433_v62  ;;  %v2657_v25 = vsel %vm152_vm11, %v2585_v19, %v151_v15  ;;  %v498_v50 = vrot.slane %v497_v54, 4  ;;  %v1351_v23 = vadd.f32 %v1350_v37, %v1349_v6 }
  0xbe   :  { %3906 = vst [vmem:[#allocation25_spill] sm:$0xff] %v2645_v2  ;;  %v358_v61 = vmul.f32 %v2645_v2, %v2629_v20  ;;  %v359_v10 = vmul.f32 %v2645_v2, %v2633_v55  ;;  %v321_v39 = vrot.slane %v320_v11, 1  ;;  %v393_v24 = vadd.f32 %v392_v21, %v391_v60 }
  0xbf   :  { %3907 = vst [vmem:[#allocation26_spill] sm:$0xff] %v2647_v12  ;;  %v336_v28 = vmul.f32 %v2647_v12, %v2657_v25  ;;  %v1358_v35 = vadd.f32 %v1357_v4, %v1356_v41  ;;  %v2663_v49 = vsel %vm152_vm11, %v151_v15, 0.0  ;;  %v504_v3 = vsel %vm178_vm3, %v496_v47, 0.0 }
  0xc0   :  { %v360_v36 = vsel %vm178_vm3, %v358_v61, 0.0  ;;  %v322_v34 = vadd.f32 %v321_v39, %v320_v11  ;;  %v430_v19 = vadd.f32 %v429_v48, %v428_v51  ;;  %v367_v6 = vsel %vm178_vm3, %v359_v10, 0.0 }
  0xc1   :  { %1208 = vrot.lane.b32.xlu2 %v2428_v16, %s2240_s24  ;;  %v361_v62 = vrot.slane %v360_v36, 4  ;;  %v337_v60 = vmul.f32 %v2647_v12, %v2663_v49  ;;  %1197 = vrot.lane.b32.xlu1 %v2408_v63, %s2239_s23  ;;  %v436_v43 = vrot.slane %v435_v0, 2  ;;  %v499_v15 = vadd.f32 %v498_v50, %v497_v54 }
  0xc2   :  { %v330_v41 = vadd.f32 %v322_v34, %v2607_v32  ;;  %v338_v37 = vsel %vm178_vm3, %v336_v28, 0.0  ;;  %v394_v21 = vrot.slane %v393_v24, 1  ;;  %v505_v4 = vrot.slane %v504_v3, 4  ;;  %v2681_v29 = vpop.permute.xlu2 %536 }
  0xc3   :  { %v362_v11 = vadd.f32 %v361_v62, %v360_v36  ;;  %v339_v16 = vrot.slane %v338_v37, 4  ;;  %v1352_v51 = vrot.slane %v1351_v23, 1  ;;  %v1359_v47 = vrot.slane %v1358_v35, 1 }
  0xc4   :  { %v368_v48 = vrot.slane %v367_v6, 4  ;;  %v345_v61 = vsel %vm178_vm3, %v337_v60, 0.0  ;;  %v431_v10 = vrot.slane %v430_v19, 1  ;;  %v2679_v32 = vadd.f32 %v387_v45, %v2614_v1 }
  0xc5   :  { %v363_v39 = vrot.slane %v362_v11, 2  ;;  %v340_v27 = vadd.f32 %v339_v16, %v338_v37  ;;  %v346_v2 = vrot.slane %v345_v61, 4  ;;  %v437_v54 = vadd.f32 %v436_v43, %v435_v0 }
  0xc6   :  { %v2676_v63 = vpop.permute.xlu1 %399  ;;  %v500_v50 = vrot.slane %v499_v15, 2  ;;  %v506_v28 = vadd.f32 %v505_v4, %v504_v3  ;;  %v2683_v44 = vadd.f32 %v1352_v51, %v1351_v23  ;;  %v2685_v60 = vadd.f32 %v394_v21, %v393_v24 }
  0xc7   :  { %3908 = vst [vmem:[#allocation27_spill] sm:$0xff] %v2676_v63  ;;  %v364_v34 = vadd.f32 %v363_v39, %v362_v11  ;;  %v341_v36 = vrot.slane %v340_v27, 2  ;;  %v347_v62 = vadd.f32 %v346_v2, %v345_v61  ;;  %v369_v12 = vadd.f32 %v368_v48, %v367_v6  ;;  %v2702_v4 = vpop.permute.xlu0 %443 }
  0xc8   :  { %3909 = vst [vmem:[#allocation28_spill] sm:$0xff] %v2683_v44  ;;  %v402_v1 = vmul.f32 %v2676_v63, %v2443_v26  ;;  %v2691_v45 = vadd.f32 %v1359_v47, %v1358_v35  ;;  %v2693_v0 = vadd.f32 %v431_v10, %v430_v19  ;;  %v438_v2 = vrot.slane %v437_v54, 1 }
  0xc9   :  { %1223 = vrot.lane.b32.xlu2 %v2472_v57, %s2241_s25  ;;  %v342_v3 = vadd.f32 %v341_v36, %v340_v27  ;;  %v348_v43 = vrot.slane %v347_v62, 2  ;;  %1221 = vrot.lane.b32.xlu1 %v2470_v56, %s2241_s25  ;;  %v365_v23 = vrot.slane %v364_v34, 1  ;;  %v403_v24 = vmul.f32 %v2676_v63, %v2493_v18  ;;  %3911 = vst [vmem:[#allocation30_spill] sm:$0xff] %v2702_v4 }
  0xca   :  { %3910 = vst [vmem:[#allocation29_spill] sm:$0xff] %v2691_v45  ;;  %v404_v6 = vsel %vm178_vm3, %v402_v1, 0.0  ;;  %v2700_v57 = vadd.f32 %v500_v50, %v499_v15  ;;  %v507_v37 = vrot.slane %v506_v28, 2  ;;  %v370_v19 = vrot.slane %v369_v12, 2 }
  0xcb   :  { %v343_v21 = vrot.slane %v342_v3, 1  ;;  %v349_v35 = vadd.f32 %v348_v43, %v347_v62  ;;  %v539_v27 = vmul.f32 %v2681_v29, %v2657_v25  ;;  %v405_v11 = vrot.slane %v404_v6, 4 }
  0xcc   :  { %v411_v56 = vsel %vm178_vm3, %v403_v24, 0.0  ;;  %v446_v48 = vmul.f32 %v2702_v4, %v2521_v9  ;;  %v366_v15 = vadd.f32 %v365_v23, %v364_v34  ;;  %v540_v61 = vmul.f32 %v2681_v29, %v2663_v49 }
  0xcd   :  { %v344_v16 = vadd.f32 %v343_v21, %v342_v3  ;;  %v350_v51 = vrot.slane %v349_v35, 1  ;;  %v412_v47 = vrot.slane %v411_v56, 4  ;;  %v406_v10 = vadd.f32 %v405_v11, %v404_v6 }
  0xce   :  { %v447_v39 = vmul.f32 %v2702_v4, %v2544_v13  ;;  %v448_v1 = vsel %vm178_vm3, %v446_v48, 0.0  ;;  %v439_v43 = vadd.f32 %v438_v2, %v437_v54  ;;  %v541_v3 = vsel %vm178_vm3, %v539_v27, 0.0 }
  0xcf   :  { %v351_v50 = vadd.f32 %v350_v51, %v349_v35  ;;  %v352_v36 = vadd.f32 %v344_v16, %v330_v41  ;;  %v413_v62 = vadd.f32 %v412_v47, %v411_v56  ;;  %v407_v24 = vrot.slane %v406_v10, 2  ;;  %v2723_v41 = vpop.permute.xlu2 %602 }
  0xd0   :  { %v449_v21 = vrot.slane %v448_v1, 4  ;;  %v455_v35 = vsel %vm178_vm3, %v447_v39, 0.0  ;;  %3912 = vst [vmem:[#allocation31_spill] sm:$0xff] %v2723_v41  ;;  %v502_v54 = vrot.slane %v2700_v57, 1  ;;  %v2728_v2 = vadd.f32 %v370_v19, %v369_v12 }
  0xd1   :  { %1247 = vrot.lane.b32.xlu2 %v2531_v7, %s2246_s27  ;;  %v2718_v34 = vadd.f32 %v351_v50, %v2639_v17  ;;  %v2720_v23 = vadd.f32 %v366_v15, %v352_v36  ;;  %v414_v6 = vrot.slane %v413_v62, 2  ;;  %1236 = vrot.lane.b32.xlu1 %v2502_v53, %s2245_s26  ;;  %v408_v27 = vadd.f32 %v407_v24, %v406_v10  ;;  %v466_v7 = vpop.permute.xlu1 %465 }
  0xd2   :  { %v450_v11 = vadd.f32 %v449_v21, %v448_v1  ;;  %v542_v56 = vrot.slane %v541_v3, 4  ;;  %v548_v17 = vsel %vm178_vm3, %v540_v61, 0.0  ;;  %v456_v51 = vrot.slane %v455_v35, 4 }
  0xd3   :  { %v415_v16 = vadd.f32 %v414_v6, %v413_v62  ;;  %v2731_v47 = vadd.f32 %v507_v37, %v506_v28  ;;  %v409_v48 = vrot.slane %v408_v27, 1  ;;  %v605_v39 = vmul.f32 %v2723_v41, %v2443_v26 }
  0xd4   :  { %v451_v15 = vrot.slane %v450_v11, 2  ;;  %v457_v50 = vadd.f32 %v456_v51, %v455_v35  ;;  %v606_v12 = vmul.f32 %v2723_v41, %v2493_v18  ;;  %v473_v19 = vmul.f32 %v2359_v30, %v466_v7 }
  0xd5   :  { %v416_v53 = vrot.slane %v415_v16, 1  ;;  %v549_v36 = vrot.slane %v548_v17, 4  ;;  %v410_v61 = vadd.f32 %v409_v48, %v408_v27  ;;  %v543_v1 = vadd.f32 %v542_v56, %v541_v3 }
  0xd6   :  { %v452_v62 = vadd.f32 %v451_v15, %v450_v11  ;;  %v458_v37 = vrot.slane %v457_v50, 2  ;;  %v474_v24 = vmul.f32 %v2361_v31, %v466_v7  ;;  %v607_v35 = vsel %vm178_vm3, %v605_v39, 0.0  ;;  %v3913_v11 = vld [vmem:[#allocation18_spill] sm:$0xff] }
  0xd7   :  { %v417_v28 = vadd.f32 %v416_v53, %v415_v16  ;;  %v418_v21 = vadd.f32 %v410_v61, %v2679_v32  ;;  %v475_v51 = vsel %vm178_vm3, %v473_v19, 0.0  ;;  %v614_v27 = vsel %vm178_vm3, %v606_v12, 0.0 }
  0xd8   :  { %v453_v6 = vrot.slane %v452_v62, 1  ;;  %v459_v10 = vadd.f32 %v458_v37, %v457_v50  ;;  %v476_v3 = vrot.slane %v475_v51, 4  ;;  %v550_v31 = vadd.f32 %v549_v36, %v548_v17 }
  0xd9   :  { %1260 = vrot.lane.b32.xlu2 %v2562_v22, %s2248_s28  ;;  %v419_v30 = vadd.f32 %v417_v28, %v2685_v60  ;;  %1258 = vrot.lane.b32.xlu1 %v3913_v11, %s2248_s28  ;;  %v440_v32 = vadd.f32 %v2693_v0, %v418_v21  ;;  %v482_v16 = vsel %vm178_vm3, %v474_v24, 0.0  ;;  %v608_v39 = vrot.slane %v607_v35, 4  ;;  %v2751_v22 = vpop.permute.xlu0 %558 }
  0xda   :  { %v454_v56 = vadd.f32 %v453_v6, %v452_v62  ;;  %v460_v15 = vrot.slane %v459_v10, 1  ;;  %v477_v53 = vadd.f32 %v476_v3, %v475_v51  ;;  %3914 = vst [vmem:[#allocation18_spill] sm:$0xff] %v2751_v22  ;;  %v615_v50 = vrot.slane %v614_v27, 4 }
  0xdb   :  { %v441_v48 = vadd.f32 %v439_v43, %v419_v30  ;;  %v483_v19 = vrot.slane %v482_v16, 4  ;;  %v1512_v12 = vmul.f32 %v2635_v58, %v466_v7  ;;  %v544_v61 = vrot.slane %v543_v1, 2  ;;  %v2758_v30 = vpop.permute.xlu2 %646 }
  0xdc   :  { %v462_v60 = vadd.f32 %v454_v56, %v440_v32  ;;  %v461_v28 = vadd.f32 %v460_v15, %v459_v10  ;;  %v478_v37 = vrot.slane %v477_v53, 2  ;;  %v1513_v17 = vmul.f32 %v2641_v38, %v466_v7  ;;  %3915 = vst [vmem:[#allocation32_spill] sm:$0xff] %v2758_v30 }
  0xdd   :  { %v551_v0 = vrot.slane %v550_v31, 2  ;;  %v484_v36 = vadd.f32 %v483_v19, %v482_v16  ;;  %v1514_v62 = vsel %vm178_vm3, %v1512_v12, 0.0  ;;  %v561_v43 = vmul.f32 %v2751_v22, %v2629_v20  ;;  %v2763_v16 = vld.sshfl [vmem:[#allocation1] sm:$0xff pattern:$0x75316420] }
  0xde   :  { %v463_v24 = vadd.f32 %v461_v28, %v441_v48  ;;  %v609_v21 = vadd.f32 %v608_v39, %v607_v35  ;;  %v479_v6 = vadd.f32 %v478_v37, %v477_v53  ;;  %v1515_v51 = vrot.slane %v1514_v62, 4  ;;  %v2769_v39 = vld.sshfl [vmem:[#allocation1 + $0x8] sm:$0xff pattern:$0x75316420] }
  0xdf   :  { %v616_v3 = vadd.f32 %v615_v50, %v614_v27  ;;  %v485_v58 = vrot.slane %v484_v36, 2  ;;  %v1521_v10 = vsel %vm178_vm3, %v1513_v17, 0.0  ;;  %v562_v38 = vmul.f32 %v2751_v22, %v2633_v55  ;;  %1841 = vst [vmem:[#allocation1] ss:$2 sm:$0xff] %v2379_v40 }
  0xe0   :  { %v545_v7 = vadd.f32 %v544_v61, %v543_v1  ;;  %v480_v11 = vrot.slane %v479_v6, 1  ;;  %v1516_v32 = vadd.f32 %v1515_v51, %v1514_v62  ;;  %v1522_v56 = vrot.slane %v1521_v10, 4 }
  0xe1   :  { %v486_v15 = vadd.f32 %v485_v58, %v484_v36  ;;  %v563_v35 = vsel %vm178_vm3, %v561_v43, 0.0  ;;  %v570_v48 = vsel %vm178_vm3, %v562_v38, 0.0  ;;  %v649_v27 = vmul.f32 %v2758_v30, %v2521_v9 }
  0xe2   :  { %v552_v53 = vadd.f32 %v551_v0, %v550_v31  ;;  %v610_v50 = vrot.slane %v609_v21, 2  ;;  %v481_v19 = vadd.f32 %v480_v11, %v479_v6  ;;  %v564_v12 = vrot.slane %v563_v35, 4 }
  0xe3   :  { %v617_v1 = vrot.slane %v616_v3, 2  ;;  %v487_v61 = vrot.slane %v486_v15, 1  ;;  %v571_v28 = vrot.slane %v570_v48, 4  ;;  %v650_v37 = vmul.f32 %v2758_v30, %v2544_v13 }
  0xe4   :  { %v509_v17 = vrot.slane %v2731_v47, 1  ;;  %v546_v36 = vrot.slane %v545_v7, 1  ;;  %v1517_v62 = vrot.slane %v1516_v32, 2  ;;  %v1523_v43 = vadd.f32 %v1522_v56, %v1521_v10 }
  0xe5   :  { %v488_v51 = vadd.f32 %v487_v61, %v486_v15  ;;  %v489_v58 = vadd.f32 %v481_v19, %v462_v60  ;;  %v565_v38 = vadd.f32 %v564_v12, %v563_v35  ;;  %v651_v31 = vsel %vm178_vm3, %v649_v27, 0.0  ;;  %v2785_v60 = vpop.permute.xlu1 %514  ;;  %v3918_v12 = vld [vmem:[#allocation17_spill] sm:$0xff] }
  0xe6   :  { %v503_v40 = vadd.f32 %v502_v54, %v2700_v57  ;;  %v3916_v0 = vrot.slane %v2728_v2, 1  ;;  %v553_v11 = vrot.slane %v552_v53, 1  ;;  %v611_v45 = vadd.f32 %v610_v50, %v609_v21  ;;  %3917 = vst [vmem:[#allocation33_spill] sm:$0xff] %v2785_v60 }
  0xe7   :  { %v618_v44 = vadd.f32 %v617_v1, %v616_v3  ;;  %v2782_v22 = vadd.f32 %v488_v51, %v463_v24  ;;  %v572_v41 = vadd.f32 %v571_v28, %v570_v48  ;;  %v658_v10 = vsel %vm178_vm3, %v650_v37, 0.0  ;;  %v3919_v1 = vld [vmem:[#allocation2_spill] sm:$0xff] }
  0xe8   :  { %v373_v6 = vadd.f32 %v3916_v0, %v2728_v2  ;;  %v2788_v56 = vadd.f32 %v509_v17, %v2731_v47  ;;  %v2790_v15 = vadd.f32 %v546_v36, %v545_v7  ;;  %v1518_v57 = vadd.f32 %v1517_v62, %v1516_v32  ;;  %v669_v47 = vpop.permute.xlu0 %668  ;;  %v3920_v17 = vld [vmem:[#allocation3_spill] sm:$0xff] }
  0xe9   :  { %v652_v54 = vrot.slane %v651_v31, 4  ;;  %v1524_v2 = vrot.slane %v1523_v43, 2  ;;  %v566_v21 = vrot.slane %v565_v38, 2  ;;  %v2795_v3 = vadd.f32 %v503_v40, %v489_v58 }
  0xea   :  { %v2793_v35 = vadd.f32 %v373_v6, %v2718_v34  ;;  %v2797_v24 = vadd.f32 %v553_v11, %v552_v53  ;;  %v612_v48 = vrot.slane %v611_v45, 1  ;;  %v659_v27 = vrot.slane %v658_v10, 4 }
  0xeb   :  { %v517_v50 = vmul.f32 %v2785_v60, %v2600_v8  ;;  %v619_v19 = vrot.slane %v618_v44, 1  ;;  %v573_v7 = vrot.slane %v572_v41, 2  ;;  %v518_v32 = vmul.f32 %v2785_v60, %v3918_v12 }
  0xec   :  { %v676_v34 = vmul.f32 %v3919_v1, %v669_v47  ;;  %v1519_v61 = vrot.slane %v1518_v57, 1  ;;  %v653_v28 = vadd.f32 %v652_v54, %v651_v31  ;;  %v677_v53 = vmul.f32 %v3920_v17, %v669_v47 }
  0xed   :  { %v519_v37 = vsel %vm178_vm3, %v517_v50, 0.0  ;;  %v1525_v36 = vadd.f32 %v1524_v2, %v1523_v43  ;;  %v567_v62 = vadd.f32 %v566_v21, %v565_v38  ;;  %v526_v58 = vsel %vm178_vm3, %v518_v32, 0.0 }
  0xee   :  { %v520_v51 = vrot.slane %v519_v37, 4  ;;  %v660_v40 = vadd.f32 %v659_v27, %v658_v10  ;;  %v527_v0 = vrot.slane %v526_v58, 4  ;;  %v678_v6 = vsel %vm178_vm3, %v676_v34, 0.0 }
  0xef   :  { %v685_v11 = vsel %vm178_vm3, %v677_v53, 0.0  ;;  %v574_v60 = vadd.f32 %v573_v7, %v572_v41  ;;  %v679_v1 = vrot.slane %v678_v6, 4  ;;  %v654_v31 = vrot.slane %v653_v28, 2  ;;  %v2817_v7 = vpop.permute.xlu2 %717 }
  0xf0   :  { %v521_v63 = vadd.f32 %v520_v51, %v519_v37  ;;  %v686_v30 = vrot.slane %v685_v11, 4  ;;  %v528_v54 = vadd.f32 %v527_v0, %v526_v58  ;;  %v1679_v50 = vmul.f32 %v2763_v16, %v669_v47  ;;  %3922 = vst [vmem:[#allocation3_spill] sm:$0xff] %v2817_v7 }
  0xf1   :  { %v1680_v43 = vmul.f32 %v2769_v39, %v669_v47  ;;  %v2811_v38 = vadd.f32 %v612_v48, %v611_v45  ;;  %v2813_v2 = vadd.f32 %v619_v19, %v618_v44  ;;  %v680_v21 = vadd.f32 %v679_v1, %v678_v6 }
  0xf2   :  { %v522_v10 = vrot.slane %v521_v63, 2  ;;  %v2815_v27 = vadd.f32 %v1519_v61, %v1518_v57  ;;  %v1526_v32 = vrot.slane %v1525_v36, 1  ;;  %v529_v34 = vrot.slane %v528_v54, 2  ;;  %v2825_v61 = vpop.permute.xlu1 %580 }
  0xf3   :  { %v687_v41 = vadd.f32 %v686_v30, %v685_v11  ;;  %v661_v37 = vrot.slane %v660_v40, 2  ;;  %v1681_v53 = vsel %vm178_vm3, %v1679_v50, 0.0  ;;  %v1688_v16 = vsel %vm178_vm3, %v1680_v43, 0.0 }
  0xf4   :  { %3921 = vst [vmem:[#allocation2_spill] sm:$0xff] %v2815_v27  ;;  %v523_v17 = vadd.f32 %v522_v10, %v521_v63  ;;  %v568_v39 = vrot.slane %v567_v62, 1  ;;  %v575_v45 = vrot.slane %v574_v60, 1  ;;  %v655_v48 = vadd.f32 %v654_v31, %v653_v28 }
  0xf5   :  { %v530_v44 = vadd.f32 %v529_v34, %v528_v54  ;;  %v681_v19 = vrot.slane %v680_v21, 2  ;;  %v720_v57 = vmul.f32 %v2817_v7, %v2600_v8  ;;  %v721_v30 = vmul.f32 %v2817_v7, %v3918_v12 }
  0xf6   :  { %v524_v47 = vrot.slane %v523_v17, 1  ;;  %v688_v51 = vrot.slane %v687_v41, 2  ;;  %v1682_v58 = vrot.slane %v1681_v53, 4  ;;  %v1689_v0 = vrot.slane %v1688_v16, 4 }
  0xf7   :  { %v531_v63 = vrot.slane %v530_v44, 1  ;;  %v2827_v6 = vadd.f32 %v1526_v32, %v1525_v36  ;;  %v662_v11 = vadd.f32 %v661_v37, %v660_v40  ;;  %v512_v28 = vadd.f32 %v2788_v56, %v2782_v22  ;;  %v3924_v22 = vld [vmem:[#allocation9_spill] sm:$0xff] }
  0xf8   :  { %v525_v1 = vadd.f32 %v524_v47, %v523_v17  ;;  %v569_v31 = vadd.f32 %v568_v39, %v567_v62  ;;  %v576_v54 = vadd.f32 %v575_v45, %v574_v60  ;;  %v656_v50 = vrot.slane %v655_v48, 1  ;;  %v3925_v60 = vld [vmem:[#allocation13_spill] sm:$0xff]  ;;  %v2842_v45 = vpop.permute.xlu0 %783 }
  0xf9   :  { %3923 = vst [vmem:[#allocation34_spill] sm:$0xff] %v2827_v6  ;;  %v532_v43 = vadd.f32 %v531_v63, %v530_v44  ;;  %v682_v34 = vadd.f32 %v681_v19, %v680_v21  ;;  %v722_v7 = vsel %vm178_vm3, %v720_v57, 0.0  ;;  %v729_v27 = vsel %vm178_vm3, %v721_v30, 0.0 }
  0xfa   :  { %v533_v10 = vadd.f32 %v525_v1, %v2795_v3  ;;  %v689_v12 = vadd.f32 %v688_v51, %v687_v41  ;;  %v1683_v36 = vadd.f32 %v1682_v58, %v1681_v53  ;;  %v1690_v32 = vadd.f32 %v1689_v0, %v1688_v16  ;;  %v2852_v63 = vpop.permute.xlu1 %624  ;;  %v2862_v1 = vpop.permute.xlu2 %761 }
  0xfb   :  { %v534_v4 = vadd.f32 %v532_v43, %v512_v28  ;;  %v663_v40 = vrot.slane %v662_v11, 1  ;;  %v583_v56 = vmul.f32 %v2825_v61, %v3924_v22  ;;  %v584_v62 = vmul.f32 %v2825_v61, %v3925_v60  ;;  %3926 = vst [vmem:[#allocation9_spill] sm:$0xff] %v2852_v63 }
  0xfc   :  { %v555_v37 = vadd.f32 %v2790_v15, %v533_v10  ;;  %v2839_v17 = vadd.f32 %v656_v50, %v655_v48  ;;  %v723_v21 = vrot.slane %v722_v7, 4  ;;  %v730_v39 = vrot.slane %v729_v27, 4  ;;  %3927 = vst [vmem:[#allocation13_spill] sm:$0xff] %v2862_v1 }
  0xfd   :  { %v556_v3 = vadd.f32 %v2797_v24, %v534_v4  ;;  %v683_v53 = vrot.slane %v682_v34, 1  ;;  %v585_v16 = vsel %vm178_vm3, %v583_v56, 0.0  ;;  %v592_v15 = vsel %vm178_vm3, %v584_v62, 0.0 }
  0xfe   :  { %v577_v41 = vadd.f32 %v569_v31, %v555_v37  ;;  %v690_v47 = vrot.slane %v689_v12, 1  ;;  %v1684_v19 = vrot.slane %v1683_v36, 2  ;;  %v1691_v57 = vrot.slane %v1690_v32, 2 }
  0xff   :  { %v578_v44 = vadd.f32 %v576_v54, %v556_v3  ;;  %v586_v30 = vrot.slane %v585_v16, 4  ;;  %v593_v4 = vrot.slane %v592_v15, 4  ;;  %v786_v24 = vmul.f32 %v2842_v45, %v3924_v22 }
 0x100   :  { %v2848_v48 = vsel %vm985_vm13, %v2720_v23, %v577_v41  ;;  %v2854_v51 = vadd.f32 %v663_v40, %v662_v11  ;;  %v724_v0 = vadd.f32 %v723_v21, %v722_v7  ;;  %v787_v28 = vmul.f32 %v2842_v45, %v3925_v60 }
 0x101   :  { %v2858_v58 = vsel %vm985_vm13, %v2793_v35, %v578_v44  ;;  %v2864_v23 = vadd.f32 %v683_v53, %v682_v34  ;;  %v731_v31 = vadd.f32 %v730_v39, %v729_v27  ;;  %v587_v54 = vadd.f32 %v586_v30, %v585_v16 }
 0x102   :  { %v594_v50 = vadd.f32 %v593_v4, %v592_v15  ;;  %v1685_v43 = vadd.f32 %v1684_v19, %v1683_v36  ;;  %v1692_v10 = vadd.f32 %v1691_v57, %v1690_v32  ;;  %v788_v11 = vsel %vm178_vm3, %v786_v24, 0.0  ;;  %v2892_v6 = vpop.permute.xlu2 %827 }
 0x103   :  { %v627_v40 = vmul.f32 %v2852_v63, %v2467_v46  ;;  %v2869_v35 = vadd.f32 %v690_v47, %v689_v12  ;;  %v588_v7 = vrot.slane %v587_v54, 2  ;;  %v764_v22 = vmul.f32 %v2862_v1, %v2629_v20  ;;  %3930 = vst [vmem:[#allocation37_spill] sm:$0xff] %v2892_v6 }
 0x104   :  { %v595_v37 = vrot.slane %v594_v50, 2  ;;  %v725_v56 = vrot.slane %v724_v0, 2  ;;  %v795_v34 = vsel %vm178_vm3, %v787_v28, 0.0  ;;  %v765_v27 = vmul.f32 %v2862_v1, %v2633_v55 }
 0x105   :  { %v628_v36 = vmul.f32 %v2852_v63, %v2478_v59  ;;  %v732_v32 = vrot.slane %v731_v31, 2  ;;  %v589_v60 = vadd.f32 %v588_v7, %v587_v54  ;;  %v789_v3 = vrot.slane %v788_v11, 4 }
 0x106   :  { %v596_v62 = vadd.f32 %v595_v37, %v594_v50  ;;  %v1686_v12 = vrot.slane %v1685_v43, 1  ;;  %v1693_v21 = vrot.slane %v1692_v10, 1  ;;  %v629_v39 = vsel %vm178_vm3, %v627_v40, 0.0  ;;  %v2886_v50 = vpop.permute.xlu0 %898 }
 0x107   :  { %v636_v41 = vsel %vm178_vm3, %v628_v36, 0.0  ;;  %v590_v53 = vrot.slane %v589_v60, 1  ;;  %v796_v15 = vrot.slane %v795_v34, 4  ;;  %v766_v44 = vsel %vm178_vm3, %v764_v22, 0.0  ;;  %3928 = vst [vmem:[#allocation35_spill] sm:$0xff] %v2886_v50 }
 0x108   :  { %v597_v16 = vrot.slane %v596_v62, 1  ;;  %v2881_v47 = vadd.f32 %v725_v56, %v724_v0  ;;  %v773_v19 = vsel %vm178_vm3, %v765_v27, 0.0  ;;  %v630_v57 = vrot.slane %v629_v39, 4 }
 0x109   :  { %v637_v30 = vrot.slane %v636_v41, 4  ;;  %v2884_v4 = vadd.f32 %v732_v32, %v731_v31  ;;  %v591_v24 = vadd.f32 %v590_v53, %v589_v60  ;;  %v790_v54 = vadd.f32 %v789_v3, %v788_v11 }
 0x10a   :  { %v598_v28 = vadd.f32 %v597_v16, %v596_v62  ;;  %v2888_v40 = vadd.f32 %v1686_v12, %v1685_v43  ;;  %v767_v7 = vrot.slane %v766_v44, 4  ;;  %v631_v37 = vadd.f32 %v630_v57, %v629_v39 }
 0x10b   :  { %v638_v36 = vadd.f32 %v637_v30, %v636_v41  ;;  %v621_v22 = vadd.f32 %v2811_v38, %v591_v24  ;;  %v797_v56 = vadd.f32 %v796_v15, %v795_v34  ;;  %v774_v27 = vrot.slane %v773_v19, 4 }
 0x10c   :  { %3929 = vst [vmem:[#allocation36_spill] sm:$0xff] %v2888_v40  ;;  %v622_v0 = vadd.f32 %v2813_v2, %v598_v28  ;;  %v2894_v31 = vadd.f32 %v1693_v21, %v1692_v10  ;;  %v727_v32 = vrot.slane %v2881_v47, 1  ;;  %v632_v11 = vrot.slane %v631_v37, 2  ;;  %v2904_v21 = vpop.permute.xlu1 %695 }
 0x10d   :  { %v639_v60 = vrot.slane %v638_v36, 2  ;;  %v734_v43 = vrot.slane %v2884_v4, 1  ;;  %v791_v62 = vrot.slane %v790_v54, 2  ;;  %v901_v3 = vmul.f32 %v2886_v50, %v2554_v52  ;;  %3932 = vst [vmem:[#allocation39_spill] sm:$0xff] %v2904_v21 }
 0x10e   :  { %3931 = vst [vmem:[#allocation38_spill] sm:$0xff] %v2894_v31  ;;  %v902_v38 = vmul.f32 %v2886_v50, %v2558_v14  ;;  %v768_v2 = vadd.f32 %v767_v7, %v766_v44  ;;  %v633_v34 = vadd.f32 %v632_v11, %v631_v37  ;;  %v830_v10 = vmul.f32 %v2892_v6, %v2467_v46 }
 0x10f   :  { %v640_v12 = vadd.f32 %v639_v60, %v638_v36  ;;  %v798_v39 = vrot.slane %v797_v56, 2  ;;  %v775_v41 = vadd.f32 %v774_v27, %v773_v19  ;;  %v903_v53 = vsel %vm178_vm3, %v901_v3, 0.0  ;;  %v2915_v3 = vpop.permute.xlu0 %1173 }
 0x110   :  { %v910_v16 = vsel %vm178_vm3, %v902_v38, 0.0  ;;  %v634_v15 = vrot.slane %v633_v34, 1  ;;  %v904_v30 = vrot.slane %v903_v53, 4  ;;  %v831_v24 = vmul.f32 %v2892_v6, %v2478_v59 }
 0x111   :  { %v641_v57 = vrot.slane %v640_v12, 1  ;;  %v911_v44 = vrot.slane %v910_v16, 4  ;;  %v832_v28 = vsel %vm178_vm3, %v830_v10, 0.0  ;;  %v698_v46 = vmul.f32 %v2904_v21, %v2554_v52 }
 0x112   :  { %v699_v7 = vmul.f32 %v2904_v21, %v2558_v14  ;;  %v792_v19 = vadd.f32 %v791_v62, %v790_v54  ;;  %v769_v37 = vrot.slane %v768_v2, 2  ;;  %v635_v36 = vadd.f32 %v634_v15, %v633_v34 }
 0x113   :  { %v642_v27 = vadd.f32 %v641_v57, %v640_v12  ;;  %v799_v11 = vadd.f32 %v798_v39, %v797_v56  ;;  %v833_v60 = vrot.slane %v832_v28, 4  ;;  %v700_v38 = vsel %vm178_vm3, %v698_v46, 0.0 }
 0x114   :  { %v707_v59 = vsel %vm178_vm3, %v699_v7, 0.0  ;;  %v776_v31 = vrot.slane %v775_v41, 2  ;;  %v643_v10 = vadd.f32 %v635_v36, %v621_v22  ;;  %v839_v52 = vsel %vm178_vm3, %v831_v24, 0.0  ;;  %v1842_v7 = vld.sshfl [vmem:[#allocation1] sm:$0xff pattern:$0x75316420] }
 0x115   :  { %v644_v40 = vadd.f32 %v642_v27, %v622_v0  ;;  %v905_v1 = vadd.f32 %v904_v30, %v903_v53  ;;  %v912_v55 = vadd.f32 %v911_v44, %v910_v16  ;;  %v701_v14 = vrot.slane %v700_v38, 4  ;;  %v1843_v30 = vld.sshfl [vmem:[#allocation1 + $0x8] sm:$0xff pattern:$0x75316420] }
 0x116   :  { %v708_v54 = vrot.slane %v707_v59, 4  ;;  %v793_v62 = vrot.slane %v792_v19, 1  ;;  %v2920_v34 = vadd.f32 %v769_v37, %v768_v2  ;;  %v665_v56 = vadd.f32 %v2839_v17, %v643_v10  ;;  %v872_v37 = vpop.permute.xlu2 %871  ;;  %v3934_v27 = vld [vmem:[#allocation6_spill] sm:$0xff] }
 0x117   :  { %v666_v12 = vadd.f32 %v2854_v51, %v644_v40  ;;  %v834_v39 = vadd.f32 %v833_v60, %v832_v28  ;;  %v840_v15 = vrot.slane %v839_v52, 4  ;;  %v702_v57 = vadd.f32 %v701_v14, %v700_v38  ;;  %v3933_v28 = vld [vmem:[#allocation5_spill] sm:$0xff] }
 0x118   :  { %v709_v46 = vadd.f32 %v708_v54, %v707_v59  ;;  %v2925_v22 = vadd.f32 %v727_v32, %v2881_v47  ;;  %v2928_v0 = vadd.f32 %v734_v43, %v2884_v4  ;;  %v800_v53 = vrot.slane %v799_v11, 1 }
 0x119   :  { %v777_v16 = vadd.f32 %v776_v31, %v775_v41  ;;  %v906_v2 = vrot.slane %v905_v1, 2  ;;  %v913_v24 = vrot.slane %v912_v55, 2  ;;  %v703_v44 = vrot.slane %v702_v57, 2 }
 0x11a   :  { %v710_v17 = vrot.slane %v709_v46, 2  ;;  %v2930_v51 = vadd.f32 %v793_v62, %v792_v19  ;;  %v771_v40 = vrot.slane %v2920_v34, 1  ;;  %v879_v36 = vmul.f32 %v3933_v28, %v872_v37  ;;  %v2937_v62 = vpop.permute.xlu0 %1195 }
 0x11b   :  { %v880_v47 = vmul.f32 %v3934_v27, %v872_v37  ;;  %v835_v32 = vrot.slane %v834_v39, 2  ;;  %v841_v60 = vadd.f32 %v840_v15, %v839_v52  ;;  %v704_v4 = vadd.f32 %v703_v44, %v702_v57 }
 0x11c   :  { %v711_v43 = vadd.f32 %v710_v17, %v709_v46  ;;  %v881_v31 = vsel %vm178_vm3, %v879_v36, 0.0  ;;  %v1846_v38 = vmul.f32 %v1842_v7, %v872_v37  ;;  %v1847_v59 = vmul.f32 %v1843_v30, %v872_v37 }
 0x11d   :  { %v888_v41 = vsel %vm178_vm3, %v880_v47, 0.0  ;;  %v907_v10 = vadd.f32 %v906_v2, %v905_v1  ;;  %v914_v14 = vadd.f32 %v913_v24, %v912_v55  ;;  %v705_v19 = vrot.slane %v704_v4, 1 }
 0x11e   :  { %v712_v54 = vrot.slane %v711_v43, 1  ;;  %v882_v20 = vrot.slane %v881_v31, 4  ;;  %v889_v28 = vrot.slane %v888_v41, 4  ;;  %v1848_v27 = vsel %vm178_vm3, %v1846_v38, 0.0 }
 0x11f   :  { %v1855_v52 = vsel %vm178_vm3, %v1847_v59, 0.0  ;;  %v842_v15 = vrot.slane %v841_v60, 2  ;;  %v692_v57 = vadd.f32 %v2864_v23, %v665_v56  ;;  %v706_v46 = vadd.f32 %v705_v19, %v704_v4  ;;  %v2951_v19 = vpop.permute.xlu1 %739 }
 0x120   :  { %v1849_v44 = vrot.slane %v1848_v27, 4  ;;  %v836_v17 = vadd.f32 %v835_v32, %v834_v39  ;;  %v883_v7 = vadd.f32 %v882_v20, %v881_v31  ;;  %v1856_v30 = vrot.slane %v1855_v52, 4  ;;  %v3935_v39 = vld [vmem:[#allocation15_spill] sm:$0xff] }
 0x121   :  { %v1202_v55 = vsel %vm92_vm2, 0.0, %v2937_v62  ;;  %v2944_v1 = vadd.f32 %v800_v53, %v799_v11  ;;  %v714_v2 = vadd.f32 %v706_v46, %v692_v57  ;;  %v890_v24 = vadd.f32 %v889_v28, %v888_v41 }
 0x122   :  { %v1850_v37 = vadd.f32 %v1849_v44, %v1848_v27  ;;  %v778_v36 = vrot.slane %v777_v16, 1  ;;  %v908_v47 = vrot.slane %v907_v10, 1  ;;  %v713_v38 = vadd.f32 %v712_v54, %v711_v43 }
 0x123   :  { %v1203_v59 = vsel %vm2447_vm6, %v1202_v55, 0.0  ;;  %v915_v23 = vrot.slane %v914_v14, 1  ;;  %v693_v56 = vadd.f32 %v2869_v35, %v666_v12  ;;  %v837_v4 = vrot.slane %v836_v17, 1 }
 0x124   :  { %v1304_v20 = vmul.f32 %v1203_v59, %v3935_v39  ;;  %v1471_v32 = vmul.f32 %v1203_v59, %v2588_v42  ;;  %v843_v31 = vadd.f32 %v842_v15, %v841_v60  ;;  %v884_v11 = vrot.slane %v883_v7, 2 }
 0x125   :  { %v1857_v53 = vadd.f32 %v1856_v30, %v1855_v52  ;;  %v891_v41 = vrot.slane %v890_v24, 2  ;;  %v1851_v28 = vrot.slane %v1850_v37, 2  ;;  %v2956_v27 = vadd.f32 %v771_v40, %v2920_v34 }
 0x126   :  { %v1306_v43 = vsel %vm178_vm3, %v1304_v20, 0.0  ;;  %v1473_v54 = vsel %vm178_vm3, %v1471_v32, 0.0  ;;  %v715_v35 = vadd.f32 %v713_v38, %v693_v56  ;;  %v1638_v12 = vmul.f32 %v1203_v59, %v2852_v63 }
 0x127   :  { %v1805_v57 = vmul.f32 %v1203_v59, %v2892_v6  ;;  %v2960_v46 = vadd.f32 %v778_v36, %v777_v16  ;;  %v1307_v60 = vrot.slane %v1306_v43, 4  ;;  %v1474_v52 = vrot.slane %v1473_v54, 4  ;;  %v2974_v16 = vpop.permute.xlu2 %942 }
 0x128   :  { %v742_v15 = vmul.f32 %v2951_v19, %v2657_v25  ;;  %v2964_v44 = vadd.f32 %v908_v47, %v907_v10  ;;  %v2966_v30 = vadd.f32 %v915_v23, %v914_v14  ;;  %v885_v55 = vadd.f32 %v884_v11, %v883_v7 }
 0x129   :  { %v1858_v20 = vrot.slane %v1857_v53, 2  ;;  %v2968_v34 = vadd.f32 %v837_v4, %v836_v17  ;;  %v844_v40 = vrot.slane %v843_v31, 1  ;;  %v2970_v38 = vadd.f32 %v891_v41, %v890_v24 }
 0x12a   :  { %v2972_v56 = vadd.f32 %v1851_v28, %v1850_v37  ;;  %v1640_v36 = vsel %vm178_vm3, %v1638_v12, 0.0  ;;  %v1807_v59 = vsel %vm178_vm3, %v1805_v57, 0.0  ;;  %v736_v10 = vadd.f32 %v2925_v22, %v714_v2 }
 0x12b   :  { %v2980_v14 = vadd.f32 %v2928_v0, %v715_v35  ;;  %v1308_v7 = vadd.f32 %v1307_v60, %v1306_v43  ;;  %v1475_v47 = vadd.f32 %v1474_v52, %v1473_v54  ;;  %v743_v17 = vmul.f32 %v2951_v19, %v2663_v49 }
 0x12c   :  { %v744_v24 = vsel %vm178_vm3, %v742_v15, 0.0  ;;  %v886_v37 = vrot.slane %v885_v55, 1  ;;  %v2985_v23 = vadd.f32 %v1858_v20, %v1857_v53  ;;  %v945_v4 = vmul.f32 %v2974_v16, %v2657_v25  ;;  %v2997_v25 = vpop.permute.xlu1 %805 }
 0x12d   :  { %v745_v32 = vrot.slane %v744_v24, 4  ;;  %v1641_v11 = vrot.slane %v1640_v36, 4  ;;  %v1808_v41 = vrot.slane %v1807_v59, 4  ;;  %v751_v22 = vsel %vm178_vm3, %v743_v17, 0.0 }
 0x12e   :  { %v946_v0 = vmul.f32 %v2974_v16, %v2663_v49  ;;  %v2992_v2 = vadd.f32 %v844_v40, %v843_v31  ;;  %v752_v54 = vrot.slane %v751_v22, 4  ;;  %v1309_v35 = vrot.slane %v1308_v7, 2 }
 0x12f   :  { %v746_v43 = vadd.f32 %v745_v32, %v744_v24  ;;  %v1476_v12 = vrot.slane %v1475_v47, 2  ;;  %v947_v57 = vsel %vm178_vm3, %v945_v4, 0.0  ;;  %v3001_v31 = vadd.f32 %v886_v37, %v885_v55  ;;  %v1172_v55 = vpop.permute.xlu2 %1171 }
 0x130   :  { %v753_v15 = vadd.f32 %v752_v54, %v751_v22  ;;  %v954_v49 = vsel %vm178_vm3, %v946_v0, 0.0  ;;  %v1642_v20 = vadd.f32 %v1641_v11, %v1640_v36  ;;  %v1809_v40 = vadd.f32 %v1808_v41, %v1807_v59 }
 0x131   :  { %v747_v52 = vrot.slane %v746_v43, 2  ;;  %v948_v17 = vrot.slane %v947_v57, 4  ;;  %v808_v53 = vmul.f32 %v2997_v25, %v2443_v26  ;;  %v809_v4 = vmul.f32 %v2997_v25, %v2493_v18 }
 0x132   :  { %v754_v32 = vrot.slane %v753_v15, 2  ;;  %v3007_v28 = vadd.f32 %v1309_v35, %v1308_v7  ;;  %v3009_v60 = vadd.f32 %v1476_v12, %v1475_v47  ;;  %v955_v0 = vrot.slane %v954_v49, 4  ;;  %v3016_v12 = vpop.permute.xlu0 %1210 }
 0x133   :  { %v748_v24 = vadd.f32 %v747_v52, %v746_v43  ;;  %v949_v22 = vadd.f32 %v948_v17, %v947_v57  ;;  %v810_v59 = vsel %vm178_vm3, %v808_v53, 0.0  ;;  %v817_v11 = vsel %vm178_vm3, %v809_v4, 0.0 }
 0x134   :  { %v755_v36 = vadd.f32 %v754_v32, %v753_v15  ;;  %v1643_v41 = vrot.slane %v1642_v20, 2  ;;  %v1810_v43 = vrot.slane %v1809_v40, 2  ;;  %v811_v54 = vrot.slane %v810_v59, 4 }
 0x135   :  { %v749_v37 = vrot.slane %v748_v24, 1  ;;  %v818_v26 = vrot.slane %v817_v11, 4  ;;  %v1175_v18 = vsel %vm62_vm0, %v1172_v55, %v2915_v3  ;;  %v1178_v7 = vsel %vm62_vm0, 0.0, %v1172_v55 }
 0x136   :  { %v756_v33 = vrot.slane %v755_v36, 1  ;;  %v950_v47 = vrot.slane %v949_v22, 2  ;;  %v956_v35 = vadd.f32 %v955_v0, %v954_v49  ;;  %v812_v57 = vadd.f32 %v811_v54, %v810_v59  ;;  %v3937_v59 = vld [vmem:[#allocation7_spill] sm:$0xff] }
 0x137   :  { %v750_v52 = vadd.f32 %v749_v37, %v748_v24  ;;  %v819_v15 = vadd.f32 %v818_v26, %v817_v11  ;;  %v1179_v32 = vsel %vm2415_vm1, %v1178_v7, 0.0  ;;  %v1180_v24 = vsel %vm2436_vm5, %v1175_v18, 0.0  ;;  %v3938_v7 = vld [vmem:[#allocation20_spill] sm:$0xff] }
 0x138   :  { %v757_v53 = vadd.f32 %v756_v33, %v755_v36  ;;  %v3022_v37 = vadd.f32 %v1643_v41, %v1642_v20  ;;  %v3024_v6 = vadd.f32 %v1810_v43, %v1809_v40  ;;  %v813_v3 = vrot.slane %v812_v57, 2 }
 0x139   :  { %v758_v17 = vadd.f32 %v750_v52, %v736_v10  ;;  %v820_v55 = vrot.slane %v819_v15, 2  ;;  %v1268_v11 = vmul.f32 %v1179_v32, %v3937_v59  ;;  %v1269_v33 = vmul.f32 %v1180_v24, %v3937_v59 }
 0x13a   :  { %v759_v49 = vadd.f32 %v757_v53, %v2980_v14  ;;  %v3030_v10 = vadd.f32 %v950_v47, %v949_v22  ;;  %v957_v36 = vrot.slane %v956_v35, 2  ;;  %v814_v54 = vadd.f32 %v813_v3, %v812_v57 }
 0x13b   :  { %v780_v0 = vadd.f32 %v2956_v27, %v758_v17  ;;  %v821_v26 = vadd.f32 %v820_v55, %v819_v15  ;;  %v1270_v41 = vsel %vm178_vm3, %v1268_v11, 0.0  ;;  %v1277_v14 = vsel %vm178_vm3, %v1269_v33, 0.0 }
 0x13c   :  { %v781_v20 = vadd.f32 %v2960_v46, %v759_v49  ;;  %v815_v27 = vrot.slane %v814_v54, 1  ;;  %v1271_v52 = vrot.slane %v1270_v41, 4  ;;  %v1278_v18 = vrot.slane %v1277_v14, 4 }
 0x13d   :  { %v3035_v40 = vsel %vm988_vm14, %v2848_v48, %v780_v0  ;;  %v822_v43 = vrot.slane %v821_v26, 1  ;;  %v1435_v47 = vmul.f32 %v1179_v32, %v3938_v7  ;;  %v1436_v46 = vmul.f32 %v1180_v24, %v3938_v7 }
 0x13e   :  { %v3041_v22 = vsel %vm988_vm14, %v2858_v58, %v781_v20  ;;  %v1602_v57 = vmul.f32 %v1179_v32, %v2825_v61  ;;  %v816_v48 = vadd.f32 %v815_v27, %v814_v54  ;;  %v1272_v53 = vadd.f32 %v1271_v52, %v1270_v41  ;;  %v3052_v20 = vpop.permute.xlu0 %1234 }
 0x13f   :  { %v823_v15 = vadd.f32 %v822_v43, %v821_v26  ;;  %v1279_v17 = vadd.f32 %v1278_v18, %v1277_v14  ;;  %v1437_v3 = vsel %vm178_vm3, %v1435_v47, 0.0  ;;  %v1444_v55 = vsel %vm178_vm3, %v1436_v46, 0.0  ;;  %3939 = vst [vmem:[#allocation5_spill] sm:$0xff] %v3052_v20 }
 0x140   :  { %v1603_v49 = vmul.f32 %v1180_v24, %v2825_v61  ;;  %v1604_v0 = vsel %vm178_vm3, %v1602_v57, 0.0  ;;  %v824_v58 = vadd.f32 %v816_v48, %v2930_v51  ;;  %v1273_v11 = vrot.slane %v1272_v53, 2 }
 0x141   :  { %v825_v59 = vadd.f32 %v823_v15, %v2944_v1  ;;  %v1280_v33 = vrot.slane %v1279_v17, 2  ;;  %v1438_v54 = vrot.slane %v1437_v3, 4  ;;  %v1445_v26 = vrot.slane %v1444_v55, 4 }
 0x142   :  { %v1605_v41 = vrot.slane %v1604_v0, 4  ;;  %v1611_v14 = vsel %vm178_vm3, %v1603_v49, 0.0  ;;  %v3940_v27 = vrot.slane %v2970_v38, 1  ;;  %v1311_v61 = vrot.slane %v3007_v28, 1 }
 0x143   :  { %v1478_v51 = vrot.slane %v3009_v60, 1  ;;  %v958_v52 = vadd.f32 %v957_v36, %v956_v35  ;;  %v1274_v1 = vadd.f32 %v1273_v11, %v1272_v53  ;;  %v1281_v18 = vadd.f32 %v1280_v33, %v1279_v17 }
 0x144   :  { %v3058_v43 = vadd.f32 %v3940_v27, %v2970_v38  ;;  %v1612_v7 = vrot.slane %v1611_v14, 4  ;;  %v1769_v47 = vmul.f32 %v1179_v32, %v2842_v45  ;;  %v3941_v46 = vrot.slane %v2972_v56, 1  ;;  %v3076_v32 = vpop.permute.xlu1 %849 }
 0x145   :  { %v3943_v48 = vrot.slane %v2985_v23, 1  ;;  %v1439_v15 = vadd.f32 %v1438_v54, %v1437_v3  ;;  %v1446_v49 = vadd.f32 %v1445_v26, %v1444_v55  ;;  %v1645_v27 = vrot.slane %v3022_v37, 1 }
 0x146   :  { %v3066_v57 = vadd.f32 %v3941_v46, %v2972_v56  ;;  %v1812_v35 = vrot.slane %v3024_v6, 1  ;;  %v952_v36 = vrot.slane %v3030_v10, 1  ;;  %v1606_v53 = vadd.f32 %v1605_v41, %v1604_v0 }
 0x147   :  { %v3071_v38 = vadd.f32 %v3943_v48, %v2985_v23  ;;  %v3079_v17 = vadd.f32 %v1311_v61, %v3007_v28  ;;  %v3082_v56 = vadd.f32 %v1478_v51, %v3009_v60  ;;  %v959_v11 = vrot.slane %v958_v52, 1 }
 0x148   :  { %3942 = vst [vmem:[#allocation6_spill] sm:$0xff] %v3066_v57  ;;  %v1770_v23 = vmul.f32 %v1180_v24, %v2842_v45  ;;  %v1275_v3 = vrot.slane %v1274_v1, 1  ;;  %v1282_v55 = vrot.slane %v1281_v18, 1  ;;  %v1613_v33 = vadd.f32 %v1612_v7, %v1611_v14 }
 0x149   :  { %3944 = vst [vmem:[#allocation7_spill] sm:$0xff] %v3071_v38  ;;  %v1771_v54 = vsel %vm178_vm3, %v1769_v47, 0.0  ;;  %v1440_v26 = vrot.slane %v1439_v15, 2  ;;  %v1447_v46 = vrot.slane %v1446_v49, 2  ;;  %v3087_v0 = vadd.f32 %v2968_v34, %v824_v58  ;;  %v3107_v58 = vpop.permute.xlu0 %1249 }
 0x14a   :  { %3945 = vst [vmem:[#allocation20_spill] sm:$0xff] %v3082_v56  ;;  %v3090_v41 = vadd.f32 %v2992_v2, %v825_v59  ;;  %v3093_v28 = vadd.f32 %v1645_v27, %v3022_v37  ;;  %v3096_v60 = vadd.f32 %v1812_v35, %v3024_v6  ;;  %v3099_v45 = vadd.f32 %v952_v36, %v3030_v10 }
 0x14b   :  { %v1607_v24 = vrot.slane %v1606_v53, 2  ;;  %v3101_v14 = vadd.f32 %v959_v11, %v958_v52  ;;  %v1772_v61 = vrot.slane %v1771_v54, 4  ;;  %v852_v34 = vmul.f32 %v3076_v32, %v2521_v9 }
 0x14c   :  { %3946 = vst [vmem:[#allocation40_spill] sm:$0xff] %v3093_v28  ;;  %v853_v2 = vmul.f32 %v3076_v32, %v2544_v13  ;;  %v3109_v37 = vadd.f32 %v1275_v3, %v1274_v1  ;;  %v3111_v59 = vadd.f32 %v1282_v55, %v1281_v18  ;;  %v1614_v6 = vrot.slane %v1613_v33, 2  ;;  %v3948_v18 = vld [vmem:[#allocation26_spill] sm:$0xff]  ;;  %v3126_v55 = vpop.permute.xlu1 %920 }
 0x14d   :  { %3947 = vst [vmem:[#allocation41_spill] sm:$0xff] %v3096_v60  ;;  %v1778_v10 = vsel %vm178_vm3, %v1770_v23, 0.0  ;;  %v1441_v51 = vadd.f32 %v1440_v26, %v1439_v15  ;;  %v3114_v7 = vadd.f32 %v1447_v46, %v1446_v49  ;;  %v854_v52 = vsel %vm178_vm3, %v852_v34, 0.0  ;;  %v3130_v26 = vpop.permute.xlu2 %1186 }
 0x14e   :  { %v861_v47 = vsel %vm178_vm3, %v853_v2, 0.0  ;;  %v3118_v9 = vadd.f32 %v1607_v24, %v1606_v53  ;;  %v855_v48 = vrot.slane %v854_v52, 4  ;;  %v1254_v1 = vsel %vm152_vm11, %v3107_v58, 0.0  ;;  %3949 = vst [vmem:[#allocation26_spill] sm:$0xff] %v3126_v55 }
 0x14f   :  { %v862_v13 = vrot.slane %v861_v47, 4  ;;  %v1773_v27 = vadd.f32 %v1772_v61, %v1771_v54  ;;  %v1400_v35 = vmul.f32 %v1254_v1, %v3948_v18  ;;  %v1567_v36 = vmul.f32 %v1254_v1, %v2681_v29 }
 0x150   :  { %v1734_v15 = vmul.f32 %v1254_v1, %v2951_v19  ;;  %v1779_v49 = vrot.slane %v1778_v10, 4  ;;  %v856_v11 = vadd.f32 %v855_v48, %v854_v52  ;;  %v1901_v3 = vmul.f32 %v1254_v1, %v2974_v16 }
 0x151   :  { %v863_v23 = vadd.f32 %v862_v13, %v861_v47  ;;  %v3128_v53 = vadd.f32 %v1614_v6, %v1613_v33  ;;  %v1408_v46 = vsel %vm178_vm3, %v1400_v35, 0.0  ;;  %v1575_v54 = vsel %vm178_vm3, %v1567_v36, 0.0  ;;  %v3950_v36 = vld [vmem:[#allocation17_spill] sm:$0xff] }
 0x152   :  { %v1742_v24 = vsel %vm178_vm3, %v1734_v15, 0.0  ;;  %v857_v61 = vrot.slane %v856_v11, 2  ;;  %v1409_v2 = vrot.slane %v1408_v46, 4  ;;  %v1576_v38 = vrot.slane %v1575_v54, 4 }
 0x153   :  { %v864_v34 = vrot.slane %v863_v23, 2  ;;  %v1442_v52 = vrot.slane %v1441_v51, 1  ;;  %v1743_v47 = vrot.slane %v1742_v24, 4  ;;  %v1909_v48 = vsel %vm178_vm3, %v1901_v3, 0.0 }
 0x154   :  { %v923_v33 = vmul.f32 %v3126_v55, %v2600_v8  ;;  %v1780_v6 = vadd.f32 %v1779_v49, %v1778_v10  ;;  %v858_v13 = vadd.f32 %v857_v61, %v856_v11  ;;  %v1410_v20 = vadd.f32 %v1409_v2, %v1408_v46 }
 0x155   :  { %v865_v1 = vadd.f32 %v864_v34, %v863_v23  ;;  %v1577_v35 = vadd.f32 %v1576_v38, %v1575_v54  ;;  %v1744_v57 = vadd.f32 %v1743_v47, %v1742_v24  ;;  %v924_v15 = vmul.f32 %v3126_v55, %v3950_v36 }
 0x156   :  { %v925_v60 = vsel %vm178_vm3, %v923_v33, 0.0  ;;  %v859_v63 = vrot.slane %v858_v13, 1  ;;  %v1910_v39 = vrot.slane %v1909_v48, 4  ;;  %v1774_v56 = vrot.slane %v1773_v27, 2 }
 0x157   :  { %v866_v42 = vrot.slane %v865_v1, 1  ;;  %v926_v8 = vrot.slane %v925_v60, 4  ;;  %v932_v10 = vsel %vm178_vm3, %v924_v15, 0.0  ;;  %v1781_v49 = vrot.slane %v1780_v6, 2 }
 0x158   :  { %v860_v11 = vadd.f32 %v859_v63, %v858_v13  ;;  %v1411_v23 = vrot.slane %v1410_v20, 2  ;;  %v1578_v46 = vrot.slane %v1577_v35, 2  ;;  %v1745_v54 = vrot.slane %v1744_v57, 2  ;;  %v1209_v63 = vpop.permute.xlu2 %1208 }
 0x159   :  { %v867_v38 = vadd.f32 %v866_v42, %v865_v1  ;;  %v927_v24 = vadd.f32 %v926_v8, %v925_v60  ;;  %v933_v61 = vrot.slane %v932_v10, 4  ;;  %v1616_v34 = vrot.slane %v3128_v53, 1 }
 0x15a   :  { %v868_v2 = vadd.f32 %v860_v11, %v3087_v0  ;;  %v1911_v33 = vadd.f32 %v1910_v39, %v1909_v48  ;;  %v3147_v36 = vadd.f32 %v1442_v52, %v1441_v51  ;;  %v3149_v3 = vadd.f32 %v1774_v56, %v1773_v27 }
 0x15b   :  { %v869_v47 = vadd.f32 %v867_v38, %v3090_v41  ;;  %v928_v15 = vrot.slane %v927_v24, 2  ;;  %v934_v28 = vadd.f32 %v933_v61, %v932_v10  ;;  %v3151_v42 = vadd.f32 %v1781_v49, %v1780_v6  ;;  %v3951_v6 = vld [vmem:[#allocation16_spill] sm:$0xff]  ;;  %v3952_v10 = vld [vmem:[#allocation30_spill] sm:$0xff] }
 0x15c   :  { %v895_v13 = vadd.f32 %v3001_v31, %v868_v2  ;;  %v3155_v1 = vadd.f32 %v1411_v23, %v1410_v20  ;;  %v3157_v8 = vadd.f32 %v1578_v46, %v1577_v35  ;;  %v3159_v0 = vadd.f32 %v1745_v54, %v1744_v57 }
 0x15d   :  { %v896_v60 = vadd.f32 %v3058_v43, %v869_v47  ;;  %v929_v39 = vadd.f32 %v928_v15, %v927_v24  ;;  %v935_v41 = vrot.slane %v934_v28, 2  ;;  %v1912_v51 = vrot.slane %v1911_v33, 2 }
 0x15e   :  { %v917_v56 = vadd.f32 %v2964_v44, %v895_v13  ;;  %v1212_v27 = vsel %vm110_vm8, %v1209_v63, %v3016_v12  ;;  %v1215_v52 = vsel %vm110_vm8, 0.0, %v1209_v63  ;;  %v3953_v44 = vld [vmem:[#allocation32_spill] sm:$0xff] }
 0x15f   :  { %v918_v31 = vadd.f32 %v2966_v30, %v896_v60  ;;  %v930_v48 = vrot.slane %v929_v39, 1  ;;  %v936_v43 = vadd.f32 %v935_v41, %v934_v28  ;;  %v1216_v20 = vsel %vm2415_vm1, %v1215_v52, 0.0 }
 0x160   :  { %v1217_v57 = vsel %vm2436_vm5, %v1212_v27, 0.0  ;;  %v1322_v35 = vmul.f32 %v1216_v20, %v3951_v6  ;;  %v1489_v49 = vmul.f32 %v1216_v20, %v3952_v10  ;;  %v1656_v11 = vmul.f32 %v1216_v20, %v3953_v44 }
 0x161   :  { %v931_v38 = vadd.f32 %v930_v48, %v929_v39  ;;  %v937_v12 = vrot.slane %v936_v43, 1  ;;  %v1323_v23 = vmul.f32 %v1217_v57, %v3951_v6  ;;  %v1490_v30 = vmul.f32 %v1217_v57, %v3952_v10 }
 0x162   :  { %v1324_v28 = vsel %vm178_vm3, %v1322_v35, 0.0  ;;  %v1491_v46 = vsel %vm178_vm3, %v1489_v49, 0.0  ;;  %v1657_v54 = vmul.f32 %v1217_v57, %v3953_v44  ;;  %v1658_v24 = vsel %vm178_vm3, %v1656_v11, 0.0 }
 0x163   :  { %v938_v61 = vadd.f32 %v937_v12, %v936_v43  ;;  %v939_v2 = vadd.f32 %v931_v38, %v917_v56  ;;  %v1325_v47 = vrot.slane %v1324_v28, 4  ;;  %v1331_v15 = vsel %vm178_vm3, %v1323_v23, 0.0 }
 0x164   :  { %v1332_v63 = vrot.slane %v1331_v15, 4  ;;  %v1492_v13 = vrot.slane %v1491_v46, 4  ;;  %v1498_v60 = vsel %vm178_vm3, %v1490_v30, 0.0  ;;  %v1659_v39 = vrot.slane %v1658_v24, 4 }
 0x165   :  { %v940_v41 = vadd.f32 %v938_v61, %v918_v31  ;;  %v1326_v27 = vadd.f32 %v1325_v47, %v1324_v28  ;;  %v1499_v52 = vrot.slane %v1498_v60, 4  ;;  %v1665_v48 = vsel %vm178_vm3, %v1657_v54, 0.0 }
 0x166   :  { %v1913_v6 = vadd.f32 %v1912_v51, %v1911_v33  ;;  %v1333_v35 = vadd.f32 %v1332_v63, %v1331_v15  ;;  %v1493_v10 = vadd.f32 %v1492_v13, %v1491_v46  ;;  %v1660_v49 = vadd.f32 %v1659_v39, %v1658_v24 }
 0x167   :  { %v1327_v44 = vrot.slane %v1326_v27, 2  ;;  %v1666_v43 = vrot.slane %v1665_v48, 4  ;;  %v1823_v56 = vmul.f32 %v1216_v20, %v3076_v32  ;;  %v1824_v11 = vmul.f32 %v1217_v57, %v3076_v32 }
 0x168   :  { %v3954_v38 = vrot.slane %v3114_v7, 1  ;;  %v1776_v31 = vrot.slane %v3149_v3, 1  ;;  %v1334_v23 = vrot.slane %v1333_v35, 2  ;;  %v1500_v30 = vadd.f32 %v1499_v52, %v1498_v60 }
 0x169   :  { %v1783_v33 = vrot.slane %v3151_v42, 1  ;;  %v1413_v51 = vrot.slane %v3155_v1, 1  ;;  %v1580_v28 = vrot.slane %v3157_v8, 1  ;;  %v1747_v46 = vrot.slane %v3159_v0, 1 }
 0x16a   :  { %v3187_v12 = vadd.f32 %v3954_v38, %v3114_v7  ;;  %v1914_v20 = vrot.slane %v1913_v6, 1  ;;  %v1494_v54 = vrot.slane %v1493_v10, 2  ;;  %v1825_v32 = vsel %vm178_vm3, %v1823_v56, 0.0  ;;  %v3196_v7 = vpop.permute.xlu2 %1223  ;;  %v3227_v38 = vpop.permute.xlu1 %964 }
 0x16b   :  { %v1832_v57 = vsel %vm178_vm3, %v1824_v11, 0.0  ;;  %v3955_v24 = vrot.slane %v3118_v9, 1  ;;  %v1328_v47 = vadd.f32 %v1327_v44, %v1326_v27  ;;  %v1661_v15 = vrot.slane %v1660_v49, 2 }
 0x16c   :  { %v1667_v63 = vadd.f32 %v1666_v43, %v1665_v48  ;;  %v3206_v13 = vadd.f32 %v1616_v34, %v3128_v53  ;;  %v3209_v60 = vadd.f32 %v1776_v31, %v3149_v3  ;;  %v1335_v39 = vadd.f32 %v1334_v23, %v1333_v35 }
 0x16d   :  { %v3201_v61 = vadd.f32 %v3955_v24, %v3118_v9  ;;  %v1501_v52 = vrot.slane %v1500_v30, 2  ;;  %v3212_v56 = vadd.f32 %v1783_v33, %v3151_v42  ;;  %v3215_v11 = vadd.f32 %v1413_v51, %v3155_v1  ;;  %v3962_v51 = vld [vmem:[#allocation19_spill] sm:$0xff] }
 0x16e   :  { %v1826_v9 = vrot.slane %v1825_v32, 4  ;;  %v1833_v27 = vrot.slane %v1832_v57, 4  ;;  %v3218_v48 = vadd.f32 %v1580_v28, %v3157_v8  ;;  %v3221_v44 = vadd.f32 %v1747_v46, %v3159_v0  ;;  %v3963_v28 = vld [vmem:[#allocation22_spill] sm:$0xff] }
 0x16f   :  { %3956 = vst [vmem:[#allocation17_spill] sm:$0xff] %v3212_v56  ;;  %v3223_v53 = vadd.f32 %v1914_v20, %v1913_v6  ;;  %v1495_v3 = vadd.f32 %v1494_v54, %v1493_v10  ;;  %v1329_v34 = vrot.slane %v1328_v47, 1  ;;  %v1662_v35 = vadd.f32 %v1661_v15, %v1660_v49 }
 0x170   :  { %3957 = vst [vmem:[#allocation16_spill] sm:$0xff] %v3215_v11  ;;  %v1668_v43 = vrot.slane %v1667_v63, 2  ;;  %v1228_v42 = vsel %vm124_vm10, %v3196_v7, 0.0  ;;  %v1336_v1 = vrot.slane %v1335_v39, 1  ;;  %v1502_v31 = vadd.f32 %v1501_v52, %v1500_v30  ;;  %v3964_v30 = vld [vmem:[#allocation23_spill] sm:$0xff] }
 0x171   :  { %3958 = vst [vmem:[#allocation30_spill] sm:$0xff] %v3218_v48  ;;  %v1230_v8 = vsel %vm2460_vm7, %v1228_v42, 0.0  ;;  %v3232_v33 = vadd.f32 %v3099_v45, %v939_v2  ;;  %v1827_v0 = vadd.f32 %v1826_v9, %v1825_v32  ;;  %v1834_v6 = vadd.f32 %v1833_v27, %v1832_v57  ;;  %v3965_v48 = vld [vmem:[#allocation24_spill] sm:$0xff] }
 0x172   :  { %3959 = vst [vmem:[#allocation32_spill] sm:$0xff] %v3221_v44  ;;  %v1364_v10 = vmul.f32 %v1230_v8, %v3962_v51  ;;  %v1531_v49 = vmul.f32 %v1230_v8, %v3963_v28  ;;  %v1698_v46 = vmul.f32 %v1230_v8, %v2904_v21  ;;  %v1865_v20 = vmul.f32 %v1230_v8, %v2886_v50  ;;  %v1248_v42 = vpop.permute.xlu2 %1247 }
 0x173   :  { %3960 = vst [vmem:[#allocation42_spill] sm:$0xff] %v3223_v53  ;;  %v3239_v54 = vadd.f32 %v3101_v14, %v940_v41  ;;  %v967_v24 = vmul.f32 %v3227_v38, %v3964_v30  ;;  %v1496_v15 = vrot.slane %v1495_v3, 1  ;;  %v1663_v52 = vrot.slane %v1662_v35, 1 }
 0x174   :  { %v1372_v45 = vsel %vm178_vm3, %v1364_v10, 0.0  ;;  %v1539_v2 = vsel %vm178_vm3, %v1531_v49, 0.0  ;;  %v1706_v9 = vsel %vm178_vm3, %v1698_v46, 0.0  ;;  %v1873_v27 = vsel %vm178_vm3, %v1865_v20, 0.0 }
 0x175   :  { %v1373_v32 = vrot.slane %v1372_v45, 4  ;;  %v1540_v57 = vrot.slane %v1539_v2, 4  ;;  %v3247_v8 = vadd.f32 %v1329_v34, %v1328_v47  ;;  %v1669_v14 = vadd.f32 %v1668_v43, %v1667_v63 }
 0x176   :  { %v1828_v41 = vrot.slane %v1827_v0, 2  ;;  %v1707_v53 = vrot.slane %v1706_v9, 4  ;;  %v1835_v44 = vrot.slane %v1834_v6, 2  ;;  %v1874_v30 = vrot.slane %v1873_v27, 4 }
 0x177   :  { %v968_v11 = vmul.f32 %v3227_v38, %v3965_v48  ;;  %v969_v10 = vsel %vm178_vm3, %v967_v24, 0.0  ;;  %v1503_v49 = vrot.slane %v1502_v31, 1  ;;  %v1374_v55 = vadd.f32 %v1373_v32, %v1372_v45 }
 0x178   :  { %v970_v4 = vrot.slane %v969_v10, 4  ;;  %v1251_v46 = vsel %vm152_vm11, %v1248_v42, %v3107_v58  ;;  %v1541_v20 = vadd.f32 %v1540_v57, %v1539_v2  ;;  %v1708_v5 = vadd.f32 %v1707_v53, %v1706_v9 }
 0x179   :  { %v976_v47 = vsel %vm178_vm3, %v968_v11, 0.0  ;;  %v1399_v63 = vmul.f32 %v1251_v46, %v3948_v18  ;;  %v3256_v34 = vadd.f32 %v1336_v1, %v1335_v39  ;;  %v1670_v43 = vrot.slane %v1669_v14, 1 }
 0x17a   :  { %v971_v56 = vadd.f32 %v970_v4, %v969_v10  ;;  %v977_v50 = vrot.slane %v976_v47, 4  ;;  %v1829_v48 = vadd.f32 %v1828_v41, %v1827_v0  ;;  %v1836_v21 = vadd.f32 %v1835_v44, %v1834_v6 }
 0x17b   :  { %v1875_v24 = vadd.f32 %v1874_v30, %v1873_v27  ;;  %v1401_v45 = vsel %vm178_vm3, %v1399_v63, 0.0  ;;  %v3259_v32 = vadd.f32 %v1496_v15, %v1495_v3  ;;  %v1375_v28 = vrot.slane %v1374_v55, 2  ;;  %v1185_v15 = vpop.permute.xlu1 %1184 }
 0x17c   :  { %v972_v58 = vrot.slane %v971_v56, 2  ;;  %v978_v2 = vadd.f32 %v977_v50, %v976_v47  ;;  %v1542_v53 = vrot.slane %v1541_v20, 2  ;;  %v1709_v57 = vrot.slane %v1708_v5, 2 }
 0x17d   :  { %v1402_v11 = vrot.slane %v1401_v45, 4  ;;  %v1566_v18 = vmul.f32 %v1251_v46, %v2681_v29  ;;  %v3262_v39 = vadd.f32 %v1503_v49, %v1502_v31  ;;  %v3264_v1 = vadd.f32 %v1663_v52, %v1662_v35 }
 0x17e   :  { %v973_v4 = vadd.f32 %v972_v58, %v971_v56  ;;  %v979_v0 = vrot.slane %v978_v2, 2  ;;  %v3266_v44 = vadd.f32 %v1670_v43, %v1669_v14  ;;  %v1830_v6 = vrot.slane %v1829_v48, 1  ;;  %v3966_v58 = vld [vmem:[#allocation4_spill] sm:$0xff] }
 0x17f   :  { %v1837_v9 = vrot.slane %v1836_v21, 1  ;;  %v1876_v3 = vrot.slane %v1875_v24, 2  ;;  %v1376_v27 = vadd.f32 %v1375_v28, %v1374_v55  ;;  %v1543_v41 = vadd.f32 %v1542_v53, %v1541_v20 }
 0x180   :  { %v974_v50 = vrot.slane %v973_v4, 1  ;;  %v980_v42 = vadd.f32 %v979_v0, %v978_v2  ;;  %v3268_v30 = vadd.f32 %v1709_v57, %v1708_v5  ;;  %v1403_v29 = vadd.f32 %v1402_v11, %v1401_v45  ;;  %v3967_v0 = vld [vmem:[#allocation27_spill] sm:$0xff] }
 0x181   :  { %v1568_v31 = vsel %vm178_vm3, %v1566_v18, 0.0  ;;  %v1188_v56 = vsel %vm80_vm4, %v1185_v15, %v3130_v26  ;;  %v1191_v14 = vsel %vm80_vm4, 0.0, %v1185_v15  ;;  %v3274_v10 = vadd.f32 %v1830_v6, %v1829_v48 }
 0x182   :  { %v975_v35 = vadd.f32 %v974_v50, %v973_v4  ;;  %v981_v52 = vrot.slane %v980_v42, 1  ;;  %v3276_v49 = vadd.f32 %v1837_v9, %v1836_v21  ;;  %v3278_v55 = vadd.f32 %v1876_v3, %v1875_v24  ;;  %v3968_v50 = vld [vmem:[#allocation31_spill] sm:$0xff] }
 0x183   :  { %v1733_v28 = vmul.f32 %v1251_v46, %v2951_v19  ;;  %v1377_v5 = vrot.slane %v1376_v27, 1  ;;  %v1569_v63 = vrot.slane %v1568_v31, 4  ;;  %v1544_v43 = vrot.slane %v1543_v41, 1 }
 0x184   :  { %v982_v20 = vadd.f32 %v981_v52, %v980_v42  ;;  %v983_v47 = vadd.f32 %v975_v35, %v3232_v33  ;;  %v1404_v45 = vrot.slane %v1403_v29, 2  ;;  %v1286_v2 = vmul.f32 %v1191_v14, %v3966_v58 }
 0x185   :  { %v1287_v26 = vmul.f32 %v1188_v56, %v3966_v58  ;;  %v1711_v48 = vrot.slane %v3268_v30, 1  ;;  %v1900_v19 = vmul.f32 %v1251_v46, %v2974_v16  ;;  %v1878_v53 = vrot.slane %v3278_v55, 1 }
 0x186   :  { %v984_v21 = vadd.f32 %v982_v20, %v3239_v54  ;;  %v3288_v24 = vsel %vm991_vm15, %v3035_v40, %v983_v47  ;;  %v1735_v33 = vsel %vm178_vm3, %v1733_v28, 0.0  ;;  %v1288_v57 = vsel %vm178_vm3, %v1286_v2, 0.0 }
 0x187   :  { %v1295_v11 = vsel %vm178_vm3, %v1287_v26, 0.0  ;;  %1006 = vrot.lane.b32.xlu2 %v3288_v24, %s2237_s1  ;;  %996 = vrot.lane.b32.xlu0 %v3288_v24, %s2234_s22  ;;  %v3299_v54 = vadd.f32 %v1377_v5, %v1376_v27  ;;  %v1570_v16 = vadd.f32 %v1569_v63, %v1568_v31  ;;  %v1289_v46 = vrot.slane %v1288_v57, 4 }
 0x188   :  { %v3303_v40 = vsel %vm991_vm15, %v3041_v22, %v984_v21  ;;  %v1405_v18 = vadd.f32 %v1404_v45, %v1403_v29  ;;  %v1296_v4 = vrot.slane %v1295_v11, 4  ;;  %v1453_v6 = vmul.f32 %v1191_v14, %v3967_v0 }
 0x189   :  { %v1454_v9 = vmul.f32 %v1188_v56, %v3967_v0  ;;  %998 = vrot.lane.b32.xlu1 %v3303_v40, %s2234_s22  ;;  %v1736_v3 = vrot.slane %v1735_v33, 4  ;;  %v1902_v15 = vsel %vm178_vm3, %v1900_v19, 0.0  ;;  %v1290_v27 = vadd.f32 %v1289_v46, %v1288_v57 }
 0x18a   :  { %v1620_v42 = vmul.f32 %v1191_v14, %v3968_v50  ;;  %v1297_v35 = vadd.f32 %v1296_v4, %v1295_v11  ;;  %v1455_v22 = vsel %vm178_vm3, %v1453_v6, 0.0  ;;  %v1621_v29 = vmul.f32 %v1188_v56, %v3968_v50 }
 0x18b   :  { %v1462_v31 = vsel %vm178_vm3, %v1454_v9, 0.0  ;;  %v3314_v52 = vadd.f32 %v1544_v43, %v1543_v41  ;;  %v1571_v28 = vrot.slane %v1570_v16, 2  ;;  %v1291_v5 = vrot.slane %v1290_v27, 2 }
 0x18c   :  { %v1456_v20 = vrot.slane %v1455_v22, 4  ;;  %v1903_v47 = vrot.slane %v1902_v15, 4  ;;  %v1463_v63 = vrot.slane %v1462_v31, 4  ;;  %v1622_v45 = vsel %vm178_vm3, %v1620_v42, 0.0 }
 0x18d   :  { %v1629_v58 = vsel %vm178_vm3, %v1621_v29, 0.0  ;;  %v1406_v2 = vrot.slane %v1405_v18, 1  ;;  %v1737_v26 = vadd.f32 %v1736_v3, %v1735_v33  ;;  %v1292_v21 = vadd.f32 %v1291_v5, %v1290_v27 }
 0x18e   :  { %v1457_v19 = vadd.f32 %v1456_v20, %v1455_v22  ;;  %v1298_v57 = vrot.slane %v1297_v35, 2  ;;  %v1464_v11 = vadd.f32 %v1463_v63, %v1462_v31  ;;  %v1623_v46 = vrot.slane %v1622_v45, 4 }
 0x18f   :  { %v1630_v4 = vrot.slane %v1629_v58, 4  ;;  %1016 = vrot.lane.b32.xlu2 %v3303_v40, %s2239_s23  ;;  %1008 = vrot.lane.b32.xlu0 %v3303_v40, %s2237_s1  ;;  %v1572_v41 = vadd.f32 %v1571_v28, %v1570_v16  ;;  %v1787_v0 = vmul.f32 %v1191_v14, %v2997_v25  ;;  %v1788_v6 = vmul.f32 %v1188_v56, %v2997_v25 }
 0x190   :  { %v1458_v43 = vrot.slane %v1457_v19, 2  ;;  %v1904_v9 = vadd.f32 %v1903_v47, %v1902_v15  ;;  %v1293_v33 = vrot.slane %v1292_v21, 1  ;;  %v1624_v3 = vadd.f32 %v1623_v46, %v1622_v45  ;;  %v3328_v15 = vpop.permute.xlu2 %1260 }
 0x191   :  { %v1631_v27 = vadd.f32 %v1630_v4, %v1629_v58  ;;  %1014 = vrot.lane.b32.xlu1 %v3288_v24, %s2239_s23  ;;  %v1465_v42 = vrot.slane %v1464_v11, 2  ;;  %v1789_v22 = vsel %vm178_vm3, %v1787_v0, 0.0  ;;  %v1796_v31 = vsel %vm178_vm3, %v1788_v6, 0.0  ;;  %v1198_v6 = vpop.permute.xlu1 %1197 }
 0x192   :  { %v1459_v50 = vadd.f32 %v1458_v43, %v1457_v19  ;;  %v1738_v29 = vrot.slane %v1737_v26, 2  ;;  %v1299_v16 = vadd.f32 %v1298_v57, %v1297_v35  ;;  %v1625_v28 = vrot.slane %v1624_v3, 2 }
 0x193   :  { %v1632_v5 = vrot.slane %v1631_v27, 2  ;;  %v1573_v14 = vrot.slane %v1572_v41, 1  ;;  %v1790_v25 = vrot.slane %v1789_v22, 4  ;;  %v1797_v56 = vrot.slane %v1796_v31, 4 }
 0x194   :  { %v1460_v20 = vrot.slane %v1459_v50, 1  ;;  %v3333_v47 = vadd.f32 %v1711_v48, %v3268_v30  ;;  %v1905_v63 = vrot.slane %v1904_v9, 2  ;;  %v1294_v45 = vadd.f32 %v1293_v33, %v1292_v21 }
 0x195   :  { %v1626_v58 = vadd.f32 %v1625_v28, %v1624_v3  ;;  %v3338_v35 = vadd.f32 %v1878_v53, %v3278_v55  ;;  %v1466_v19 = vadd.f32 %v1465_v42, %v1464_v11  ;;  %v1633_v57 = vadd.f32 %v1632_v5, %v1631_v27 }
 0x196   :  { %v1791_v46 = vadd.f32 %v1790_v25, %v1789_v22  ;;  %v3340_v4 = vadd.f32 %v1406_v2, %v1405_v18  ;;  %v3342_v43 = vadd.f32 %v1738_v29, %v1737_v26  ;;  %v1300_v0 = vrot.slane %v1299_v16, 1  ;;  %v3972_v29 = vld [vmem:[#allocation13_spill] sm:$0xff] }
 0x197   :  { %v1265_v30 = vsel %vm164_vm12, %v3328_v15, 0.0  ;;  %1034 = vrot.lane.b32.xlu2 %v3288_v24, %s2241_s25  ;;  %1024 = vrot.lane.b32.xlu0 %v3288_v24, %s2240_s24  ;;  %v3350_v48 = vadd.f32 %v1573_v14, %v1572_v41  ;;  %v1461_v55 = vadd.f32 %v1460_v20, %v1459_v50  ;;  %v1798_v21 = vadd.f32 %v1797_v56, %v1796_v31  ;;  %v3970_v41 = vld [vmem:[#allocation25_spill] sm:$0xff] }
 0x198   :  { %v1792_v53 = vrot.slane %v1791_v46, 2  ;;  %v3352_v11 = vadd.f32 %v1905_v63, %v1904_v9  ;;  %v1302_v18 = vadd.f32 %v1294_v45, %v3109_v37  ;;  %v1627_v2 = vrot.slane %v1626_v58, 1  ;;  %v3971_v9 = vld [vmem:[#allocation18_spill] sm:$0xff] }
 0x199   :  { %v1267_v26 = vsel %vm2460_vm7, %v1265_v30, 0.0  ;;  %1026 = vrot.lane.b32.xlu1 %v3303_v40, %s2240_s24  ;;  %v1467_v33 = vrot.slane %v1466_v19, 1  ;;  %v1634_v3 = vrot.slane %v1633_v57, 1  ;;  %v1301_v22 = vadd.f32 %v1300_v0, %v1299_v16 }
 0x19a   :  { %3969 = vst [vmem:[#allocation19_spill] sm:$0xff] %v3352_v11  ;;  %v1793_v27 = vadd.f32 %v1792_v53, %v1791_v46  ;;  %v1418_v42 = vmul.f32 %v1267_v26, %v3970_v41  ;;  %v1585_v31 = vmul.f32 %v1267_v26, %v3971_v9  ;;  %v1752_v37 = vmul.f32 %v1267_v26, %v3972_v29 }
 0x19b   :  { %v1469_v28 = vadd.f32 %v1461_v55, %v3147_v36  ;;  %v1799_v14 = vrot.slane %v1798_v21, 2  ;;  %v1320_v25 = vadd.f32 %v3079_v17, %v1302_v18  ;;  %v1628_v56 = vadd.f32 %v1627_v2, %v1626_v58  ;;  %v3973_v58 = vld [vmem:[#allocation20_spill] sm:$0xff] }
 0x19c   :  { %v1794_v5 = vrot.slane %v1793_v27, 1  ;;  %v1426_v20 = vsel %vm178_vm3, %v1418_v42, 0.0  ;;  %v1593_v63 = vsel %vm178_vm3, %v1585_v31, 0.0  ;;  %v1760_v45 = vsel %vm178_vm3, %v1752_v37, 0.0  ;;  %v3974_v42 = vld [vmem:[#allocation15_spill] sm:$0xff] }
 0x19d   :  { %v1468_v46 = vadd.f32 %v1467_v33, %v1466_v19  ;;  %v1635_v30 = vadd.f32 %v1634_v3, %v1633_v57  ;;  %v1427_v0 = vrot.slane %v1426_v20, 4  ;;  %v1594_v50 = vrot.slane %v1593_v63, 4 }
 0x19e   :  { %v1795_v16 = vadd.f32 %v1794_v5, %v1793_v27  ;;  %v1919_v36 = vmul.f32 %v1267_v26, %v3227_v38  ;;  %v1199_v55 = vsel %vm92_vm2, %v2937_v62, %v1198_v6  ;;  %v3375_v17 = vadd.f32 %v1301_v22, %v3111_v59  ;;  %v3975_v22 = vld [vmem:[#allocation21_spill] sm:$0xff] }
 0x19f   :  { %1036 = vrot.lane.b32.xlu0 %v3303_v40, %s2241_s25  ;;  %v1487_v18 = vadd.f32 %v3973_v58, %v1469_v28  ;;  %v1800_v19 = vadd.f32 %v1799_v14, %v1798_v21  ;;  %v1761_v57 = vrot.slane %v1760_v45, 4  ;;  %v3379_v2 = vadd.f32 %v3247_v8, %v1320_v25  ;;  %v1222_v28 = vpop.permute.xlu1 %1221 }
 0x1a0   :  { %v1636_v33 = vadd.f32 %v1628_v56, %v3201_v61  ;;  %v1927_v26 = vsel %vm178_vm3, %v1919_v36, 0.0  ;;  %v1204_v62 = vsel %vm2460_vm7, %v1199_v55, 0.0  ;;  %v3386_v6 = vadd.f32 %v1468_v46, %v3187_v12  ;;  %v3976_v61 = vld [vmem:[#allocation9_spill] sm:$0xff]  ;;  %v3977_v56 = vld [vmem:[#allocation40_spill] sm:$0xff] }
 0x1a1   :  { %v3389_v59 = vadd.f32 %v1635_v30, %v3206_v13  ;;  %v1803_v3 = vadd.f32 %v1795_v16, %v3209_v60  ;;  %v1428_v21 = vadd.f32 %v1427_v0, %v1426_v20  ;;  %v1595_v27 = vadd.f32 %v1594_v50, %v1593_v63  ;;  %v3978_v20 = vld [vmem:[#allocation41_spill] sm:$0xff] }
 0x1a2   :  { %v1305_v8 = vmul.f32 %v1204_v62, %v3974_v42  ;;  %v1472_v31 = vmul.f32 %v1204_v62, %v3975_v22  ;;  %v1639_v37 = vmul.f32 %v1204_v62, %v3976_v61  ;;  %v3396_v5 = vadd.f32 %v3259_v32, %v1487_v18 }
 0x1a3   :  { %v1801_v14 = vrot.slane %v1800_v19, 1  ;;  %v1762_v12 = vadd.f32 %v1761_v57, %v1760_v45  ;;  %v1928_v25 = vrot.slane %v1927_v26, 4  ;;  %v1654_v13 = vadd.f32 %v3977_v56, %v1636_v33  ;;  %v3979_v45 = vld [vmem:[#allocation37_spill] sm:$0xff] }
 0x1a4   :  { %v1313_v46 = vsel %vm178_vm3, %v1305_v8, 0.0  ;;  %v1480_v60 = vsel %vm178_vm3, %v1472_v31, 0.0  ;;  %v1647_v50 = vsel %vm178_vm3, %v1639_v37, 0.0  ;;  %v1821_v63 = vadd.f32 %v3978_v20, %v1803_v3 }
 0x1a5   :  { %v1429_v30 = vrot.slane %v1428_v21, 2  ;;  %v1314_v16 = vrot.slane %v1313_v46, 4  ;;  %v1225_v0 = vsel %vm124_vm10, %v1222_v28, %v3196_v7  ;;  %v1596_v32 = vrot.slane %v1595_v27, 2 }
 0x1a6   :  { %v1481_v36 = vrot.slane %v1480_v60, 4  ;;  %v1648_v55 = vrot.slane %v1647_v50, 4  ;;  %v1806_v58 = vmul.f32 %v1204_v62, %v3979_v45  ;;  %v1802_v18 = vadd.f32 %v1801_v14, %v1800_v19 }
 0x1a7   :  { %v1763_v57 = vrot.slane %v1762_v12, 2  ;;  %v1929_v33 = vadd.f32 %v1928_v25, %v1927_v26  ;;  %v1315_v42 = vadd.f32 %v1314_v16, %v1313_v46  ;;  %v1229_v3 = vsel %vm2447_vm6, %v1225_v0, 0.0  ;;  %v3981_v25 = vld [vmem:[#allocation22_spill] sm:$0xff] }
 0x1a8   :  { %v1482_v8 = vadd.f32 %v1481_v36, %v1480_v60  ;;  %v1649_v22 = vadd.f32 %v1648_v55, %v1647_v50  ;;  %v1814_v31 = vsel %vm178_vm3, %v1806_v58, 0.0  ;;  %v1839_v37 = vadd.f32 %v3274_v10, %v1821_v63  ;;  %v3982_v55 = vld [vmem:[#allocation39_spill] sm:$0xff] }
 0x1a9   :  { %v1430_v56 = vadd.f32 %v1429_v30, %v1428_v21  ;;  %v1316_v7 = vrot.slane %v1315_v42, 2  ;;  %v1815_v28 = vrot.slane %v1814_v31, 4  ;;  %v1597_v20 = vadd.f32 %v1596_v32, %v1595_v27 }
 0x1aa   :  { %v1483_v53 = vrot.slane %v1482_v8, 2  ;;  %v1650_v23 = vrot.slane %v1649_v22, 2  ;;  %v1363_v19 = vmul.f32 %v1229_v3, %v3962_v51  ;;  %v1764_v62 = vadd.f32 %v1763_v57, %v1762_v12  ;;  %v3983_v57 = vld [vmem:[#allocation6_spill] sm:$0xff] }
 0x1ab   :  { %v1317_v26 = vadd.f32 %v1316_v7, %v1315_v42  ;;  %v1816_v14 = vadd.f32 %v1815_v28, %v1814_v31  ;;  %v1530_v46 = vmul.f32 %v1229_v3, %v3981_v25  ;;  %v1930_v60 = vrot.slane %v1929_v33, 2 }
 0x1ac   :  { %v1484_v50 = vadd.f32 %v1483_v53, %v1482_v8  ;;  %v1651_v16 = vadd.f32 %v1650_v23, %v1649_v22  ;;  %v1365_v0 = vsel %vm178_vm3, %v1363_v19, 0.0  ;;  %v1431_v27 = vrot.slane %v1430_v56, 1 }
 0x1ad   :  { %v1318_v36 = vrot.slane %v1317_v26, 1  ;;  %v1817_v10 = vrot.slane %v1816_v14, 2  ;;  %v1366_v21 = vrot.slane %v1365_v0, 4  ;;  %v1532_v63 = vsel %vm178_vm3, %v1530_v46, 0.0 }
 0x1ae   :  { %v1485_v30 = vrot.slane %v1484_v50, 1  ;;  %v1533_v32 = vrot.slane %v1532_v63, 4  ;;  %v1697_v51 = vmul.f32 %v1229_v3, %v3982_v55  ;;  %v3416_v42 = vadd.f32 %v3983_v57, %v1839_v37  ;;  %v3984_v55 = vld [vmem:[#allocation35_spill] sm:$0xff] }
 0x1af   :  { %v1319_v12 = vadd.f32 %v1318_v36, %v1317_v26  ;;  %v1818_v45 = vadd.f32 %v1817_v10, %v1816_v14  ;;  %v1367_v58 = vadd.f32 %v1366_v21, %v1365_v0  ;;  %v1598_v53 = vrot.slane %v1597_v20, 1  ;;  %v3985_v14 = vld [vmem:[#allocation17_spill] sm:$0xff]  ;;  %v1237_v21 = vpop.permute.xlu1 %1236 }
 0x1b0   :  { %v1652_v23 = vrot.slane %v1651_v16, 1  ;;  %v1534_v8 = vadd.f32 %v1533_v32, %v1532_v63  ;;  %v1699_v22 = vsel %vm178_vm3, %v1697_v51, 0.0  ;;  %v1765_v31 = vrot.slane %v1764_v62, 1 }
 0x1b1   :  { %v1931_v7 = vadd.f32 %v1930_v60, %v1929_v33  ;;  %v1368_v28 = vrot.slane %v1367_v58, 2  ;;  %v1700_v19 = vrot.slane %v1699_v22, 4  ;;  %v1672_v25 = vadd.f32 %v3264_v1, %v1654_v13  ;;  %v3428_v33 = vld [vmem:[%s3796_s2] sm:$0xf] }
 0x1b2   :  { %v1819_v46 = vrot.slane %v1818_v45, 1  ;;  %v1535_v11 = vrot.slane %v1534_v8, 2  ;;  %v1864_v26 = vmul.f32 %v1229_v3, %v3984_v55  ;;  %v1804_v0 = vadd.f32 %v1802_v18, %v3985_v14  ;;  %1074 = vperm.xlu1 %2218, %v3428_v33   ;;  %1082 = vperm.xlu2 %2219, %v3428_v33   ;;  %v3986_v3 = vld [vmem:[#allocation28_spill] sm:$0xff]  ;;  %v3993_v55 = vld [vmem:[#allocation33_spill] sm:$0xff] }
 0x1b3   :  { %v3422_v36 = vadd.f32 %v1431_v27, %v1430_v56  ;;  %v1321_v37 = vadd.f32 %v1319_v12, %v3375_v17  ;;  %v1486_v10 = vadd.f32 %v1485_v30, %v1484_v50  ;;  %v3430_v60 = vadd.f32 %v1598_v53, %v1597_v20  ;;  %1114 = vperm.xlu0 %2223, %v3428_v33   ;;  %v3987_v30 = vld [vmem:[#allocation5_spill] sm:$0xff] }
 0x1b4   :  { %v1653_v1 = vadd.f32 %v1652_v23, %v1651_v16  ;;  %v1701_v13 = vadd.f32 %v1700_v19, %v1699_v22  ;;  %v1866_v63 = vsel %vm178_vm3, %v1864_v26, 0.0  ;;  %v3435_v18 = vadd.f32 %v1765_v31, %v1764_v62  ;;  %v3988_v62 = vld [vmem:[#allocation2_spill] sm:$0xff] }
 0x1b5   :  { %v1932_v17 = vrot.slane %v1931_v7, 1  ;;  %v1361_v56 = vadd.f32 %v3986_v3, %v3379_v2  ;;  %v1369_v50 = vadd.f32 %v1368_v28, %v1367_v58  ;;  %v1820_v27 = vadd.f32 %v1819_v46, %v1818_v45 }
 0x1b6   :  { %v1536_v20 = vadd.f32 %v1535_v11, %v1534_v8  ;;  %v1238_v16 = vsel %vm138_vm9, %v3987_v30, %v1237_v21  ;;  %v1241_v32 = vsel %vm138_vm9, %v1237_v21, 0.0  ;;  %v1339_v51 = vadd.f32 %v3256_v34, %v1321_v37  ;;  %v3991_v34 = vld [vmem:[#allocation36_spill] sm:$0xff]  ;;  %v3994_v37 = vld [vmem:[#allocation29_spill] sm:$0xff] }
 0x1b7   :  { %v1488_v12 = vadd.f32 %v1486_v10, %v3386_v6  ;;  %v1528_v57 = vadd.f32 %v3988_v62, %v3396_v5  ;;  %v1867_v53 = vrot.slane %v1866_v63, 4  ;;  %v1655_v2 = vadd.f32 %v1653_v1, %v3389_v59  ;;  %v3992_v6 = vld [vmem:[#allocation11_spill] sm:$0xff] }
 0x1b8   :  { %v1702_v58 = vrot.slane %v1701_v13, 2  ;;  %v1242_v45 = vsel %vm2415_vm1, %v1238_v16, 0.0  ;;  %v3452_v8 = vsel %vm2436_vm5, %v1241_v32, 0.0  ;;  %v3454_v22 = vadd.f32 %v1932_v17, %v1931_v7 }
 0x1b9   :  { %v1370_v31 = vrot.slane %v1369_v50, 1  ;;  %v3457_v28 = vadd.f32 %v3991_v34, %v1672_v25  ;;  %v1381_v19 = vmul.f32 %v1242_v45, %v3992_v6  ;;  %v1822_v5 = vadd.f32 %v1820_v27, %v1804_v0 }
 0x1ba   :  { %v1537_v46 = vrot.slane %v1536_v20, 1  ;;  %v1382_v59 = vmul.f32 %v3452_v8, %v3992_v6  ;;  %v1548_v26 = vmul.f32 %v1242_v45, %v3993_v55  ;;  %v1868_v14 = vadd.f32 %v1867_v53, %v1866_v63 }
 0x1bb   :  { %v1362_v10 = vadd.f32 %v3994_v37, %v1339_v51  ;;  %v1383_v21 = vsel %vm178_vm3, %v1381_v19, 0.0  ;;  %v1549_v7 = vmul.f32 %v3452_v8, %v3993_v55  ;;  %v1506_v25 = vadd.f32 %v3262_v39, %v1488_v12  ;;  %1056 = vrot.lane.b32.xlu0 %v3303_v40, %s2246_s27  ;;  %v4000_v37 = vld [vmem:[#allocation7_spill] sm:$0xff] }
 0x1bc   :  { %v1673_v1 = vadd.f32 %v3266_v44, %v1655_v2  ;;  %v1703_v17 = vadd.f32 %v1702_v58, %v1701_v13  ;;  %v1390_v0 = vsel %vm178_vm3, %v1382_v59, 0.0  ;;  %v3995_v3 = vmov 4   ;;  %v3997_v13 = vld [vmem:[#allocation3_spill] sm:$0xff]  ;;  %v3999_v59 = vld [vmem:[#allocation34_spill] sm:$0xff] }
 0x1bd   :  { %2222 = vset.pattern.permute.xlu1 %v3995_v3  ;;  %v3996_v27 = vmov 2   ;;  %v1371_v30 = vadd.f32 %v1370_v31, %v1369_v50  ;;  %v1384_v63 = vrot.slane %v1383_v21, 4  ;;  %v1391_v16 = vrot.slane %v1390_v0, 4 }
 0x1be   :  { %2220 = vset.pattern.permute.xlu2 %v3996_v27  ;;  %v1550_v32 = vsel %vm178_vm3, %v1548_v26, 0.0  ;;  %1106 = vperm.xlu1 %2222, %v3428_v33   ;;  %v1840_v39 = vadd.f32 %v3276_v49, %v1822_v5  ;;  %v1538_v51 = vadd.f32 %v1537_v46, %v1536_v20  ;;  %v1557_v44 = vsel %vm178_vm3, %v1549_v7, 0.0 }
 0x1bf   :  { %1090 = vperm.xlu2 %2220, %v3428_v33   ;;  %v1715_v12 = vmul.f32 %v1242_v45, %v3997_v13  ;;  %v1869_v62 = vrot.slane %v1868_v14, 2  ;;  %v1380_v50 = vadd.f32 %v3299_v54, %v1362_v10  ;;  %v1392_v53 = vadd.f32 %v1391_v16, %v1390_v0 }
 0x1c0   :  { %v1558_v2 = vrot.slane %v1557_v44, 4  ;;  %v3998_v58 = vmov 0   ;;  %v1704_v31 = vrot.slane %v1703_v17, 1  ;;  %v1551_v34 = vrot.slane %v1550_v32, 4 }
 0x1c1   :  { %2227 = vset.pattern.permute.xlu0 %v3998_v58  ;;  %v1716_v49 = vmul.f32 %v3452_v8, %v3997_v13  ;;  %v1717_v20 = vsel %vm178_vm3, %v1715_v12, 0.0  ;;  %v3485_v6 = vadd.f32 %v1371_v30, %v1361_v56  ;;  %v1385_v19 = vadd.f32 %v1384_v63, %v1383_v21  ;;  %v4001_v21 = vld [vmem:[#allocation26_spill] sm:$0xff] }
 0x1c2   :  { %v1393_v5 = vrot.slane %v1392_v53, 2  ;;  %v1559_v46 = vadd.f32 %v1558_v2, %v1557_v44  ;;  %v1529_v55 = vadd.f32 %v3999_v59, %v1506_v25  ;;  %v1718_v26 = vrot.slane %v1717_v20, 4 }
 0x1c3   :  { %v1724_v54 = vsel %vm178_vm3, %v1716_v49, 0.0  ;;  %v1863_v10 = vadd.f32 %v4000_v37, %v1840_v39  ;;  %v3490_v7 = vadd.f32 %v1869_v62, %v1868_v14  ;;  %v3492_v16 = vadd.f32 %v1538_v51, %v1528_v57  ;;  %1062 = vrot.lane.b32.xlu0 %v3288_v24, %s2248_s28 }
 0x1c4   :  { %v1394_v0 = vadd.f32 %v1393_v5, %v1392_v53  ;;  %v1560_v3 = vrot.slane %v1559_v46, 2  ;;  %v1725_v27 = vrot.slane %v1724_v54, 4  ;;  %v3494_v13 = vadd.f32 %v1704_v31, %v1703_v17  ;;  %v1259_v31 = vpop.permute.xlu1 %1258 }
 0x1c5   :  { %v1552_v56 = vadd.f32 %v1551_v34, %v1550_v32  ;;  %v1882_v30 = vmul.f32 %v1242_v45, %v4001_v21  ;;  %v1386_v63 = vrot.slane %v1385_v19, 2  ;;  %v4002_v39 = vmov 3   ;;  %v4004_v34 = vld [vmem:[#allocation38_spill] sm:$0xff] }
 0x1c6   :  { %v1395_v44 = vrot.slane %v1394_v0, 1  ;;  %v1561_v25 = vadd.f32 %v1560_v3, %v1559_v46  ;;  %v1726_v12 = vadd.f32 %v1725_v27, %v1724_v54  ;;  %1044 = vrot.lane.b32.xlu1 %v3288_v24, %s2245_s26  ;;  %v1547_v14 = vadd.f32 %v3314_v52, %v1529_v55  ;;  %v4005_v3 = vld [vmem:[#allocation16_spill] sm:$0xff] }
 0x1c7   :  { %2221 = vset.pattern.permute.xlu2 %v4002_v39  ;;  %v1719_v62 = vadd.f32 %v1718_v26, %v1717_v20  ;;  %v1883_v57 = vmul.f32 %v3452_v8, %v4001_v21  ;;  %v1884_v17 = vsel %vm178_vm3, %v1882_v30, 0.0  ;;  %v4003_v45 = vmov 6  }
 0x1c8   :  { %1098 = vperm.xlu2 %2221, %v3428_v33   ;;  %2224 = vset.pattern.permute.xlu1 %v4003_v45  ;;  %v1871_v32 = vrot.slane %v3490_v7, 1  ;;  %v1396_v51 = vadd.f32 %v1395_v44, %v1394_v0  ;;  %v1562_v53 = vrot.slane %v1561_v25, 1  ;;  %v1727_v2 = vrot.slane %v1726_v12, 2 }
 0x1c9   :  { %v1553_v52 = vrot.slane %v1552_v56, 2  ;;  %v1696_v49 = vadd.f32 %v4004_v34, %v1673_v1  ;;  %v1885_v20 = vrot.slane %v1884_v17, 4  ;;  %v1891_v8 = vsel %vm178_vm3, %v1883_v57, 0.0 }
 0x1ca   :  { %v1387_v5 = vadd.f32 %v1386_v63, %v1385_v19  ;;  %v1398_v46 = vadd.f32 %v1396_v51, %v1380_v50  ;;  %v1563_v59 = vadd.f32 %v1562_v53, %v1561_v25  ;;  %v1728_v55 = vadd.f32 %v1727_v2, %v1726_v12  ;;  %v4006_v25 = vld [vmem:[#allocation30_spill] sm:$0xff] }
 0x1cb   :  { %v1720_v26 = vrot.slane %v1719_v62, 2  ;;  %v1886_v54 = vadd.f32 %v1885_v20, %v1884_v17  ;;  %v1892_v37 = vrot.slane %v1891_v8, 4  ;;  %v1262_v0 = vsel %vm164_vm12, %v1259_v31, %v3328_v15 }
 0x1cc   :  { %v1416_v27 = vadd.f32 %v4005_v3, %v1398_v46  ;;  %v1565_v21 = vadd.f32 %v1563_v59, %v1547_v14  ;;  %v1729_v30 = vrot.slane %v1728_v55, 1  ;;  %v1266_v1 = vsel %vm2447_vm6, %v1262_v0, 0.0 }
 0x1cd   :  { %v1554_v44 = vadd.f32 %v1553_v52, %v1552_v56  ;;  %v1714_v39 = vadd.f32 %v3333_v47, %v1696_v49  ;;  %v1887_v19 = vrot.slane %v1886_v54, 2  ;;  %v1893_v50 = vadd.f32 %v1892_v37, %v1891_v8 }
 0x1ce   :  { %v1434_v63 = vadd.f32 %v3422_v36, %v1416_v27  ;;  %v1583_v12 = vadd.f32 %v4006_v25, %v1565_v21  ;;  %v1730_v57 = vadd.f32 %v1729_v30, %v1728_v55  ;;  %v1417_v17 = vmul.f32 %v1266_v1, %v3970_v41  ;;  %1122 = vperm.xlu1 %2224, %v3428_v33  }
 0x1cf   :  { %v1388_v15 = vrot.slane %v1387_v5, 1  ;;  %v1721_v14 = vadd.f32 %v1720_v26, %v1719_v62  ;;  %v1881_v45 = vadd.f32 %v3338_v35, %v1863_v10  ;;  %v1894_v51 = vrot.slane %v1893_v50, 2  ;;  %v4008_v62 = vld [vmem:[#allocation32_spill] sm:$0xff] }
 0x1d0   :  { %1046 = vrot.lane.b32.xlu2 %v3303_v40, %s2245_s26  ;;  %v1601_v47 = vadd.f32 %v3430_v60, %v1583_v12  ;;  %v1732_v56 = vadd.f32 %v1730_v57, %v1714_v39  ;;  %v1419_v36 = vsel %vm178_vm3, %v1417_v17, 0.0  ;;  %v1584_v53 = vmul.f32 %v1266_v1, %v3971_v9  ;;  %v4009_v12 = vld [vmem:[#allocation42_spill] sm:$0xff] }
 0x1d1   :  { %v4007_v2 = vmov 7   ;;  %v1555_v41 = vrot.slane %v1554_v44, 1  ;;  %v1888_v31 = vadd.f32 %v1887_v19, %v1886_v54  ;;  %v1895_v52 = vadd.f32 %v1894_v51, %v1893_v50 }
 0x1d2   :  { %2225 = vset.pattern.permute.xlu2 %v4007_v2  ;;  %v1420_v34 = vrot.slane %v1419_v36, 4  ;;  %v1750_v49 = vadd.f32 %v4008_v62, %v1732_v56  ;;  %v1937_v35 = vsel %vm985_vm13, %v1434_v63, %v1601_v47  ;;  %v1586_v10 = vsel %vm178_vm3, %v1584_v53, 0.0  ;;  %v4011_v62 = vld [vmem:[#allocation19_spill] sm:$0xff] }
 0x1d3   :  { %v1751_v20 = vmul.f32 %v1266_v1, %v3972_v29  ;;  %v1389_v60 = vadd.f32 %v1388_v15, %v1387_v5  ;;  %v1896_v8 = vrot.slane %v1895_v52, 1  ;;  %v1587_v59 = vrot.slane %v1586_v10, 4 }
 0x1d4   :  { %v1421_v46 = vadd.f32 %v1420_v34, %v1419_v36  ;;  %v1722_v55 = vrot.slane %v1721_v14, 1  ;;  %v1768_v9 = vadd.f32 %v3435_v18, %v1750_v49  ;;  %v1918_v54 = vmul.f32 %v1266_v1, %v3227_v38 }
 0x1d5   :  { %v1753_v26 = vsel %vm178_vm3, %v1751_v20, 0.0  ;;  %v1556_v37 = vadd.f32 %v1555_v41, %v1554_v44  ;;  %v1897_v0 = vadd.f32 %v1896_v8, %v1895_v52  ;;  %v1588_v27 = vadd.f32 %v1587_v59, %v1586_v10 }
 0x1d6   :  { %v1422_v3 = vrot.slane %v1421_v46, 2  ;;  %v1889_v21 = vrot.slane %v1888_v31, 1  ;;  %v1939_v30 = vsel %vm988_vm14, %v1937_v35, %v1768_v9  ;;  %v1754_v39 = vrot.slane %v1753_v26, 4  ;;  %1064 = vrot.lane.b32.xlu1 %v3303_v40, %s2248_s28 }
 0x1d7   :  { %v1920_v29 = vsel %vm178_vm3, %v1918_v54, 0.0  ;;  %v1397_v5 = vadd.f32 %v1389_v60, %v3485_v6  ;;  %v1899_v18 = vadd.f32 %v1897_v0, %v1881_v45  ;;  %v1589_v50 = vrot.slane %v1588_v27, 2  ;;  %2228 = vset.pattern.permute.xlu1 %v3998_v58 }
 0x1d8   :  { %v1423_v19 = vadd.f32 %v1422_v3, %v1421_v46  ;;  %1054 = vrot.lane.b32.xlu2 %v3288_v24, %s2246_s27  ;;  %v1872_v38 = vadd.f32 %v1871_v32, %v3490_v7  ;;  %v1723_v1 = vadd.f32 %v1722_v55, %v1721_v14  ;;  %v1755_v44 = vadd.f32 %v1754_v39, %v1753_v26 }
 0x1d9   :  { %v1921_v63 = vrot.slane %v1920_v29, 4  ;;  %v1564_v25 = vadd.f32 %v1556_v37, %v3492_v16  ;;  %v1917_v57 = vadd.f32 %v4009_v12, %v1899_v18  ;;  %v1590_v17 = vadd.f32 %v1589_v50, %v1588_v27 }
 0x1da   :  { %v1424_v6 = vrot.slane %v1423_v19, 1  ;;  %v1713_v15 = vadd.f32 %v3494_v13, %v3457_v28  ;;  %v1890_v45 = vadd.f32 %v1889_v21, %v1888_v31  ;;  %v1756_v51 = vrot.slane %v1755_v44, 2 }
 0x1db   :  { %v1922_v47 = vadd.f32 %v1921_v63, %v1920_v29  ;;  %v1935_v58 = vadd.f32 %v3454_v22, %v1917_v57  ;;  %v1415_v56 = vadd.f32 %v3340_v4, %v1397_v5  ;;  %v1591_v32 = vrot.slane %v1590_v17, 1 }
 0x1dc   :  { %v1425_v7 = vadd.f32 %v1424_v6, %v1423_v19  ;;  %v1880_v14 = vadd.f32 %v1872_v38, %v3416_v42  ;;  %v1731_v36 = vadd.f32 %v1723_v1, %v1713_v15  ;;  %v1757_v16 = vadd.f32 %v1756_v51, %v1755_v44 }
 0x1dd   :  { %v1923_v53 = vrot.slane %v1922_v47, 2  ;;  %v3554_v2 = vsel %vm991_vm15, %v1939_v30, %v1935_v58  ;;  %v1582_v28 = vadd.f32 %v3350_v48, %v1564_v25  ;;  %v1592_v13 = vadd.f32 %v1591_v32, %v1590_v17 }
 0x1de   :  { %v1433_v41 = vadd.f32 %v1425_v7, %v1415_v56  ;;  %v4010_v31 = vrot.slane %v3342_v43, 1  ;;  %v1898_v52 = vadd.f32 %v1890_v45, %v1880_v14  ;;  %v1758_v4 = vrot.slane %v1757_v16, 1  ;;  %1946 = vrot.lane.b32.xlu1 %v3554_v2, %s2234_s22 }
 0x1df   :  { %v1924_v34 = vadd.f32 %v1923_v53, %v1922_v47  ;;  %v1600_v42 = vadd.f32 %v1592_v13, %v1582_v28  ;;  %v4012_v49 = vrot.slane %v4011_v62, 1  ;;  %v4013_v26 = vmov 8  }
 0x1e0   :  { %v1741_v22 = vadd.f32 %v4010_v31, %v3342_v43  ;;  %1130 = vperm.xlu2 %2225, %v3428_v33   ;;  %v1759_v48 = vadd.f32 %v1758_v4, %v1757_v16 }
 0x1e1   :  { %v1908_v35 = vadd.f32 %v4012_v49, %v4011_v62  ;;  %v1925_v20 = vrot.slane %v1924_v34, 1  ;;  %v1936_v60 = vsel %vm985_vm13, %v1433_v41, %v1600_v42  ;;  %v1007_v54 = vpop.permute.xlu2 %1006 }
 0x1e2   :  { %v1749_v10 = vadd.f32 %v1741_v22, %v1731_v36  ;;  %v1013_v63 = vsel %vm80_vm4, 0.0, %v1007_v54 }
 0x1e3   :  { %v1916_v43 = vadd.f32 %v1908_v35, %v1898_v52  ;;  %v1926_v46 = vadd.f32 %v1925_v20, %v1924_v34 }
 0x1e4   :  { %v1767_v8 = vadd.f32 %v1759_v48, %v1749_v10 }
 0x1e5   :  { %v1934_v59 = vadd.f32 %v1926_v46, %v1916_v43 }
 0x1e6   :  { %v1938_v55 = vsel %vm988_vm14, %v1936_v60, %v1767_v8  ;;  %1964 = vrot.lane.b32.xlu1 %v3554_v2, %s2239_s23 }
 0x1e7   :  { %v3569_v9 = vsel %vm991_vm15, %v1938_v55, %v1934_v59 }
 0x1e8   :  { %1944 = vrot.lane.b32.xlu0 %v3569_v9, %s2234_s22  ;;  %1954 = vrot.lane.b32.xlu2 %v3569_v9, %s2237_s1 }
 0x1e9   :  { %2226 = vset.pattern.permute.xlu2 %v4013_v26  ;;  %v1017_v37 = vpop.permute.xlu2 %1016 }
 0x1ee   :  { %1974 = vrot.lane.b32.xlu1 %v3554_v2, %s2240_s24 }
 0x1f0   :  { %1956 = vrot.lane.b32.xlu0 %v3554_v2, %s2237_s1  ;;  %1982 = vrot.lane.b32.xlu2 %v3569_v9, %s2241_s25 }
 0x1f1   :  { %v1035_v0 = vpop.permute.xlu2 %1034 }
 0x1f6   :  { %1992 = vrot.lane.b32.xlu1 %v3569_v9, %s2245_s26 }
 0x1f8   :  { %1962 = vrot.lane.b32.xlu0 %v3569_v9, %s2239_s23  ;;  %1994 = vrot.lane.b32.xlu2 %v3554_v2, %s2245_s26 }
 0x1f9   :  { %v997_v3 = vpop.permute.xlu0 %996 }
 0x1fa   :  { %v1003_v38 = vsel %vm62_vm0, 0.0, %v997_v3 }
 0x1fb   :  { %v999_v27 = vpop.permute.xlu1 %998  ;;  %v1004_v12 = vsel %vm2415_vm1, %v1003_v38, 0.0 }
 0x1fc   :  { %v1000_v50 = vsel %vm62_vm0, %v997_v3, %v999_v27 }
 0x1fd   :  { %v1005_v57 = vsel %vm2436_vm5, %v1000_v50, 0.0 }
 0x1fe   :  { %2002 = vrot.lane.b32.xlu1 %v3569_v9, %s2246_s27 }
 0x200   :  { %1972 = vrot.lane.b32.xlu0 %v3569_v9, %s2240_s24  ;;  %2004 = vrot.lane.b32.xlu2 %v3554_v2, %s2246_s27 }
 0x201   :  { %v1009_v30 = vpop.permute.xlu0 %1008 }
 0x202   :  { %v1010_v44 = vsel %vm80_vm4, %v1007_v54, %v1009_v30 }
 0x203   :  { %v1015_v39 = vpop.permute.xlu1 %1014 }
 0x204   :  { %v1021_v1 = vsel %vm92_vm2, 0.0, %v1015_v39 }
 0x205   :  { %v1022_v6 = vsel %vm2447_vm6, %v1021_v1, 0.0 }
 0x206   :  { %2012 = vrot.lane.b32.xlu1 %v3554_v2, %s2248_s28 }
 0x208   :  { %1984 = vrot.lane.b32.xlu0 %v3554_v2, %s2241_s25  ;;  %1138 = vperm.xlu2 %2226, %v3428_v33   ;;  %v1018_v33 = vsel %vm92_vm2, %v1015_v39, %v1017_v37 }
 0x209   :  { %v1025_v5 = vpop.permute.xlu0 %1024  ;;  %v1023_v15 = vsel %vm2460_vm7, %v1018_v33, 0.0 }
 0x20a   :  { %v1031_v7 = vsel %vm110_vm8, 0.0, %v1025_v5 }
 0x20b   :  { %v1027_v18 = vpop.permute.xlu1 %1026  ;;  %v1032_v41 = vsel %vm2415_vm1, %v1031_v7, 0.0 }
 0x20c   :  { %v3603_v21 = vpop.permute.xlu2 %1082  ;;  %v1028_v26 = vsel %vm110_vm8, %v1025_v5, %v1027_v18 }
 0x20d   :  { %v1085_v51 = vmul.f32 %v3603_v21, %v1013_v63  ;;  %v1086_v47 = vmul.f32 %v3603_v21, %v1010_v44 }
 0x210   :  { %2010 = vrot.lane.b32.xlu0 %v3569_v9, %s2248_s28 }
 0x211   :  { %v1037_v25 = vpop.permute.xlu0 %1036 }
 0x212   :  { %v1038_v22 = vsel %vm124_vm10, %v1035_v0, %v1037_v25  ;;  %v1033_v0 = vsel %vm2436_vm5, %v1028_v26, 0.0  ;;  %v1041_v39 = vsel %vm124_vm10, %v1037_v25, 0.0 }
 0x213   :  { %v1042_v49 = vsel %vm2447_vm6, %v1038_v22, 0.0  ;;  %v1043_v1 = vsel %vm2460_vm7, %v1041_v39, 0.0 }
 0x219   :  { %v3605_v29 = vpop.permute.xlu2 %1090 }
 0x21a   :  { %v1094_v14 = vmul.f32 %v3605_v29, %v1023_v15  ;;  %v1093_v53 = vmul.f32 %v3605_v29, %v1022_v6 }
 0x222   :  { %v3607_v19 = vpop.permute.xlu2 %1098 }
 0x223   :  { %v1101_v31 = vmul.f32 %v3607_v19, %v1032_v41  ;;  %v1102_v27 = vmul.f32 %v3607_v19, %v1033_v0 }
 0x224   :  { %v3623_v45 = vpop.permute.xlu1 %1074 }
 0x225   :  { %v1077_v58 = vmul.f32 %v3623_v45, %v1004_v12  ;;  %v1078_v56 = vmul.f32 %v3623_v45, %v1005_v57  ;;  %v3636_v52 = vpop.permute.xlu0 %1114 }
 0x226   :  { %v1117_v35 = vmul.f32 %v3636_v52, %v1042_v49  ;;  %v1118_v25 = vmul.f32 %v3636_v52, %v1043_v1 }
 0x227   :  { %v1087_v36 = vadd.f32 %v1085_v51, %v1077_v58  ;;  %v1088_v16 = vadd.f32 %v1086_v47, %v1078_v56 }
 0x229   :  { %v1096_v28 = vadd.f32 %v1094_v14, %v1088_v16  ;;  %v1095_v13 = vadd.f32 %v1093_v53, %v1087_v36 }
 0x22a   :  { %v1047_v32 = vpop.permute.xlu2 %1046 }
 0x22b   :  { %v1103_v34 = vadd.f32 %v1101_v31, %v1095_v13  ;;  %v1051_v50 = vsel %vm138_vm9, %v1047_v32, 0.0  ;;  %v1104_v38 = vadd.f32 %v1102_v27, %v1096_v28 }
 0x22c   :  { %v1053_v44 = vsel %vm2436_vm5, %v1051_v50, 0.0 }
 0x22d   :  { %v1057_v46 = vpop.permute.xlu0 %1056 }
 0x22e   :  { %v1061_v58 = vsel %vm152_vm11, %v1057_v46, 0.0 }
 0x230   :  { %v3638_v4 = vpop.permute.xlu1 %1106 }
 0x231   :  { %v1109_v42 = vmul.f32 %v3638_v4, %v3288_v24  ;;  %v1110_v30 = vmul.f32 %v3638_v4, %v3303_v40 }
 0x232   :  { %v1055_v62 = vpop.permute.xlu2 %1054 }
 0x233   :  { %v1111_v10 = vadd.f32 %v1109_v42, %v1103_v34  ;;  %v1112_v5 = vadd.f32 %v1110_v30, %v1104_v38  ;;  %v1058_v47 = vsel %vm152_vm11, %v1055_v62, %v1057_v46 }
 0x235   :  { %v1119_v48 = vadd.f32 %v1117_v35, %v1111_v10  ;;  %v1063_v54 = vpop.permute.xlu0 %1062  ;;  %v1120_v51 = vadd.f32 %v1118_v25, %v1112_v5 }
 0x238   :  { %v1045_v20 = vpop.permute.xlu1 %1044 }
 0x239   :  { %v1048_v33 = vsel %vm138_vm9, %v1045_v20, %v1047_v32 }
 0x23a   :  { %v3645_v60 = vpop.permute.xlu2 %1130  ;;  %v1052_v63 = vsel %vm2415_vm1, %v1048_v33, 0.0 }
 0x23b   :  { %v1133_v36 = vmul.f32 %v3645_v60, %v1058_v47  ;;  %v1134_v16 = vmul.f32 %v3645_v60, %v1061_v58 }
 0x240   :  { %v3647_v8 = vpop.permute.xlu1 %1122 }
 0x241   :  { %v1125_v6 = vmul.f32 %v3647_v8, %v1052_v63  ;;  %v1126_v15 = vmul.f32 %v3647_v8, %v1053_v44 }
 0x242   :  { %v3649_v43 = vpop.permute.xlu2 %1954 }
 0x243   :  { %v1127_v56 = vadd.f32 %v1125_v6, %v1119_v48  ;;  %v1128_v7 = vadd.f32 %v1126_v15, %v1120_v51  ;;  %v1961_v33 = vsel %vm80_vm4, 0.0, %v3649_v43 }
 0x245   :  { %v1135_v22 = vadd.f32 %v1133_v36, %v1127_v56  ;;  %v1136_v34 = vadd.f32 %v1134_v16, %v1128_v7  ;;  %v2036_v16 = vmul.f32 %v3569_v9, %v3638_v4 }
 0x248   :  { %v1065_v59 = vpop.permute.xlu1 %1064 }
 0x249   :  { %v1066_v32 = vsel %vm164_vm12, %v1063_v54, %v1065_v59  ;;  %v1069_v14 = vsel %vm164_vm12, %v1065_v59, 0.0 }
 0x24a   :  { %v3651_v55 = vpop.permute.xlu2 %1982  ;;  %v1070_v41 = vsel %vm2447_vm6, %v1066_v32, 0.0  ;;  %v1071_v28 = vsel %vm2460_vm7, %v1069_v14, 0.0 }
 0x250   :  { %v1947_v37 = vpop.permute.xlu1 %1946 }
 0x252   :  { %v3656_v3 = vpop.permute.xlu2 %1994 }
 0x258   :  { %v1965_v18 = vpop.permute.xlu1 %1964 }
 0x25a   :  { %v1945_v12 = vpop.permute.xlu0 %1944  ;;  %v3670_v57 = vpop.permute.xlu2 %2004 }
 0x25b   :  { %v1951_v20 = vsel %vm62_vm0, 0.0, %v1945_v12  ;;  %v1948_v46 = vsel %vm62_vm0, %v1945_v12, %v1947_v37  ;;  %v2024_v12 = vmul.f32 %v1961_v33, %v3603_v21 }
 0x260   :  { %v1975_v53 = vpop.permute.xlu1 %1974 }
 0x262   :  { %v1957_v13 = vpop.permute.xlu0 %1956  ;;  %v3685_v31 = vpop.permute.xlu2 %1138 }
 0x263   :  { %v1141_v42 = vmul.f32 %v3685_v31, %v1070_v41  ;;  %v1142_v62 = vmul.f32 %v3685_v31, %v1071_v28  ;;  %v1958_v5 = vsel %vm80_vm4, %v3649_v43, %v1957_v13  ;;  %v2037_v41 = vmul.f32 %v3554_v2, %v3638_v4 }
 0x264   :  { %v2025_v25 = vmul.f32 %v1958_v5, %v3603_v21 }
 0x265   :  { %v1143_v49 = vadd.f32 %v1141_v42, %v1135_v22  ;;  %v1144_v35 = vadd.f32 %v1142_v62, %v1136_v34  ;;  %v1999_v22 = vsel %vm138_vm9, %v3656_v3, 0.0 }
 0x267   :  { %v1147_v10 = vrot.slane %v1143_v49, 4  ;;  %v1148_v48 = vrot.slane %v1144_v35, 4 }
 0x268   :  { %v1993_v59 = vpop.permute.xlu1 %1992 }
 0x269   :  { %v3693_v26 = vsel %vm178_vm3, %v3288_v24, %v1147_v10  ;;  %v3697_v54 = vsel %vm178_vm3, %v3303_v40, %v1148_v48  ;;  %v1952_v24 = vsel %vm2415_vm1, %v1951_v20, 0.0  ;;  %v1953_v40 = vsel %vm2436_vm5, %v1948_v46, 0.0 }
 0x26a   :  { %v1963_v0 = vpop.permute.xlu0 %1962  ;;  %v1155_v27 = vadd.f32 %v3697_v54, %v3693_v26  ;;  %v1159_v30 = vmul.f32 %v3693_v26, %v3693_v26  ;;  %v1160_v39 = vmul.f32 %v3697_v54, %v3697_v54  ;;  %v2020_v44 = vmul.f32 %v1952_v24, %v3623_v45 }
 0x26b   :  { %v1969_v37 = vsel %vm92_vm2, 0.0, %v1963_v0  ;;  %v1966_v50 = vsel %vm92_vm2, %v1963_v0, %v1965_v18  ;;  %v2021_v63 = vmul.f32 %v1953_v40, %v3623_v45  ;;  %v1996_v13 = vsel %vm138_vm9, %v1993_v59, %v3656_v3 }
 0x26c   :  { %1156 = vadd.xlane.f32.xlu0 %v1155_v27  ;;  %v1161_v38 = vadd.f32 %v1160_v39, %v1159_v30  ;;  %v1970_v1 = vsel %vm2447_vm6, %v1969_v37, 0.0  ;;  %v1971_v18 = vsel %vm2460_vm7, %v1966_v50, 0.0  ;;  %v2026_v47 = vadd.f32 %v2024_v12, %v2020_v44 }
 0x26d   :  { %v2028_v6 = vmul.f32 %v1970_v1, %v3605_v29  ;;  %v2029_v15 = vmul.f32 %v1971_v18, %v3605_v29  ;;  %v2027_v58 = vadd.f32 %v2025_v25, %v2021_v63  ;;  %v2001_v48 = vsel %vm2436_vm5, %v1999_v22, 0.0  ;;  %v2094_v22 = vld [vmem:[%s3798_s4] sm:$0xff] }
 0x26e   :  { %1162 = vadd.xlane.f32.xlu2 %v1161_v38  ;;  %v2009_v0 = vsel %vm152_vm11, %v3670_v57, 0.0  ;;  %v2045_v27 = vmul.f32 %v2001_v48, %v3647_v8 }
 0x26f   :  { %v2030_v14 = vadd.f32 %v2028_v6, %v2026_v47  ;;  %v2031_v21 = vadd.f32 %v2029_v15, %v2027_v58  ;;  %v2049_v50 = vmul.f32 %v2009_v0, %v3645_v60 }
 0x270   :  { %v2003_v43 = vpop.permute.xlu1 %2002 }
 0x271   :  { %v2006_v23 = vsel %vm152_vm11, %v2003_v43, %v3670_v57 }
 0x272   :  { %v1973_v51 = vpop.permute.xlu0 %1972  ;;  %v2048_v37 = vmul.f32 %v2006_v23, %v3645_v60 }
 0x273   :  { %v1979_v56 = vsel %vm110_vm8, 0.0, %v1973_v51  ;;  %v1976_v7 = vsel %vm110_vm8, %v1973_v51, %v1975_v53 }
 0x274   :  { %v1980_v32 = vsel %vm2415_vm1, %v1979_v56, 0.0  ;;  %v1981_v45 = vsel %vm2436_vm5, %v1976_v7, 0.0 }
 0x275   :  { %v2032_v36 = vmul.f32 %v1980_v32, %v3607_v19  ;;  %v2033_v29 = vmul.f32 %v1981_v45, %v3607_v19  ;;  %v2000_v19 = vsel %vm2415_vm1, %v1996_v13, 0.0 }
 0x276   :  { %v2044_v59 = vmul.f32 %v2000_v19, %v3647_v8 }
 0x277   :  { %v2034_v28 = vadd.f32 %v2032_v36, %v2030_v14  ;;  %v2035_v53 = vadd.f32 %v2033_v29, %v2031_v21 }
 0x278   :  { %v2013_v62 = vpop.permute.xlu1 %2012 }
 0x279   :  { %v2038_v34 = vadd.f32 %v2036_v16, %v2034_v28  ;;  %v2039_v42 = vadd.f32 %v2037_v41, %v2035_v53  ;;  %v2017_v10 = vsel %vm164_vm12, %v2013_v62, 0.0  ;;  %v2092_v28 = vld [vmem:[%s3797_s3] sm:$0xff] }
 0x27a   :  { %v1985_v49 = vpop.permute.xlu0 %1984  ;;  %v2019_v11 = vsel %vm2460_vm7, %v2017_v10, 0.0 }
 0x27b   :  { %v1986_v35 = vsel %vm124_vm10, %v3651_v55, %v1985_v49  ;;  %v1989_v4 = vsel %vm124_vm10, %v1985_v49, 0.0 }
 0x27c   :  { %v1990_v3 = vsel %vm2447_vm6, %v1986_v35, 0.0  ;;  %v1991_v20 = vsel %vm2460_vm7, %v1989_v4, 0.0 }
 0x27d   :  { %v2040_v46 = vmul.f32 %v1990_v3, %v3636_v52  ;;  %v2041_v55 = vmul.f32 %v1991_v20, %v3636_v52  ;;  %v2053_v52 = vmul.f32 %v2019_v11, %v3685_v31 }
 0x27f   :  { %v2042_v30 = vadd.f32 %v2040_v46, %v2038_v34  ;;  %v2043_v39 = vadd.f32 %v2041_v55, %v2039_v42 }
 0x281   :  { %v2047_v24 = vadd.f32 %v2045_v27, %v2043_v39  ;;  %v2046_v40 = vadd.f32 %v2044_v59, %v2042_v30 }
 0x282   :  { %v2011_v38 = vpop.permute.xlu0 %2010 }
 0x283   :  { %v2050_v33 = vadd.f32 %v2048_v37, %v2046_v40  ;;  %v2014_v5 = vsel %vm164_vm12, %v2011_v38, %v2013_v62  ;;  %v2051_v57 = vadd.f32 %v2049_v50, %v2047_v24 }
 0x284   :  { %v2018_v17 = vsel %vm2447_vm6, %v2014_v5, 0.0 }
 0x285   :  { %v2052_v8 = vmul.f32 %v2018_v17, %v3685_v31  ;;  %v2055_v1 = vadd.f32 %v2053_v52, %v2051_v57 }
 0x287   :  { %v2054_v18 = vadd.f32 %v2052_v8, %v2050_v33  ;;  %v2059_v44 = vrot.slane %v2055_v1, 4 }
 0x289   :  { %v2058_v63 = vrot.slane %v2054_v18, 4  ;;  %v2063_v60 = vsel %vm178_vm3, %v3554_v2, %v2059_v44 }
 0x28a   :  { %v2072_v12 = vmul.f32 %v2063_v60, %v2063_v60 }
 0x28b   :  { %v2062_v25 = vsel %vm178_vm3, %v3569_v9, %v2058_v63 }
 0x28c   :  { %v2067_v6 = vadd.f32 %v2063_v60, %v2062_v25  ;;  %v2071_v15 = vmul.f32 %v2062_v25, %v2062_v25 }
 0x28e   :  { %2068 = vadd.xlane.f32.xlu1 %v2067_v6  ;;  %v2073_v43 = vadd.f32 %v2072_v12, %v2071_v15 }
 0x290   :  { %2074 = vadd.xlane.f32.xlu2 %v2073_v43 }
 0x2df   :  { %v1157_v51 = vpop.xlane.xlu0 %1156 }
 0x2e1   :  { %v1163_v61 = vpop.xlane.xlu2 %1162 }
 0x301   :  { %v2069_v47 = vpop.xlane.xlu1 %2068 }
 0x302   :  { %v2070_v31 = vadd.f32 %v2069_v47, %v1157_v51 }
 0x303   :  { %v2075_v58 = vpop.xlane.xlu2 %2074 }
 0x304   :  { %v2077_v56 = vmul.f32 0.001953125, %v2070_v31  ;;  %v2076_v7 = vadd.f32 %v2075_v58, %v1163_v61 }
 0x306   :  { %v2079_v32 = vmul.f32 %v2077_v56, %v2077_v56  ;;  %v2078_v45 = vmul.f32 0.001953125, %v2076_v7 }
 0x308   :  { %v2080_v14 = vsub.f32 %v2078_v45, %v2079_v32 }
 0x30a   :  { %v2081_v2 = vadd.f32 1e-05, %v2080_v14 }
 0x30c   :  { %2229 = vrsqrt.f32 %v2081_v2  ;;  %vm2088_vm1 = vweird.f32 %v2081_v2 }
 0x312   :  { %v2230_v21 = vpop.eup %2229 }
 0x313   :  { %v2083_v36 = vmul.f32 %v2230_v21, %v2081_v2  ;;  %vm2089_vm0 = vweird.f32 %v2230_v21 }
 0x314   :  { %vm2090_vm2 = vmor %vm2088_vm1, %vm2089_vm0 }
 0x315   :  { %v2084_v9 = vmul.f32 %v2230_v21, %v2083_v36 }
 0x317   :  { %v2085_v29 = vmul.f32 0.5, %v2084_v9 }
 0x319   :  { %v2086_v16 = vsub.f32 1.5, %v2085_v29 }
 0x31b   :  { %v2087_v41 = vmul.f32 %v2230_v21, %v2086_v16 }
 0x31d   :  { %v2091_v53 = vsel %vm2090_vm2, %v2230_v21, %v2087_v41 }
 0x31e   :  { %v2093_v13 = vmul.f32 %v2092_v28, %v2091_v53 }
 0x320   :  { %2101 = vperm.xlu0 %2227, %v2093_v13   ;;  %v2095_v34 = vmul.f32 %v2093_v13, %v2077_v56 }
 0x322   :  { %v2096_v42 = vsub.f32 %v2094_v22, %v2095_v34 }
 0x324   :  { %2108 = vperm.xlu1 %2228, %v2096_v42  }
 0x392   :  { %v2102_v62 = vpop.permute.xlu0 %2101 }
 0x393   :  { %v2104_v49 = vmul.f32 %v2102_v62, %v3693_v26  ;;  %v2105_v19 = vmul.f32 %v2102_v62, %v3697_v54  ;;  %v2119_v35 = vmul.f32 %v2102_v62, %v2062_v25  ;;  %v2120_v4 = vmul.f32 %v2102_v62, %v2063_v60 }
 0x396   :  { %v2109_v10 = vpop.permute.xlu1 %2108 }
 0x397   :  { %v2111_v48 = vadd.f32 %v2109_v10, %v2104_v49  ;;  %v2112_v3 = vadd.f32 %v2109_v10, %v2105_v19  ;;  %v2121_v20 = vadd.f32 %v2119_v35, %v2109_v10  ;;  %v2122_v23 = vadd.f32 %v2120_v4, %v2109_v10 }
 0x399   :  { %v2113_v46 = vmax.f32 %v2111_v48, 0.0  ;;  %v2114_v55 = vmax.f32 %v2112_v3, 0.0  ;;  %v2123_v59 = vmax.f32 %v2121_v20, 0.0  ;;  %v2124_v0 = vmax.f32 %v2122_v23, 0.0 }
 0x39b   :  { %2115 = vst [vmem:[%s3799_s5] sm:$0xff] %v2113_v46 }
 0x39c   :  { %2116 = vst [vmem:[%s3799_s5 + $0x8] sm:$0xff] %v2114_v55 }
 0x39d   :  { %2136 = vst [vmem:[%s3799_s5 + $0x10] sm:$0xff] %v2123_v59 }
 0x39e   :  { %2137 = vst [vmem:[%s3799_s5 + $0x18] sm:$0xff] %v2124_v0 }

</bundles_post_ra>
